<compile_context>
chip_gen: v5e
topology: v5e:2x2
jax: 0.10.0
libtpu: 0.0.40
codegen_flags: <defaults>
</compile_context>

<pallas_src>
import numpy as np
import jax
import jax.numpy as jnp
from jax import lax
from jax.experimental import pallas as pl
from jax.experimental.pallas import tpu as pltpu

# ---- model dimensions implied by the PyTorch module (Linear(736, 2) => T=750) ----
B = 2            # batch
H = 2            # EEG electrode rows ("height")
T = 750          # time samples ("width")
C1 = 16          # first_conv out channels
C2 = 32          # depthwise / separable channels
K1 = 51          # first conv kernel width, padding 25
KD = 2           # depthwise kernel height
K3 = 15          # separable conv kernel width, padding 7
P4_OUT = T // 4          # 187  (AvgPool (1,4), floor mode)
P8_OUT = P4_OUT // 8     # 23   (AvgPool (1,8), floor mode)
FEAT = C2 * P8_OUT       # 736
NCLS = 2
EPS = 1e-5
PADW = K3 // 2           # 7


def _elu(x):
    return jnp.where(x > 0.0, x, jnp.exp(jnp.minimum(x, 0.0)) - 1.0)


# ----------------------------------------------------------------------------- kernel
def eegnet_kernel(xp_ref, wf_ref, bf_ref, p4_ref, w3f_ref, s3_ref, b3_ref,
                  p8_ref, wl_ref, bl_ref, out_ref, x3_ref):
    # xp_ref : (102, 750) im2col patches of one batch element
    # x3_ref : VMEM scratch (480, 187) -- stacked shifted views for the
    #          separable conv expressed as a single K=480 matmul.

    # ---- stage 1+2 fused (conv1 + BN1 + depthwise + BN2 folded into Wf/bf) ----
    z = jnp.dot(wf_ref[...], xp_ref[...], preferred_element_type=jnp.float32)
    a = _elu(z + bf_ref[...])                                            # (32, 750)

    # ---- AvgPool(1,4) + zero-pad(7) folded into one (32,750)@(750,201) matmul ----
    pad3 = jnp.dot(a, p4_ref[...], preferred_element_type=jnp.float32)   # (32, 201)

    # ---- separable conv as ONE K=480 matmul: stack the 15 shifted views ----
    for k in range(K3):
        x3_ref[k * C2:(k + 1) * C2, :] = pad3[:, k:k + P4_OUT]

    acc3 = jnp.dot(w3f_ref[...], x3_ref[...],
                   preferred_element_type=jnp.float32)                   # (32, 187)
    a3 = _elu(acc3 * s3_ref[...] + b3_ref[...])

    # ---- AvgPool(1,8) as a matmul ----
    pooled = jnp.dot(a3, p8_ref[...], preferred_element_type=jnp.float32)  # (32, 23)

    # ---- classify: flatten (channel-major) + Linear(736 -> 2) ----
    l0 = jnp.sum(wl_ref[0] * pooled)
    l1 = jnp.sum(wl_ref[1] * pooled)
    col = lax.broadcasted_iota(jnp.int32, (1, NCLS), 1)
    out_ref[...] = jnp.where(col == 0, l0, l1) + bl_ref[...]


# ----------------------------------------------------------------------------- params
def init_params(key):
    ks = jax.random.split(key, 8)
    w1 = 0.1 * jax.random.normal(ks[0], (C1, K1), jnp.float32)        # (16,1,1,51) squeezed
    wdw = 0.1 * jax.random.normal(ks[1], (C2, KD), jnp.float32)       # (32,1,2,1)  squeezed
    w3 = 0.1 * jax.random.normal(ks[2], (C2, C2, K3), jnp.float32)    # (32,32,1,15) squeezed
    wlin = 0.1 * jax.random.normal(ks[3], (NCLS, FEAT), jnp.float32)
    blin = 0.1 * jax.random.normal(ks[4], (NCLS,), jnp.float32)

    def bn(k, c):
        k1, k2, k3, k4 = jax.random.split(k, 4)
        gamma = 1.0 + 0.1 * jax.random.normal(k1, (c,), jnp.float32)
        beta = 0.1 * jax.random.normal(k2, (c,), jnp.float32)
        mean = 0.1 * jax.random.normal(k3, (c,), jnp.float32)
        var = jax.random.uniform(k4, (c,), jnp.float32, minval=0.5, maxval=1.5)
        return gamma, beta, mean, var

    return dict(w1=w1, wdw=wdw, w3=w3, wlin=wlin, blin=blin,
                bn1=bn(ks[5], C1), bn2=bn(ks[6], C2), bn3=bn(ks[7], C2))


def fold_bn(bn):
    g, b, m, v = bn
    s = g / jnp.sqrt(v + EPS)
    return s, b - m * s


def kernel_params(p):
    """Fold conv1+BN1+depthwise+BN2 into one (32, 2*51) weight + bias; fold BN3."""
    s1, t1 = fold_bn(p['bn1'])                      # (16,)
    s2, t2 = fold_bn(p['bn2'])                      # (32,)
    s3, t3 = fold_bn(p['bn3'])                      # (32,)
    g = jnp.arange(C2) // 2                         # depthwise group of output channel c
    wdw = p['wdw']                                  # (32, 2)

    # Wf[c, h, k] = s2[c] * wdw[c, h] * s1[c//2] * w1[c//2, k]
    wf = (s2[:, None, None] * wdw[:, :, None]
          * s1[g][:, None, None] * p['w1'][g][:, None, :])          # (32, 2, 51)
    wf = wf.reshape(C2, H * K1)                                      # row index h*K1 + k
    # bf[c] = s2[c] * t1[c//2] * (wdw[c,0] + wdw[c,1]) + t2[c]
    bf = s2 * t1[g] * (wdw[:, 0] + wdw[:, 1]) + t2

    # separable weights rearranged so column index = k*32 + d, matching x3 stacking
    w3f = jnp.transpose(p['w3'], (0, 2, 1)).reshape(C2, C2 * K3)     # (32, 480)
    wl = p['wlin'].reshape(NCLS, C2, P8_OUT)                         # (2, 32, 23)
    return dict(wf=wf, bf=bf.reshape(C2, 1),
                w3f=w3f, s3=s3.reshape(C2, 1), b3=t3.reshape(C2, 1),
                wl=wl, bl=p['blin'].reshape(1, NCLS))


def pooling_matrices():
    # AvgPool(1,4) as a matmul, with K3//2 zero columns on each side so the
    # result is already padded for the separable conv.
    p4 = np.zeros((T, P4_OUT + 2 * PADW), np.float32)
    for j in range(P4_OUT):
        p4[4 * j:4 * j + 4, j + PADW] = 0.25
    p8 = np.zeros((P4_OUT, P8_OUT), np.float32)
    for j in range(P8_OUT):
        p8[8 * j:8 * j + 8, j] = 0.125
    return jnp.asarray(p4), jnp.asarray(p8)


# ----------------------------------------------------------------------------- wrapper
@jax.jit
def eegnet_forward(x, kp, p4, p8):
    # x: (B, 1, H, T) NCHW, matching the PyTorch module
    bn = x.shape[0]
    xp = jnp.pad(x[:, 0], ((0, 0), (0, 0), (K1 // 2, K1 // 2)))      # (B, 2, 800)
    # im2col: patches[b, h*K1 + k, t] = xp[b, h, t + k]   -> (B, 102, 750)
    tap = jnp.arange(K1)[:, None] + jnp.arange(T)[None, :]           # (51, 750)
    patches = xp[:, :, tap].reshape(bn, H * K1, T)

    def cspec(shape):
        nd = len(shape)
        return pl.BlockSpec(shape, lambda b, _nd=nd: (0,) * _nd)

    out = pl.pallas_call(
        eegnet_kernel,
        out_shape=jax.ShapeDtypeStruct((bn, 1, NCLS), jnp.float32),
        grid=(bn,),
        in_specs=[
            pl.BlockSpec((None, H * K1, T), lambda b: (b, 0, 0)),    # im2col patches
            cspec((C2, H * K1)),                                     # fused front-end weight
            cspec((C2, 1)),                                          # fused front-end bias
            cspec((T, P4_OUT + 2 * PADW)),                           # pool-4 (+pad) matrix
            cspec((C2, C2 * K3)),                                    # separable weights (32,480)
            cspec((C2, 1)), cspec((C2, 1)),                          # BN3 scale/bias
            cspec((P4_OUT, P8_OUT)),                                 # pool-8 matrix
            cspec((NCLS, C2, P8_OUT)),                               # linear weight
            cspec((1, NCLS)),                                        # linear bias
        ],
        out_specs=pl.BlockSpec((None, 1, NCLS), lambda b: (b, 0, 0)),
        scratch_shapes=[pltpu.VMEM((C2 * K3, P4_OUT), jnp.float32)],
        compiler_params=pltpu.CompilerParams(dimension_semantics=("parallel",)),
    )(patches, kp['wf'], kp['bf'], p4, kp['w3f'], kp['s3'], kp['b3'],
      p8, kp['wl'], kp['bl'])
    return out.reshape(bn, NCLS)


# ----------------------------------------------------------------------------- reference
def eegnet_reference(x, p):
    s1, t1 = fold_bn(p['bn1'])
    s2, t2 = fold_bn(p['bn2'])
    s3, t3 = fold_bn(p['bn3'])
    hp = lax.Precision.HIGHEST
    dn = ('NCHW', 'OIHW', 'NCHW')
    y = lax.conv_general_dilated(x, p['w1'].reshape(C1, 1, 1, K1), (1, 1),
                                 ((0, 0), (K1 // 2, K1 // 2)),
                                 dimension_numbers=dn, precision=hp)
    y = y * s1.reshape(1, C1, 1, 1) + t1.reshape(1, C1, 1, 1)
    y = lax.conv_general_dilated(y, p['wdw'].reshape(C2, 1, KD, 1), (1, 1),
                                 ((0, 0), (0, 0)), dimension_numbers=dn,
                                 feature_group_count=C1, precision=hp)
    y = _elu(y * s2.reshape(1, C2, 1, 1) + t2.reshape(1, C2, 1, 1))
    y = y[..., :4 * P4_OUT].reshape(y.shape[0], C2, 1, P4_OUT, 4).mean(-1)
    y = lax.conv_general_dilated(y, p['w3'].reshape(C2, C2, 1, K3), (1, 1),
                                 ((0, 0), (PADW, PADW)),
                                 dimension_numbers=dn, precision=hp)
    y = _elu(y * s3.reshape(1, C2, 1, 1) + t3.reshape(1, C2, 1, 1))
    y = y[..., :8 * P8_OUT].reshape(y.shape[0], C2, 1, P8_OUT, 8).mean(-1)
    flat = y.reshape(y.shape[0], FEAT)
    return flat @ p['wlin'].T + p['blin']


if __name__ == "__main__":
    key = jax.random.PRNGKey(0)
    kx, kw = jax.random.split(key)
    x = jax.random.normal(kx, (B, 1, H, T), jnp.float32)
    params = init_params(kw)
    kparams = kernel_params(params)
    p4, p8 = pooling_matrices()

    out = jax.block_until_ready(eegnet_forward(x, kparams, p4, p8))
    ref = jax.block_until_ready(eegnet_reference(x, params))

    assert out.shape == (B, NCLS)
    if not np.allclose(np.asarray(out), np.asarray(ref), rtol=3e-2, atol=3e-3):
        raise AssertionError(f"kernel/reference mismatch:\n{out}\nvs\n{ref}")
    print("KERNEL_OK")
</pallas_src>

<mosaic_0001>
module attributes {stable_mosaic.version = 11 : i64} {
  func.func @eegnet_kernel(%arg0: i32, %arg1: memref<1x102x750xf32, #tpu.memory_space<vmem>>, %arg2: memref<32x102xf32, #tpu.memory_space<vmem>>, %arg3: memref<32x1xf32, #tpu.memory_space<vmem>>, %arg4: memref<750x201xf32, #tpu.memory_space<vmem>>, %arg5: memref<32x480xf32, #tpu.memory_space<vmem>>, %arg6: memref<32x1xf32, #tpu.memory_space<vmem>>, %arg7: memref<32x1xf32, #tpu.memory_space<vmem>>, %arg8: memref<187x23xf32, #tpu.memory_space<vmem>>, %arg9: memref<2x32x23xf32, #tpu.memory_space<vmem>>, %arg10: memref<1x2xf32, #tpu.memory_space<vmem>>, %arg11: memref<1x1x2xf32, #tpu.memory_space<vmem>>, %arg12: memref<480x187xf32, #tpu.memory_space<vmem>>) attributes {dimension_semantics = [#tpu.dimension_semantics<parallel>], iteration_bounds = array<i64: 2>, scalar_prefetch = 0 : i64, scratch_operands = 1 : i64, tpu.core_type = #tpu.core_type<tc>, window_params = [{transform_indices = @transform_0, window_bounds = array<i64: 1, 102, 750>}, {pipeline_mode = #tpu.pipeline_mode<synchronous>, transform_indices = @transform_1, window_bounds = array<i64: 32, 102>}, {pipeline_mode = #tpu.pipeline_mode<synchronous>, transform_indices = @transform_2, window_bounds = array<i64: 32, 1>}, {pipeline_mode = #tpu.pipeline_mode<synchronous>, transform_indices = @transform_3, window_bounds = array<i64: 750, 201>}, {pipeline_mode = #tpu.pipeline_mode<synchronous>, transform_indices = @transform_4, window_bounds = array<i64: 32, 480>}, {pipeline_mode = #tpu.pipeline_mode<synchronous>, transform_indices = @transform_5, window_bounds = array<i64: 32, 1>}, {pipeline_mode = #tpu.pipeline_mode<synchronous>, transform_indices = @transform_6, window_bounds = array<i64: 32, 1>}, {pipeline_mode = #tpu.pipeline_mode<synchronous>, transform_indices = @transform_7, window_bounds = array<i64: 187, 23>}, {pipeline_mode = #tpu.pipeline_mode<synchronous>, transform_indices = @transform_8, window_bounds = array<i64: 2, 32, 23>}, {pipeline_mode = #tpu.pipeline_mode<synchronous>, transform_indices = @transform_9, window_bounds = array<i64: 1, 2>}, {transform_indices = @transform_10, window_bounds = array<i64: 1, 1, 2>}]} {
    %c0 = arith.constant 0 : index
    %c0_0 = arith.constant 0 : index
    %0 = vector.load %arg2[%c0, %c0_0] : memref<32x102xf32, #tpu.memory_space<vmem>>, vector<32x102xf32>
    %c0_1 = arith.constant 0 : index
    %c0_2 = arith.constant 0 : index
    %c0_3 = arith.constant 0 : index
    %1 = vector.load %arg1[%c0_1, %c0_2, %c0_3] : memref<1x102x750xf32, #tpu.memory_space<vmem>>, vector<1x102x750xf32>
    %2 = vector.shape_cast %1 : vector<1x102x750xf32> to vector<102x750xf32>
    %cst = arith.constant dense<0.000000e+00> : vector<32x750xf32>
    %3 = tpu.matmul %0, %2, %cst {dimension_numbers = #tpu.dot_dimension_numbers<[1], [0], [0], [1], [0, 0, 1, 1], [], []>} : vector<32x102xf32>, vector<102x750xf32>, vector<32x750xf32> -> vector<32x750xf32>
    %c0_4 = arith.constant 0 : index
    %c0_5 = arith.constant 0 : index
    %4 = vector.load %arg3[%c0_4, %c0_5] : memref<32x1xf32, #tpu.memory_space<vmem>>, vector<32x1xf32>
    %5 = vector.broadcast %4 : vector<32x1xf32> to vector<32x750xf32>
    %6 = arith.addf %3, %5 : vector<32x750xf32>
    %cst_6 = arith.constant 0.000000e+00 : f32
    %7 = vector.broadcast %cst_6 : f32 to vector<32x750xf32>
    %8 = arith.cmpf ogt, %6, %7 : vector<32x750xf32>
    %cst_7 = arith.constant 0.000000e+00 : f32
    %9 = vector.broadcast %cst_7 : f32 to vector<32x750xf32>
    %10 = arith.minimumf %6, %9 : vector<32x750xf32>
    %11 = math.exp %10 : vector<32x750xf32>
    %cst_8 = arith.constant 1.000000e+00 : f32
    %12 = vector.broadcast %cst_8 : f32 to vector<32x750xf32>
    %13 = arith.subf %11, %12 : vector<32x750xf32>
    %14 = arith.select %8, %6, %13 : vector<32x750xi1>, vector<32x750xf32>
    %c0_9 = arith.constant 0 : index
    %c0_10 = arith.constant 0 : index
    %15 = vector.load %arg4[%c0_9, %c0_10] : memref<750x201xf32, #tpu.memory_space<vmem>>, vector<750x201xf32>
    %cst_11 = arith.constant dense<0.000000e+00> : vector<32x201xf32>
    %16 = tpu.matmul %14, %15, %cst_11 {dimension_numbers = #tpu.dot_dimension_numbers<[1], [0], [0], [1], [0, 0, 1, 1], [], []>} : vector<32x750xf32>, vector<750x201xf32>, vector<32x201xf32> -> vector<32x201xf32>
    %17 = vector.extract_strided_slice %16 {offsets = [0, 0], sizes = [32, 187], strides = [1, 1]} : vector<32x201xf32> to vector<32x187xf32>
    %c0_12 = arith.constant 0 : index
    %c0_13 = arith.constant 0 : index
    %18 = vector.load %arg12[%c0_12, %c0_13] : memref<480x187xf32, #tpu.memory_space<vmem>>, vector<32x187xf32>
    tpu.vector_store %arg12[%c0_12, %c0_13], %17 {strides = array<i32>} : memref<480x187xf32, #tpu.memory_space<vmem>>, vector<32x187xf32>,
    %19 = vector.extract_strided_slice %16 {offsets = [0, 1], sizes = [32, 187], strides = [1, 1]} : vector<32x201xf32> to vector<32x187xf32>
    %c32 = arith.constant 32 : index
    %c0_14 = arith.constant 0 : index
    %20 = vector.load %arg12[%c32, %c0_14] : memref<480x187xf32, #tpu.memory_space<vmem>>, vector<32x187xf32>
    tpu.vector_store %arg12[%c32, %c0_14], %19 {strides = array<i32>} : memref<480x187xf32, #tpu.memory_space<vmem>>, vector<32x187xf32>,
    %21 = vector.extract_strided_slice %16 {offsets = [0, 2], sizes = [32, 187], strides = [1, 1]} : vector<32x201xf32> to vector<32x187xf32>
    %c64 = arith.constant 64 : index
    %c0_15 = arith.constant 0 : index
    %22 = vector.load %arg12[%c64, %c0_15] : memref<480x187xf32, #tpu.memory_space<vmem>>, vector<32x187xf32>
    tpu.vector_store %arg12[%c64, %c0_15], %21 {strides = array<i32>} : memref<480x187xf32, #tpu.memory_space<vmem>>, vector<32x187xf32>,
    %23 = vector.extract_strided_slice %16 {offsets = [0, 3], sizes = [32, 187], strides = [1, 1]} : vector<32x201xf32> to vector<32x187xf32>
    %c96 = arith.constant 96 : index
    %c0_16 = arith.constant 0 : index
    %24 = vector.load %arg12[%c96, %c0_16] : memref<480x187xf32, #tpu.memory_space<vmem>>, vector<32x187xf32>
    tpu.vector_store %arg12[%c96, %c0_16], %23 {strides = array<i32>} : memref<480x187xf32, #tpu.memory_space<vmem>>, vector<32x187xf32>,
    %25 = vector.extract_strided_slice %16 {offsets = [0, 4], sizes = [32, 187], strides = [1, 1]} : vector<32x201xf32> to vector<32x187xf32>
    %c128 = arith.constant 128 : index
    %c0_17 = arith.constant 0 : index
    %26 = vector.load %arg12[%c128, %c0_17] : memref<480x187xf32, #tpu.memory_space<vmem>>, vector<32x187xf32>
    tpu.vector_store %arg12[%c128, %c0_17], %25 {strides = array<i32>} : memref<480x187xf32, #tpu.memory_space<vmem>>, vector<32x187xf32>,
    %27 = vector.extract_strided_slice %16 {offsets = [0, 5], sizes = [32, 187], strides = [1, 1]} : vector<32x201xf32> to vector<32x187xf32>
    %c160 = arith.constant 160 : index
    %c0_18 = arith.constant 0 : index
    %28 = vector.load %arg12[%c160, %c0_18] : memref<480x187xf32, #tpu.memory_space<vmem>>, vector<32x187xf32>
    tpu.vector_store %arg12[%c160, %c0_18], %27 {strides = array<i32>} : memref<480x187xf32, #tpu.memory_space<vmem>>, vector<32x187xf32>,
    %29 = vector.extract_strided_slice %16 {offsets = [0, 6], sizes = [32, 187], strides = [1, 1]} : vector<32x201xf32> to vector<32x187xf32>
    %c192 = arith.constant 192 : index
    %c0_19 = arith.constant 0 : index
    %30 = vector.load %arg12[%c192, %c0_19] : memref<480x187xf32, #tpu.memory_space<vmem>>, vector<32x187xf32>
    tpu.vector_store %arg12[%c192, %c0_19], %29 {strides = array<i32>} : memref<480x187xf32, #tpu.memory_space<vmem>>, vector<32x187xf32>,
    %31 = vector.extract_strided_slice %16 {offsets = [0, 7], sizes = [32, 187], strides = [1, 1]} : vector<32x201xf32> to vector<32x187xf32>
    %c224 = arith.constant 224 : index
    %c0_20 = arith.constant 0 : index
    %32 = vector.load %arg12[%c224, %c0_20] : memref<480x187xf32, #tpu.memory_space<vmem>>, vector<32x187xf32>
    tpu.vector_store %arg12[%c224, %c0_20], %31 {strides = array<i32>} : memref<480x187xf32, #tpu.memory_space<vmem>>, vector<32x187xf32>,
    %33 = vector.extract_strided_slice %16 {offsets = [0, 8], sizes = [32, 187], strides = [1, 1]} : vector<32x201xf32> to vector<32x187xf32>
    %c256 = arith.constant 256 : index
    %c0_21 = arith.constant 0 : index
    %34 = vector.load %arg12[%c256, %c0_21] : memref<480x187xf32, #tpu.memory_space<vmem>>, vector<32x187xf32>
    tpu.vector_store %arg12[%c256, %c0_21], %33 {strides = array<i32>} : memref<480x187xf32, #tpu.memory_space<vmem>>, vector<32x187xf32>,
    %35 = vector.extract_strided_slice %16 {offsets = [0, 9], sizes = [32, 187], strides = [1, 1]} : vector<32x201xf32> to vector<32x187xf32>
    %c288 = arith.constant 288 : index
    %c0_22 = arith.constant 0 : index
    %36 = vector.load %arg12[%c288, %c0_22] : memref<480x187xf32, #tpu.memory_space<vmem>>, vector<32x187xf32>
    tpu.vector_store %arg12[%c288, %c0_22], %35 {strides = array<i32>} : memref<480x187xf32, #tpu.memory_space<vmem>>, vector<32x187xf32>,
    %37 = vector.extract_strided_slice %16 {offsets = [0, 10], sizes = [32, 187], strides = [1, 1]} : vector<32x201xf32> to vector<32x187xf32>
    %c320 = arith.constant 320 : index
    %c0_23 = arith.constant 0 : index
    %38 = vector.load %arg12[%c320, %c0_23] : memref<480x187xf32, #tpu.memory_space<vmem>>, vector<32x187xf32>
    tpu.vector_store %arg12[%c320, %c0_23], %37 {strides = array<i32>} : memref<480x187xf32, #tpu.memory_space<vmem>>, vector<32x187xf32>,
    %39 = vector.extract_strided_slice %16 {offsets = [0, 11], sizes = [32, 187], strides = [1, 1]} : vector<32x201xf32> to vector<32x187xf32>
    %c352 = arith.constant 352 : index
    %c0_24 = arith.constant 0 : index
    %40 = vector.load %arg12[%c352, %c0_24] : memref<480x187xf32, #tpu.memory_space<vmem>>, vector<32x187xf32>
    tpu.vector_store %arg12[%c352, %c0_24], %39 {strides = array<i32>} : memref<480x187xf32, #tpu.memory_space<vmem>>, vector<32x187xf32>,
    %41 = vector.extract_strided_slice %16 {offsets = [0, 12], sizes = [32, 187], strides = [1, 1]} : vector<32x201xf32> to vector<32x187xf32>
    %c384 = arith.constant 384 : index
    %c0_25 = arith.constant 0 : index
    %42 = vector.load %arg12[%c384, %c0_25] : memref<480x187xf32, #tpu.memory_space<vmem>>, vector<32x187xf32>
    tpu.vector_store %arg12[%c384, %c0_25], %41 {strides = array<i32>} : memref<480x187xf32, #tpu.memory_space<vmem>>, vector<32x187xf32>,
    %43 = vector.extract_strided_slice %16 {offsets = [0, 13], sizes = [32, 187], strides = [1, 1]} : vector<32x201xf32> to vector<32x187xf32>
    %c416 = arith.constant 416 : index
    %c0_26 = arith.constant 0 : index
    %44 = vector.load %arg12[%c416, %c0_26] : memref<480x187xf32, #tpu.memory_space<vmem>>, vector<32x187xf32>
    tpu.vector_store %arg12[%c416, %c0_26], %43 {strides = array<i32>} : memref<480x187xf32, #tpu.memory_space<vmem>>, vector<32x187xf32>,
    %45 = vector.extract_strided_slice %16 {offsets = [0, 14], sizes = [32, 187], strides = [1, 1]} : vector<32x201xf32> to vector<32x187xf32>
    %c448 = arith.constant 448 : index
    %c0_27 = arith.constant 0 : index
    %46 = vector.load %arg12[%c448, %c0_27] : memref<480x187xf32, #tpu.memory_space<vmem>>, vector<32x187xf32>
    tpu.vector_store %arg12[%c448, %c0_27], %45 {strides = array<i32>} : memref<480x187xf32, #tpu.memory_space<vmem>>, vector<32x187xf32>,
    %c0_28 = arith.constant 0 : index
    %c0_29 = arith.constant 0 : index
    %47 = vector.load %arg5[%c0_28, %c0_29] : memref<32x480xf32, #tpu.memory_space<vmem>>, vector<32x480xf32>
    %c0_30 = arith.constant 0 : index
    %c0_31 = arith.constant 0 : index
    %48 = vector.load %arg12[%c0_30, %c0_31] : memref<480x187xf32, #tpu.memory_space<vmem>>, vector<480x187xf32>
    %cst_32 = arith.constant dense<0.000000e+00> : vector<32x187xf32>
    %49 = tpu.matmul %47, %48, %cst_32 {dimension_numbers = #tpu.dot_dimension_numbers<[1], [0], [0], [1], [0, 0, 1, 1], [], []>} : vector<32x480xf32>, vector<480x187xf32>, vector<32x187xf32> -> vector<32x187xf32>
    %c0_33 = arith.constant 0 : index
    %c0_34 = arith.constant 0 : index
    %50 = vector.load %arg6[%c0_33, %c0_34] : memref<32x1xf32, #tpu.memory_space<vmem>>, vector<32x1xf32>
    %51 = vector.broadcast %50 : vector<32x1xf32> to vector<32x187xf32>
    %52 = arith.mulf %49, %51 : vector<32x187xf32>
    %c0_35 = arith.constant 0 : index
    %c0_36 = arith.constant 0 : index
    %53 = vector.load %arg7[%c0_35, %c0_36] : memref<32x1xf32, #tpu.memory_space<vmem>>, vector<32x1xf32>
    %54 = vector.broadcast %53 : vector<32x1xf32> to vector<32x187xf32>
    %55 = arith.addf %52, %54 : vector<32x187xf32>
    %cst_37 = arith.constant 0.000000e+00 : f32
    %56 = vector.broadcast %cst_37 : f32 to vector<32x187xf32>
    %57 = arith.cmpf ogt, %55, %56 : vector<32x187xf32>
    %cst_38 = arith.constant 0.000000e+00 : f32
    %58 = vector.broadcast %cst_38 : f32 to vector<32x187xf32>
    %59 = arith.minimumf %55, %58 : vector<32x187xf32>
    %60 = math.exp %59 : vector<32x187xf32>
    %cst_39 = arith.constant 1.000000e+00 : f32
    %61 = vector.broadcast %cst_39 : f32 to vector<32x187xf32>
    %62 = arith.subf %60, %61 : vector<32x187xf32>
    %63 = arith.select %57, %55, %62 : vector<32x187xi1>, vector<32x187xf32>
    %c0_40 = arith.constant 0 : index
    %c0_41 = arith.constant 0 : index
    %64 = vector.load %arg8[%c0_40, %c0_41] : memref<187x23xf32, #tpu.memory_space<vmem>>, vector<187x23xf32>
    %cst_42 = arith.constant dense<0.000000e+00> : vector<32x23xf32>
    %65 = tpu.matmul %63, %64, %cst_42 {dimension_numbers = #tpu.dot_dimension_numbers<[1], [0], [0], [1], [0, 0, 1, 1], [], []>} : vector<32x187xf32>, vector<187x23xf32>, vector<32x23xf32> -> vector<32x23xf32>
    %c0_43 = arith.constant 0 : index
    %c0_44 = arith.constant 0 : index
    %c0_45 = arith.constant 0 : index
    %66 = vector.load %arg9[%c0_43, %c0_44, %c0_45] : memref<2x32x23xf32, #tpu.memory_space<vmem>>, vector<1x32x23xf32>
    %67 = vector.shape_cast %66 : vector<1x32x23xf32> to vector<32x23xf32>
    %68 = arith.mulf %67, %65 : vector<32x23xf32>
    %69 = vector.shape_cast %68 : vector<32x23xf32> to vector<1x32x23xf32>
    %cst_46 = arith.constant dense<0.000000e+00> : vector<1xf32>
    %70 = vector.multi_reduction <add>, %69, %cst_46 [1, 2] : vector<1x32x23xf32> to vector<1xf32>
    %71 = vector.shape_cast %70 : vector<1xf32> to vector<1x1x1xf32>
    %72 = vector.extract %71[0, 0, 0] : f32 from vector<1x1x1xf32>
    %c1 = arith.constant 1 : index
    %c0_47 = arith.constant 0 : index
    %c0_48 = arith.constant 0 : index
    %73 = vector.load %arg9[%c1, %c0_47, %c0_48] : memref<2x32x23xf32, #tpu.memory_space<vmem>>, vector<1x32x23xf32>
    %74 = vector.shape_cast %73 : vector<1x32x23xf32> to vector<32x23xf32>
    %75 = arith.mulf %74, %65 : vector<32x23xf32>
    %76 = vector.shape_cast %75 : vector<32x23xf32> to vector<1x32x23xf32>
    %cst_49 = arith.constant dense<0.000000e+00> : vector<1xf32>
    %77 = vector.multi_reduction <add>, %76, %cst_49 [1, 2] : vector<1x32x23xf32> to vector<1xf32>
    %78 = vector.shape_cast %77 : vector<1xf32> to vector<1x1x1xf32>
    %79 = vector.extract %78[0, 0, 0] : f32 from vector<1x1x1xf32>
    %80 = tpu.iota {dimensions = array<i32: 1>} : vector<1x2xi32>
    %c0_i32 = arith.constant 0 : i32
    %81 = vector.broadcast %c0_i32 : i32 to vector<1x2xi32>
    %82 = arith.cmpi eq, %80, %81 : vector<1x2xi32>
    %83 = vector.broadcast %72 : f32 to vector<1x2xf32>
    %84 = vector.broadcast %79 : f32 to vector<1x2xf32>
    %85 = arith.select %82, %83, %84 : vector<1x2xi1>, vector<1x2xf32>
    %c0_50 = arith.constant 0 : index
    %c0_51 = arith.constant 0 : index
    %86 = vector.load %arg10[%c0_50, %c0_51] : memref<1x2xf32, #tpu.memory_space<vmem>>, vector<1x2xf32>
    %87 = arith.addf %85, %86 : vector<1x2xf32>
    %c0_52 = arith.constant 0 : index
    %c0_53 = arith.constant 0 : index
    %c0_54 = arith.constant 0 : index
    %88 = vector.load %arg11[%c0_52, %c0_53, %c0_54] : memref<1x1x2xf32, #tpu.memory_space<vmem>>, vector<1x1x2xf32>
    %89 = vector.shape_cast %88 : vector<1x1x2xf32> to vector<1x2xf32>
    %90 = vector.shape_cast %87 : vector<1x2xf32> to vector<1x1x2xf32>
    tpu.vector_store %arg11[%c0_52, %c0_53, %c0_54], %90 {strides = array<i32>} : memref<1x1x2xf32, #tpu.memory_space<vmem>>, vector<1x1x2xf32>,
    return
  }
  func.func @transform_0(%arg0: i32) -> (i32, i32, i32) {
    %c0_i32 = arith.constant 0 : i32
    %c0_i32_0 = arith.constant 0 : i32
    %c0_i32_1 = arith.constant 0 : i32
    return %arg0, %c0_i32, %c0_i32_0 : i32, i32, i32
  }
  func.func @transform_1(%arg0: i32) -> (i32, i32) {
    %c0_i32 = arith.constant 0 : i32
    %c0_i32_0 = arith.constant 0 : i32
    %c0_i32_1 = arith.constant 0 : i32
    return %c0_i32, %c0_i32_0 : i32, i32
  }
  func.func @transform_2(%arg0: i32) -> (i32, i32) {
    %c0_i32 = arith.constant 0 : i32
    %c0_i32_0 = arith.constant 0 : i32
    %c0_i32_1 = arith.constant 0 : i32
    return %c0_i32, %c0_i32_0 : i32, i32
  }
  func.func @transform_3(%arg0: i32) -> (i32, i32) {
    %c0_i32 = arith.constant 0 : i32
    %c0_i32_0 = arith.constant 0 : i32
    %c0_i32_1 = arith.constant 0 : i32
    return %c0_i32, %c0_i32_0 : i32, i32
  }
  func.func @transform_4(%arg0: i32) -> (i32, i32) {
    %c0_i32 = arith.constant 0 : i32
    %c0_i32_0 = arith.constant 0 : i32
    %c0_i32_1 = arith.constant 0 : i32
    return %c0_i32, %c0_i32_0 : i32, i32
  }
  func.func @transform_5(%arg0: i32) -> (i32, i32) {
    %c0_i32 = arith.constant 0 : i32
    %c0_i32_0 = arith.constant 0 : i32
    %c0_i32_1 = arith.constant 0 : i32
    return %c0_i32, %c0_i32_0 : i32, i32
  }
  func.func @transform_6(%arg0: i32) -> (i32, i32) {
    %c0_i32 = arith.constant 0 : i32
    %c0_i32_0 = arith.constant 0 : i32
    %c0_i32_1 = arith.constant 0 : i32
    return %c0_i32, %c0_i32_0 : i32, i32
  }
  func.func @transform_7(%arg0: i32) -> (i32, i32) {
    %c0_i32 = arith.constant 0 : i32
    %c0_i32_0 = arith.constant 0 : i32
    %c0_i32_1 = arith.constant 0 : i32
    return %c0_i32, %c0_i32_0 : i32, i32
  }
  func.func @transform_8(%arg0: i32) -> (i32, i32, i32) {
    %c0_i32 = arith.constant 0 : i32
    %c0_i32_0 = arith.constant 0 : i32
    %c0_i32_1 = arith.constant 0 : i32
    %c0_i32_2 = arith.constant 0 : i32
    return %c0_i32, %c0_i32_0, %c0_i32_1 : i32, i32, i32
  }
  func.func @transform_9(%arg0: i32) -> (i32, i32) {
    %c0_i32 = arith.constant 0 : i32
    %c0_i32_0 = arith.constant 0 : i32
    %c0_i32_1 = arith.constant 0 : i32
    return %c0_i32, %c0_i32_0 : i32, i32
  }
  func.func @transform_10(%arg0: i32) -> (i32, i32, i32) {
    %c0_i32 = arith.constant 0 : i32
    %c0_i32_0 = arith.constant 0 : i32
    %c0_i32_1 = arith.constant 0 : i32
    return %arg0, %c0_i32, %c0_i32_0 : i32, i32, i32
  }
}

</mosaic_0001>

<bundles_post_ra>
// kernel: eegnet_forward.1
= control target key start
LH: loop header
LB: loop body
LE: loop exit
PB: predicated region body
PF: predicated region fallthrough
CT: control target
= control target key end

     0   :  { %s4929_s0 = inlined_call_operand.vmem [shape: f32[2,102,750], index: 0, kind: input, shape index: {}]   ;;  %s4930_s1 = inlined_call_operand.vmem [shape: f32[32,102], index: 1, kind: input, shape index: {}]   ;;  %s4931_s2 = inlined_call_operand.vmem [shape: f32[32,1], index: 2, kind: input, shape index: {}]   ;;  %s4932_s3 = inlined_call_operand.vmem [shape: f32[750,201], index: 3, kind: input, shape index: {}]   ;;  %s4933_s4 = inlined_call_operand.vmem [shape: f32[32,480], index: 4, kind: input, shape index: {}]   ;;  %s4934_s5 = inlined_call_operand.vmem [shape: f32[32,1], index: 5, kind: input, shape index: {}]   ;;  %s4935_s6 = inlined_call_operand.vmem [shape: f32[32,1], index: 6, kind: input, shape index: {}]   ;;  %s4936_s7 = inlined_call_operand.vmem [shape: f32[187,23], index: 7, kind: input, shape index: {}]   ;;  %s4937_s8 = inlined_call_operand.vmem [shape: f32[2,32,23], index: 8, kind: input, shape index: {}]   ;;  %s4938_s9 = inlined_call_operand.vmem [shape: f32[1,2], index: 9, kind: input, shape index: {}]   ;;  %s4939_s10 = inlined_call_operand.hbm [shape: f32[2,1,2], index: 10, kind: output, shape index: {}]  }
   0x1   :  { %4966 = sst [smem:[#allocation8_spill]] %s4929_s0 }
   0x2   :  { %4967 = sst [smem:[#allocation9_spill]] %s4930_s1 }
   0x3   :  { %15 = vsyncpa [#allocation4], 0 }
   0x4   :  { %17 = vsyncpa [#allocation4 + $0x1], 0  ;;  %s2978_s13 = smov 0   ;;  %s2980_s14 = smov 0  }
   0x5   :  { %s2982_s15 = smov 0   ;;  %s2984_s16 = smov 0  }
   0x6 LB: > { %s2999_s17 = sadd.s32 4294967295, %s2906_s16   ;;  %s2622_s18 = sadd.s32 4294967294, %s2906_s16   ;;  %s2906_s16 = sphi %s2984_s16, %s4992_s16   ;;  %s2902_s15 = sphi %s2982_s15, %s4991_s15   ;;  %s2898_s14 = sphi %s2980_s14, %s4990_s14   ;;  %s2894_s13 = sphi %s2978_s13, %s4989_s13  }
   0x7   : > { %s3003_s19 = sadd.s32 1, %s2906_s16   ;;  %s245_s20 = sadd.s32 1, %s2902_s15 }
   0x8   : > { %s242_s21 = ssub.s32 %s2906_s16, %s3003_s19  ;;  %p255_p0 = scmp.ne.s32.totalorder %s2902_s15, %s2898_s14 }
   0x9   : > { %p243_p1 = scmp.eq.s32.totalorder %s242_s21, 0  ;;  %p256_p2 = scmp.eq.s32.totalorder %s2999_s17, 1 }
   0xa   : > { %p261_p3 = scmp.ne.s32.totalorder %s2898_s14, %s2894_s13  ;;  %p262_p4 = scmp.eq.s32.totalorder %s2622_s18, 1 }
   0xb   : > { %s3014_s22 = scalar_select %p243_p1, %s2902_s15, %s245_s20  }
   0xc   : > { %p3016_p5 = por %p256_p2, %p255_p0  ;;  %p3020_p6 = por %p262_p4, %p261_p3 }
   0xd   : > { %p2625_p7 = scmp.ge.s32.totalorder %s2906_s16, 1  ;;  %p315_p8 = scmp.lt.s32.totalorder %s2906_s16, 3 }
   0xf   : > { %p316_p9 = pnand %p2625_p7, %p315_p8 }
  0x11   : > { %319 = sbr.rel (%p316_p9) target bundleno = 1307 (0x51b), region = 60 }
  0x16   : > { %p352_p10 = scmp.lt.s32.totalorder %s2999_s17, 1  ;;  %v439_v0 = vld [vmem:[%s4931_s2] sm:$0xff]  ;;  %v2908_v1 = vmov 0   ;;  %vm476_vm0 = vcmask 1045504   ;;  %s4970_s0 = sld [smem:[#allocation8_spill]]  ;;  %vm463_vm1 = vcmask 834560  }
  0x17   : > { %2777 = vset.pattern.permute.xlu0 %v2908_v1  ;;  %2778 = vset.pattern.permute.xlu1 %v2908_v1  ;;  %s4971_s1 = sld [smem:[#allocation9_spill]]  ;;  %v440_v57 = vld [vmem:[%s4931_s2 + $0x8] sm:$0xff]  ;;  %v441_v58 = vld [vmem:[%s4931_s2 + $0x10] sm:$0xff]  ;;  %s2909_s27 = smov 126  }
  0x18   : > { %s353_s25 = scalar_select %p352_p10, %s2999_s17, 1  ;;  %445 = vperm.xlu0 %2777, %v439_v0   ;;  %2779 = vset.pattern.permute.xlu2 %v2908_v1 }
  0x19   : > { %455 = vperm.xlu1 %2778, %v441_v58   ;;  %v855_v58 = vld [vmem:[%s4932_s3 + $0x150] sm:$0xff]  ;;  %s4950_s29 = smov 125   ;;  %s4942_s30 = smov 123  }
  0x1a   : > { %s2718_s28 = smul.u32 624, %s353_s25  ;;  %s4962_s12 = smov 117  }
  0x1b   : > { %s4964_s18 = smov 122   ;;  %s4956_s20 = smov 124  }
  0x1c   : > { %s3034_s11 = scalar_lea.vmem %s4970_s0, %s2718_s28  ;;  %s4940_s28 = smov 121  }
  0x1d   : > { %v433_v2 = vld [vmem:[%s3034_s11 + $0x240] sm:$0x3f]  ;;  %v434_v3 = vld [vmem:[%s3034_s11 + $0x248] sm:$0x3f]  ;;  %v435_v4 = vld [vmem:[%s3034_s11 + $0x250] sm:$0x3f] }
  0x1e   : > { %2627 = vmatpush.msk.msra.mxu0 %vm476_vm0, %v433_v2  ;;  %2632 = vmatpush.msk.msra.mxu1 %vm476_vm0, %v434_v3  ;;  %v436_v5 = vld [vmem:[%s3034_s11 + $0x258] sm:$0x3f]  ;;  %v427_v6 = vld [vmem:[%s3034_s11 + $0x210] sm:$0xff]  ;;  %v429_v8 = vld [vmem:[%s3034_s11 + $0x220] sm:$0xff]  ;;  %s4946_s21 = smov 127   ;;  %s4952_s25 = smov 118  }
  0x1f   : > { %v428_v7 = vld [vmem:[%s3034_s11 + $0x218] sm:$0xff]  ;;  %2637 = vmatpush.msk.msra.mxu2 %vm476_vm0, %v435_v4  ;;  %2642 = vmatpush.msk.msra.mxu3 %vm476_vm0, %v436_v5  ;;  %v430_v9 = vld [vmem:[%s3034_s11 + $0x228] sm:$0xff]  ;;  %v421_v10 = vld [vmem:[%s3034_s11 + $0x1e0] sm:$0xff]  ;;  %s4954_s26 = smov 114   ;;  %s4982_s0 = smov 122  }
  0x20   : > { %499 = vmatpush.msra.mxu0 %v427_v6  ;;  %528 = vmatpush.msra.mxu1 %v428_v7  ;;  %v422_v11 = vld [vmem:[%s3034_s11 + $0x1e8] sm:$0xff]  ;;  %v423_v12 = vld [vmem:[%s3034_s11 + $0x1f0] sm:$0xff]  ;;  %v424_v13 = vld [vmem:[%s3034_s11 + $0x1f8] sm:$0xff] }
  0x21   : > { %557 = vmatpush.msra.mxu2 %v429_v8  ;;  %586 = vmatpush.msra.mxu3 %v430_v9  ;;  %v415_v14 = vld [vmem:[%s3034_s11 + $0x1b0] sm:$0xff]  ;;  %v416_v15 = vld [vmem:[%s3034_s11 + $0x1b8] sm:$0xff]  ;;  %v417_v16 = vld [vmem:[%s3034_s11 + $0x1c0] sm:$0xff] }
  0x22   : > { %500 = vmatpush.msra.mxu0 %v421_v10  ;;  %529 = vmatpush.msra.mxu1 %v422_v11  ;;  %v418_v17 = vld [vmem:[%s3034_s11 + $0x1c8] sm:$0xff]  ;;  %v409_v18 = vld [vmem:[%s3034_s11 + $0x180] sm:$0xff]  ;;  %v411_v20 = vld [vmem:[%s3034_s11 + $0x190] sm:$0xff] }
  0x23   : > { %558 = vmatpush.msra.mxu2 %v423_v12  ;;  %587 = vmatpush.msra.mxu3 %v424_v13  ;;  %v410_v19 = vld [vmem:[%s3034_s11 + $0x188] sm:$0xff]  ;;  %v412_v21 = vld [vmem:[%s3034_s11 + $0x198] sm:$0xff]  ;;  %v403_v22 = vld [vmem:[%s3034_s11 + $0x150] sm:$0xff] }
  0x24   : > { %501 = vmatpush.msra.mxu0 %v415_v14  ;;  %530 = vmatpush.msra.mxu1 %v416_v15  ;;  %v404_v23 = vld [vmem:[%s3034_s11 + $0x158] sm:$0xff]  ;;  %v405_v24 = vld [vmem:[%s3034_s11 + $0x160] sm:$0xff]  ;;  %v406_v25 = vld [vmem:[%s3034_s11 + $0x168] sm:$0xff] }
  0x25   : > { %559 = vmatpush.msra.mxu2 %v417_v16  ;;  %588 = vmatpush.msra.mxu3 %v418_v17  ;;  %v397_v26 = vld [vmem:[%s3034_s11 + $0x120] sm:$0xff]  ;;  %v398_v27 = vld [vmem:[%s3034_s11 + $0x128] sm:$0xff]  ;;  %v399_v28 = vld [vmem:[%s3034_s11 + $0x130] sm:$0xff] }
  0x26   : > { %502 = vmatpush.msra.mxu0 %v409_v18  ;;  %531 = vmatpush.msra.mxu1 %v410_v19  ;;  %v400_v29 = vld [vmem:[%s3034_s11 + $0x138] sm:$0xff]  ;;  %v391_v30 = vld [vmem:[%s3034_s11 + $0xf0] sm:$0xff]  ;;  %v393_v32 = vld [vmem:[%s3034_s11 + $0x100] sm:$0xff] }
  0x27   : > { %560 = vmatpush.msra.mxu2 %v411_v20  ;;  %589 = vmatpush.msra.mxu3 %v412_v21  ;;  %v392_v31 = vld [vmem:[%s3034_s11 + $0xf8] sm:$0xff]  ;;  %v394_v33 = vld [vmem:[%s3034_s11 + $0x108] sm:$0xff]  ;;  %v385_v34 = vld [vmem:[%s3034_s11 + $0xc0] sm:$0xff] }
  0x28   : > { %503 = vmatpush.msra.mxu0 %v403_v22  ;;  %532 = vmatpush.msra.mxu1 %v404_v23  ;;  %v386_v35 = vld [vmem:[%s3034_s11 + $0xc8] sm:$0xff]  ;;  %v387_v36 = vld [vmem:[%s3034_s11 + $0xd0] sm:$0xff]  ;;  %v388_v37 = vld [vmem:[%s3034_s11 + $0xd8] sm:$0xff] }
  0x29   : > { %561 = vmatpush.msra.mxu2 %v405_v24  ;;  %590 = vmatpush.msra.mxu3 %v406_v25  ;;  %v379_v38 = vld [vmem:[%s3034_s11 + $0x90] sm:$0xff]  ;;  %v380_v39 = vld [vmem:[%s3034_s11 + $0x98] sm:$0xff]  ;;  %v381_v40 = vld [vmem:[%s3034_s11 + $0xa0] sm:$0xff] }
  0x2a   : > { %504 = vmatpush.msra.mxu0 %v397_v26  ;;  %533 = vmatpush.msra.mxu1 %v398_v27  ;;  %v382_v41 = vld [vmem:[%s3034_s11 + $0xa8] sm:$0xff]  ;;  %v373_v42 = vld [vmem:[%s3034_s11 + $0x60] sm:$0xff]  ;;  %v375_v44 = vld [vmem:[%s3034_s11 + $0x70] sm:$0xff] }
  0x2b   : > { %562 = vmatpush.msra.mxu2 %v399_v28  ;;  %591 = vmatpush.msra.mxu3 %v400_v29  ;;  %v374_v43 = vld [vmem:[%s3034_s11 + $0x68] sm:$0xff]  ;;  %v376_v45 = vld [vmem:[%s3034_s11 + $0x78] sm:$0xff]  ;;  %v367_v46 = vld [vmem:[%s3034_s11 + $0x30] sm:$0xff] }
  0x2c   : > { %505 = vmatpush.msra.mxu0 %v391_v30  ;;  %534 = vmatpush.msra.mxu1 %v392_v31  ;;  %v368_v47 = vld [vmem:[%s3034_s11 + $0x38] sm:$0xff]  ;;  %v369_v48 = vld [vmem:[%s3034_s11 + $0x40] sm:$0xff]  ;;  %v370_v49 = vld [vmem:[%s3034_s11 + $0x48] sm:$0xff] }
  0x2d   : > { %563 = vmatpush.msra.mxu2 %v393_v32  ;;  %592 = vmatpush.msra.mxu3 %v394_v33  ;;  %v361_v50 = vld [vmem:[%s3034_s11] sm:$0xff]  ;;  %v362_v51 = vld [vmem:[%s3034_s11 + $0x8] sm:$0xff]  ;;  %v363_v52 = vld [vmem:[%s3034_s11 + $0x10] sm:$0xff] }
  0x2e   : > { %506 = vmatpush.msra.mxu0 %v385_v34  ;;  %535 = vmatpush.msra.mxu1 %v386_v35  ;;  %v364_v53 = vld [vmem:[%s3034_s11 + $0x18] sm:$0xff]  ;;  %v3095_v54 = vld [vmem:[%s4971_s1] sm:$0xff]  ;;  %v438_v56 = vld [vmem:[%s3034_s11 + $0x268] sm:$0x3f] }
  0x2f   : > { %564 = vmatpush.msra.mxu2 %v387_v36  ;;  %593 = vmatpush.msra.mxu3 %v388_v37  ;;  %v437_v55 = vld [vmem:[%s3034_s11 + $0x260] sm:$0x3f]  ;;  %v431_v59 = vld [vmem:[%s3034_s11 + $0x230] sm:$0xff]  ;;  %v432_v60 = vld [vmem:[%s3034_s11 + $0x238] sm:$0xff] }
  0x30   : > { %507 = vmatpush.msra.mxu0 %v379_v38  ;;  %536 = vmatpush.msra.mxu1 %v380_v39  ;;  %v425_v61 = vld [vmem:[%s3034_s11 + $0x200] sm:$0xff]  ;;  %v426_v62 = vld [vmem:[%s3034_s11 + $0x208] sm:$0xff]  ;;  %v419_v0 = vld [vmem:[%s3034_s11 + $0x1d0] sm:$0xff] }
  0x31   : > { %565 = vmatpush.msra.mxu2 %v381_v40  ;;  %594 = vmatpush.msra.mxu3 %v382_v41  ;;  %v3122_v63 = vld [vmem:[%s4971_s1 + $0x8] sm:$0xff]  ;;  %v420_v1 = vld [vmem:[%s3034_s11 + $0x1d8] sm:$0xff]  ;;  %v413_v3 = vld [vmem:[%s3034_s11 + $0x1a0] sm:$0xff] }
  0x32   : > { %508 = vmatpush.msra.mxu0 %v373_v42  ;;  %537 = vmatpush.msra.mxu1 %v374_v43  ;;  %v442_v2 = vld [vmem:[%s4931_s2 + $0x18] sm:$0xff]  ;;  %v414_v4 = vld [vmem:[%s3034_s11 + $0x1a8] sm:$0xff]  ;;  %v407_v5 = vld [vmem:[%s3034_s11 + $0x170] sm:$0xff] }
  0x33   : > { %566 = vmatpush.msra.mxu2 %v375_v44  ;;  %595 = vmatpush.msra.mxu3 %v376_v45  ;;  %v408_v6 = vld [vmem:[%s3034_s11 + $0x178] sm:$0xff]  ;;  %v359_v7 = vld [vmem:[%s4971_s1 + $0x10] sm:$0xff]  ;;  %v401_v8 = vld [vmem:[%s3034_s11 + $0x140] sm:$0xff] }
  0x34   : > { %509 = vmatpush.msra.mxu0 %v367_v46  ;;  %538 = vmatpush.msra.mxu1 %v368_v47  ;;  %v402_v9 = vld [vmem:[%s3034_s11 + $0x148] sm:$0xff]  ;;  %v395_v10 = vld [vmem:[%s3034_s11 + $0x110] sm:$0xff]  ;;  %v396_v11 = vld [vmem:[%s3034_s11 + $0x118] sm:$0xff] }
  0x35   : > { %567 = vmatpush.msra.mxu2 %v369_v48  ;;  %596 = vmatpush.msra.mxu3 %v370_v49  ;;  %v389_v12 = vld [vmem:[%s3034_s11 + $0xe0] sm:$0xff]  ;;  %v390_v13 = vld [vmem:[%s3034_s11 + $0xe8] sm:$0xff]  ;;  %v360_v14 = vld [vmem:[%s4971_s1 + $0x18] sm:$0xff]  ;;  %s4983_s1 = smov 120  }
  0x36   : > { %510 = vmatpush.msra.mxu0 %v361_v50  ;;  %539 = vmatpush.msra.mxu1 %v362_v51  ;;  %v383_v15 = vld [vmem:[%s3034_s11 + $0xb0] sm:$0xff]  ;;  %v384_v16 = vld [vmem:[%s3034_s11 + $0xb8] sm:$0xff]  ;;  %v377_v17 = vld [vmem:[%s3034_s11 + $0x80] sm:$0xff] }
  0x37   : > { %568 = vmatpush.msra.mxu2 %v363_v52  ;;  %597 = vmatpush.msra.mxu3 %v364_v53  ;;  %v378_v18 = vld [vmem:[%s3034_s11 + $0x88] sm:$0xff]  ;;  %v843_v19 = vld [vmem:[%s4932_s3 + $0xf0] sm:$0xff]  ;;  %v841_v21 = vld [vmem:[%s4932_s3 + $0xe0] sm:$0xff] }
  0x38   : > { %2628 = vmatmul.msk.f32.vlgmr.msra.gmra.mxu0 %vm463_vm1, %v3095_v54  ;;  %2633 = vmatmul.msk.f32.vlgmr.msra.gmra.mxu1 %vm463_vm1, %v3095_v54  ;;  %v875_v20 = vld [vmem:[%s4932_s3 + $0x1f0] sm:$0xff]  ;;  %v873_v22 = vld [vmem:[%s4932_s3 + $0x1e0] sm:$0xff]  ;;  %v372_v24 = vld [vmem:[%s3034_s11 + $0x58] sm:$0xff] }
  0x39   : > { %2638 = vmatmul.msk.f32.vlgmr.msra.gmra.mxu2 %vm463_vm1, %v3095_v54  ;;  %2643 = vmatmul.msk.f32.vlgmr.msra.gmra.mxu3 %vm463_vm1, %v3095_v54  ;;  %v371_v23 = vld [vmem:[%s3034_s11 + $0x50] sm:$0xff]  ;;  %v365_v27 = vld [vmem:[%s3034_s11 + $0x20] sm:$0xff]  ;;  %v366_v28 = vld [vmem:[%s3034_s11 + $0x28] sm:$0xff]  ;;  %s4944_s11 = smov 119  }
  0x3a   : > { %2647 = vmatpush.msk.msrb.mxu0 %vm476_vm0, %v437_v55  ;;  %2652 = vmatpush.msk.msrb.mxu1 %vm476_vm0, %v438_v56  ;;  %v839_v25 = vld [vmem:[%s4932_s3 + $0xd0] sm:$0xff]  ;;  %v837_v29 = vld [vmem:[%s4932_s3 + $0xc0] sm:$0xff] }
  0x3b   : > { %450 = vperm.xlu0 %2777, %v440_v57   ;;  %460 = vperm.xlu1 %2778, %v442_v2   ;;  %v871_v26 = vld [vmem:[%s4932_s3 + $0x1d0] sm:$0xff]  ;;  %v869_v30 = vld [vmem:[%s4932_s3 + $0x1c0] sm:$0xff] }
  0x3c   : > { %615 = vmatpush.msrb.mxu0 %v431_v59  ;;  %644 = vmatpush.msrb.mxu1 %v432_v60  ;;  %v907_v31 = vld [vmem:[%s4932_s3 + $0x2f0] sm:$0xff]  ;;  %v905_v35 = vld [vmem:[%s4932_s3 + $0x2e0] sm:$0xff] }
  0x3d   : > { %1020 = vmatpush.msrb.mxu2 %v843_v19  ;;  %1049 = vmatpush.msrb.mxu3 %v875_v20  ;;  %v939_v32 = vld [vmem:[%s4932_s3 + $0x3f0] sm:$0xff]  ;;  %v937_v36 = vld [vmem:[%s4932_s3 + $0x3e0] sm:$0xff] }
  0x3e   : > { %616 = vmatpush.msrb.mxu0 %v425_v61  ;;  %645 = vmatpush.msrb.mxu1 %v426_v62  ;;  %v835_v33 = vld [vmem:[%s4932_s3 + $0xb0] sm:$0xff]  ;;  %v833_v37 = vld [vmem:[%s4932_s3 + $0xa0] sm:$0xff] }
  0x3f   : > { %1021 = vmatpush.msrb.mxu2 %v841_v21  ;;  %1050 = vmatpush.msrb.mxu3 %v873_v22  ;;  %v867_v34 = vld [vmem:[%s4932_s3 + $0x1b0] sm:$0xff]  ;;  %v865_v38 = vld [vmem:[%s4932_s3 + $0x1a0] sm:$0xff] }
  0x40   : > { %2629 = vmatmul.msk.f32.gmra.mxu0 %vm463_vm1, %v3122_v63  ;;  %2634 = vmatmul.msk.f32.gmra.mxu1 %vm463_vm1, %v3122_v63  ;;  %v903_v39 = vld [vmem:[%s4932_s3 + $0x2d0] sm:$0xff]  ;;  %v901_v43 = vld [vmem:[%s4932_s3 + $0x2c0] sm:$0xff] }
  0x41   : > { %2639 = vmatmul.msk.f32.gmra.mxu2 %vm463_vm1, %v3122_v63  ;;  %2644 = vmatmul.msk.f32.gmra.mxu3 %vm463_vm1, %v3122_v63  ;;  %v935_v40 = vld [vmem:[%s4932_s3 + $0x3d0] sm:$0xff]  ;;  %v933_v44 = vld [vmem:[%s4932_s3 + $0x3c0] sm:$0xff] }
  0x42   : > { %617 = vmatpush.msrb.mxu0 %v419_v0  ;;  %646 = vmatpush.msrb.mxu1 %v420_v1  ;;  %v831_v41 = vld [vmem:[%s4932_s3 + $0x90] sm:$0xff]  ;;  %v829_v45 = vld [vmem:[%s4932_s3 + $0x80] sm:$0xff] }
  0x43   : > { %1022 = vmatpush.msrb.mxu2 %v839_v25  ;;  %1051 = vmatpush.msrb.mxu3 %v871_v26  ;;  %v863_v42 = vld [vmem:[%s4932_s3 + $0x190] sm:$0xff]  ;;  %v861_v46 = vld [vmem:[%s4932_s3 + $0x180] sm:$0xff] }
  0x44   : > { %618 = vmatpush.msrb.mxu0 %v413_v3  ;;  %647 = vmatpush.msrb.mxu1 %v414_v4  ;;  %v899_v47 = vld [vmem:[%s4932_s3 + $0x2b0] sm:$0xff]  ;;  %v897_v51 = vld [vmem:[%s4932_s3 + $0x2a0] sm:$0xff] }
  0x45   : > { %1023 = vmatpush.msrb.mxu2 %v837_v29  ;;  %1052 = vmatpush.msrb.mxu3 %v869_v30  ;;  %v931_v48 = vld [vmem:[%s4932_s3 + $0x3b0] sm:$0xff]  ;;  %v929_v52 = vld [vmem:[%s4932_s3 + $0x3a0] sm:$0xff]  ;;  %v844_v29 = vld [vmem:[%s4932_s3 + $0xf8] sm:$0xff] }
  0x46   : > { %619 = vmatpush.msrb.mxu0 %v407_v5  ;;  %648 = vmatpush.msrb.mxu1 %v408_v6  ;;  %v827_v49 = vld [vmem:[%s4932_s3 + $0x70] sm:$0xff]  ;;  %v825_v53 = vld [vmem:[%s4932_s3 + $0x60] sm:$0xff]  ;;  %v876_v30 = vld [vmem:[%s4932_s3 + $0x1f8] sm:$0xff] }
  0x47   : > { %1024 = vmatpush.msrb.mxu2 %v835_v33  ;;  %1053 = vmatpush.msrb.mxu3 %v867_v34  ;;  %v859_v50 = vld [vmem:[%s4932_s3 + $0x170] sm:$0xff]  ;;  %v893_v59 = vld [vmem:[%s4932_s3 + $0x280] sm:$0xff]  ;;  %v842_v33 = vld [vmem:[%s4932_s3 + $0xe8] sm:$0xff] }
  0x48   : > { %2630 = vmatmul.msk.f32.gmra.mxu0 %vm463_vm1, %v359_v7  ;;  %2635 = vmatmul.msk.f32.gmra.mxu1 %vm463_vm1, %v359_v7  ;;  %v895_v55 = vld [vmem:[%s4932_s3 + $0x290] sm:$0xff]  ;;  %v925_v60 = vld [vmem:[%s4932_s3 + $0x380] sm:$0xff] }
  0x49   : > { %2640 = vmatmul.msk.f32.gmra.mxu2 %vm463_vm1, %v359_v7  ;;  %2645 = vmatmul.msk.f32.gmra.mxu3 %vm463_vm1, %v359_v7  ;;  %v927_v56 = vld [vmem:[%s4932_s3 + $0x390] sm:$0xff]  ;;  %v821_v61 = vld [vmem:[%s4932_s3 + $0x40] sm:$0xff] }
  0x4a   : > { %620 = vmatpush.msrb.mxu0 %v401_v8  ;;  %649 = vmatpush.msrb.mxu1 %v402_v9  ;;  %v823_v57 = vld [vmem:[%s4932_s3 + $0x50] sm:$0xff]  ;;  %v853_v62 = vld [vmem:[%s4932_s3 + $0x140] sm:$0xff] }
  0x4b   : > { %1025 = vmatpush.msrb.mxu2 %v833_v37  ;;  %1054 = vmatpush.msrb.mxu3 %v865_v38  ;;  %v923_v0 = vld [vmem:[%s4932_s3 + $0x370] sm:$0xff]  ;;  %v889_v3 = vld [vmem:[%s4932_s3 + $0x260] sm:$0xff]  ;;  %v840_v38 = vld [vmem:[%s4932_s3 + $0xd8] sm:$0xff] }
  0x4c   : > { %621 = vmatpush.msrb.mxu0 %v395_v10  ;;  %650 = vmatpush.msrb.mxu1 %v396_v11  ;;  %v819_v1 = vld [vmem:[%s4932_s3 + $0x30] sm:$0xff]  ;;  %v921_v4 = vld [vmem:[%s4932_s3 + $0x360] sm:$0xff] }
  0x4d   : > { %1026 = vmatpush.msrb.mxu2 %v831_v41  ;;  %1055 = vmatpush.msrb.mxu3 %v863_v42  ;;  %v851_v2 = vld [vmem:[%s4932_s3 + $0x130] sm:$0xff]  ;;  %v817_v5 = vld [vmem:[%s4932_s3 + $0x20] sm:$0xff]  ;;  %v838_v42 = vld [vmem:[%s4932_s3 + $0xc8] sm:$0xff] }
  0x4e   : > { %622 = vmatpush.msrb.mxu0 %v389_v12  ;;  %651 = vmatpush.msrb.mxu1 %v390_v13  ;;  %v849_v6 = vld [vmem:[%s4932_s3 + $0x120] sm:$0xff]  ;;  %v919_v8 = vld [vmem:[%s4932_s3 + $0x350] sm:$0xff] }
  0x4f   : > { %1027 = vmatpush.msrb.mxu2 %v829_v45  ;;  %1056 = vmatpush.msrb.mxu3 %v861_v46  ;;  %v815_v9 = vld [vmem:[%s4932_s3 + $0x10] sm:$0xff]  ;;  %v885_v11 = vld [vmem:[%s4932_s3 + $0x240] sm:$0xff]  ;;  %v870_v45 = vld [vmem:[%s4932_s3 + $0x1c8] sm:$0xff] }
  0x50   : > { %2631 = vmatmul.msk.f32.gmra.mxu0 %vm463_vm1, %v360_v14  ;;  %2636 = vmatmul.msk.f32.gmra.mxu1 %vm463_vm1, %v360_v14  ;;  %v847_v10 = vld [vmem:[%s4932_s3 + $0x110] sm:$0xff]  ;;  %v917_v12 = vld [vmem:[%s4932_s3 + $0x340] sm:$0xff] }
  0x51   : > { %2641 = vmatmul.msk.f32.gmra.mxu2 %vm463_vm1, %v360_v14  ;;  %2646 = vmatmul.msk.f32.gmra.mxu3 %vm463_vm1, %v360_v14  ;;  %v813_v13 = vld [vmem:[%s4932_s3] sm:$0xff]  ;;  %v971_v19 = vld [vmem:[%s4932_s3 + $0x4f0] sm:$0xff] }
  0x52   : > { %623 = vmatpush.msrb.mxu0 %v383_v15  ;;  %652 = vmatpush.msrb.mxu1 %v384_v16  ;;  %v883_v15 = vld [vmem:[%s4932_s3 + $0x230] sm:$0xff]  ;;  %v969_v22 = vld [vmem:[%s4932_s3 + $0x4e0] sm:$0xff] }
  0x53   : > { %1028 = vmatpush.msrb.mxu2 %v827_v49  ;;  %1057 = vmatpush.msrb.mxu3 %v859_v50  ;;  %v915_v16 = vld [vmem:[%s4932_s3 + $0x330] sm:$0xff]  ;;  %v993_v37 = vld [vmem:[%s4932_s3 + $0x5a0] sm:$0xff]  ;;  %v836_v50 = vld [vmem:[%s4932_s3 + $0xb8] sm:$0xff] }
  0x54   : > { %624 = vmatpush.msrb.mxu0 %v377_v17  ;;  %653 = vmatpush.msrb.mxu1 %v378_v18  ;;  %v881_v17 = vld [vmem:[%s4932_s3 + $0x220] sm:$0xff]  ;;  %v879_v20 = vld [vmem:[%s4932_s3 + $0x210] sm:$0xff] }
  0x55   : > { %1029 = vmatpush.msrb.mxu2 %v825_v53  ;;  %v913_v18 = vld [vmem:[%s4932_s3 + $0x320] sm:$0xff]  ;;  %v911_v21 = vld [vmem:[%s4932_s3 + $0x310] sm:$0xff] }
  0x56   : > { %625 = vmatpush.msrb.mxu0 %v371_v23  ;;  %654 = vmatpush.msrb.mxu1 %v372_v24  ;;  %v877_v23 = vld [vmem:[%s4932_s3 + $0x200] sm:$0xff]  ;;  %v967_v25 = vld [vmem:[%s4932_s3 + $0x4d0] sm:$0xff] }
  0x57   : > { %1030 = vmatpush.msrb.mxu2 %v823_v57  ;;  %v909_v24 = vld [vmem:[%s4932_s3 + $0x300] sm:$0xff]  ;;  %v999_v26 = vld [vmem:[%s4932_s3 + $0x5d0] sm:$0x3f] }
  0x58   : > { %626 = vmatpush.msrb.mxu0 %v365_v27  ;;  %655 = vmatpush.msrb.mxu1 %v366_v28  ;;  %v965_v27 = vld [vmem:[%s4932_s3 + $0x4c0] sm:$0xff]  ;;  %v991_v41 = vld [vmem:[%s4932_s3 + $0x590] sm:$0xff] }
  0x59   : > { %2648 = vmatmul.msk.f32.vlgmr.msrb.gmra.mxu0 %vm463_vm1, %v3095_v54  ;;  %2653 = vmatmul.msk.f32.vlgmr.msrb.gmra.mxu1 %vm463_vm1, %v3095_v54  ;;  %v857_v54 = vld [vmem:[%s4932_s3 + $0x160] sm:$0xff] }
  0x5a   : > { %1078 = vmatpush.msra.mxu0 %v907_v31  ;;  %1107 = vmatpush.msra.mxu1 %v939_v32  ;;  %v997_v28 = vld [vmem:[%s4932_s3 + $0x5c0] sm:$0xff]  ;;  %v963_v31 = vld [vmem:[%s4932_s3 + $0x4b0] sm:$0xff] }
  0x5b   : > { %1058 = vmatpush.msrb.mxu3 %v857_v54  ;;  %1031 = vmatpush.msrb.mxu2 %v821_v61  ;;  %v995_v32 = vld [vmem:[%s4932_s3 + $0x5b0] sm:$0xff]  ;;  %v989_v49 = vld [vmem:[%s4932_s3 + $0x580] sm:$0xff] }
  0x5c   : > { %1079 = vmatpush.msra.mxu0 %v905_v35  ;;  %1108 = vmatpush.msra.mxu1 %v937_v36  ;;  %v874_v35 = vld [vmem:[%s4932_s3 + $0x1e8] sm:$0xff]  ;;  %v961_v36 = vld [vmem:[%s4932_s3 + $0x4a0] sm:$0xff]  ;;  %v955_v54 = vld [vmem:[%s4932_s3 + $0x470] sm:$0xff] }
  0x5d   : > { %1059 = vmatpush.msrb.mxu3 %v855_v58  ;;  %1032 = vmatpush.msrb.mxu2 %v819_v1  ;;  %v953_v61 = vld [vmem:[%s4932_s3 + $0x460] sm:$0xff] }
  0x5e   : > { %1080 = vmatpush.msra.mxu0 %v903_v39  ;;  %1109 = vmatpush.msra.mxu1 %v935_v40  ;;  %v872_v39 = vld [vmem:[%s4932_s3 + $0x1d8] sm:$0xff]  ;;  %v959_v40 = vld [vmem:[%s4932_s3 + $0x490] sm:$0xff] }
  0x5f   : > { %1060 = vmatpush.msrb.mxu3 %v853_v62  ;;  %1033 = vmatpush.msrb.mxu2 %v817_v5  ;;  %v985_v62 = vld [vmem:[%s4932_s3 + $0x560] sm:$0xff] }
  0x60   : > { %1081 = vmatpush.msra.mxu0 %v901_v43  ;;  %1110 = vmatpush.msra.mxu1 %v933_v44 }
  0x61   : > { %2649 = vmatmul.msk.f32.gmra.mxu0 %vm463_vm1, %v3122_v63  ;;  %2654 = vmatmul.msk.f32.gmra.mxu1 %vm463_vm1, %v3122_v63  ;;  %v891_v63 = vld [vmem:[%s4932_s3 + $0x270] sm:$0xff] }
  0x62   : > { %1082 = vmatpush.msra.mxu0 %v899_v47  ;;  %1111 = vmatpush.msra.mxu1 %v931_v48  ;;  %v957_v48 = vld [vmem:[%s4932_s3 + $0x480] sm:$0xff] }
  0x63   : > { %1061 = vmatpush.msrb.mxu3 %v851_v2  ;;  %1034 = vmatpush.msrb.mxu2 %v815_v9  ;;  %v864_v2 = vld [vmem:[%s4932_s3 + $0x198] sm:$0xff]  ;;  %v830_v9 = vld [vmem:[%s4932_s3 + $0x88] sm:$0xff] }
  0x64   : > { %1083 = vmatpush.msra.mxu0 %v897_v51  ;;  %1112 = vmatpush.msra.mxu1 %v929_v52  ;;  %v868_v51 = vld [vmem:[%s4932_s3 + $0x1b8] sm:$0xff] }
  0x65   : > { %1062 = vmatpush.msrb.mxu3 %v849_v6  ;;  %1035 = vmatpush.msrb.mxu2 %v813_v13 }
  0x66   : > { %1084 = vmatpush.msra.mxu0 %v895_v55  ;;  %1113 = vmatpush.msra.mxu1 %v927_v56  ;;  %v987_v55 = vld [vmem:[%s4932_s3 + $0x570] sm:$0xff]  ;;  %v834_v56 = vld [vmem:[%s4932_s3 + $0xa8] sm:$0xff] }
  0x67   : > { %1063 = vmatpush.msrb.mxu3 %v847_v10  ;;  %1136 = vmatpush.msra.mxu2 %v971_v19  ;;  %v828_v19 = vld [vmem:[%s4932_s3 + $0x78] sm:$0xff] }
  0x68   : > { %1085 = vmatpush.msra.mxu0 %v893_v59  ;;  %1114 = vmatpush.msra.mxu1 %v925_v60  ;;  %v866_v59 = vld [vmem:[%s4932_s3 + $0x1a8] sm:$0xff] }
  0x69   : > { %2650 = vmatmul.msk.f32.gmra.mxu0 %vm463_vm1, %v359_v7  ;;  %2655 = vmatmul.msk.f32.gmra.mxu1 %vm463_vm1, %v359_v7  ;;  %v887_v7 = vld [vmem:[%s4932_s3 + $0x250] sm:$0xff] }
  0x6a   : > { %1086 = vmatpush.msra.mxu0 %v891_v63  ;;  %1115 = vmatpush.msra.mxu1 %v923_v0  ;;  %v832_v63 = vld [vmem:[%s4932_s3 + $0x98] sm:$0xff] }
  0x6b   : > { %1137 = vmatpush.msra.mxu2 %v969_v22 }
  0x6c   : > { %1087 = vmatpush.msra.mxu0 %v889_v3  ;;  %1116 = vmatpush.msra.mxu1 %v921_v4 }
  0x6d   : > { %1138 = vmatpush.msra.mxu2 %v967_v25 }
  0x6e   : > { %1088 = vmatpush.msra.mxu0 %v887_v7  ;;  %1117 = vmatpush.msra.mxu1 %v919_v8  ;;  %v951_v7 = vld [vmem:[%s4932_s3 + $0x450] sm:$0xff] }
  0x6f   : > { %1139 = vmatpush.msra.mxu2 %v965_v27  ;;  %v983_v8 = vld [vmem:[%s4932_s3 + $0x550] sm:$0xff] }
  0x70   : > { %1089 = vmatpush.msra.mxu0 %v885_v11  ;;  %1118 = vmatpush.msra.mxu1 %v917_v12  ;;  %v862_v12 = vld [vmem:[%s4932_s3 + $0x188] sm:$0xff]  ;;  %v947_v27 = vld [vmem:[%s4932_s3 + $0x430] sm:$0xff] }
  0x71   : > { %2651 = vmatmul.msk.f32.gmra.mxu0 %vm463_vm1, %v360_v14  ;;  %2656 = vmatmul.msk.f32.gmra.mxu1 %vm463_vm1, %v360_v14  ;;  %v845_v14 = vld [vmem:[%s4932_s3 + $0x100] sm:$0xff] }
  0x72   : > { %1064 = vmatpush.msrb.mxu3 %v845_v14  ;;  %1090 = vmatpush.msra.mxu0 %v883_v15  ;;  %v949_v15 = vld [vmem:[%s4932_s3 + $0x440] sm:$0xff] }
  0x73   : > { %1119 = vmatpush.msra.mxu1 %v915_v16  ;;  %1140 = vmatpush.msra.mxu2 %v963_v31  ;;  %v981_v16 = vld [vmem:[%s4932_s3 + $0x540] sm:$0xff]  ;;  %v826_v31 = vld [vmem:[%s4932_s3 + $0x68] sm:$0xff] }
  0x74   : > { %1091 = vmatpush.msra.mxu0 %v881_v17  ;;  %2681 = vmatpush.msk.msra.mxu3 %vm476_vm0, %v999_v26 }
  0x75   : > { %1120 = vmatpush.msra.mxu1 %v913_v18  ;;  %1141 = vmatpush.msra.mxu2 %v961_v36 }
  0x76   : > { %1092 = vmatpush.msra.mxu0 %v879_v20  ;;  %1168 = vmatpush.msra.mxu3 %v997_v28  ;;  %v860_v20 = vld [vmem:[%s4932_s3 + $0x178] sm:$0xff]  ;;  %v979_v28 = vld [vmem:[%s4932_s3 + $0x530] sm:$0xff] }
  0x77   : > { %1121 = vmatpush.msra.mxu1 %v911_v21  ;;  %1142 = vmatpush.msra.mxu2 %v959_v40 }
  0x78   : > { %1093 = vmatpush.msra.mxu0 %v877_v23  ;;  %1169 = vmatpush.msra.mxu3 %v995_v32  ;;  %v858_v32 = vld [vmem:[%s4932_s3 + $0x168] sm:$0xff] }
  0x79   : > { %1122 = vmatpush.msra.mxu1 %v909_v24  ;;  %1143 = vmatpush.msra.mxu2 %v957_v48 }
  0x7a   : > { %1194 = vmatpush.msrb.mxu0 %v844_v29  ;;  %1170 = vmatpush.msra.mxu3 %v993_v37  ;;  %v945_v37 = vld [vmem:[%s4932_s3 + $0x420] sm:$0xff] }
  0x7b   : > { %1223 = vmatpush.msrb.mxu1 %v876_v30  ;;  %1144 = vmatpush.msra.mxu2 %v955_v54 }
  0x7c   : > { %1195 = vmatpush.msrb.mxu0 %v842_v33  ;;  %1171 = vmatpush.msra.mxu3 %v991_v41 }
  0x7d   : > { %1224 = vmatpush.msrb.mxu1 %v874_v35  ;;  %1145 = vmatpush.msra.mxu2 %v953_v61 }
  0x7e   : > { %1196 = vmatpush.msrb.mxu0 %v840_v38  ;;  %1172 = vmatpush.msra.mxu3 %v989_v49  ;;  %v977_v38 = vld [vmem:[%s4932_s3 + $0x520] sm:$0xff] }
  0x7f   : > { %1225 = vmatpush.msrb.mxu1 %v872_v39  ;;  %1146 = vmatpush.msra.mxu2 %v951_v7  ;;  %v824_v39 = vld [vmem:[%s4932_s3 + $0x58] sm:$0xff] }
  0x80   : > { %1197 = vmatpush.msrb.mxu0 %v838_v42  ;;  %1173 = vmatpush.msra.mxu3 %v987_v55 }
  0x81   : > { %1226 = vmatpush.msrb.mxu1 %v870_v45  ;;  %1147 = vmatpush.msra.mxu2 %v949_v15  ;;  %v856_v45 = vld [vmem:[%s4932_s3 + $0x158] sm:$0xff] }
  0x82   : > { %1198 = vmatpush.msrb.mxu0 %v836_v50  ;;  %1174 = vmatpush.msra.mxu3 %v985_v62  ;;  %v943_v50 = vld [vmem:[%s4932_s3 + $0x410] sm:$0xff] }
  0x83   : > { %1227 = vmatpush.msrb.mxu1 %v868_v51  ;;  %1148 = vmatpush.msra.mxu2 %v947_v27  ;;  %v975_v51 = vld [vmem:[%s4932_s3 + $0x510] sm:$0xff]  ;;  %v816_v27 = vld [vmem:[%s4932_s3 + $0x18] sm:$0xff] }
  0x84   : > { %1199 = vmatpush.msrb.mxu0 %v834_v56  ;;  %1175 = vmatpush.msra.mxu3 %v983_v8 }
  0x85   : > { %1228 = vmatpush.msrb.mxu1 %v866_v59  ;;  %1149 = vmatpush.msra.mxu2 %v945_v37 }
  0x86   : > { %1200 = vmatpush.msrb.mxu0 %v832_v63  ;;  %1176 = vmatpush.msra.mxu3 %v981_v16  ;;  %v820_v63 = vld [vmem:[%s4932_s3 + $0x38] sm:$0xff] }
  0x87   : > { %1229 = vmatpush.msrb.mxu1 %v864_v2  ;;  %1150 = vmatpush.msra.mxu2 %v943_v50  ;;  %v936_v50 = vld [vmem:[%s4932_s3 + $0x3d8] sm:$0xff] }
  0x88   : > { %1201 = vmatpush.msrb.mxu0 %v830_v9  ;;  %1177 = vmatpush.msra.mxu3 %v979_v28 }
  0x89   : > { %1230 = vmatpush.msrb.mxu1 %v862_v12  ;;  %v818_v12 = vld [vmem:[%s4932_s3 + $0x28] sm:$0xff] }
  0x8a   : > { %v3407_v34 = vpop.permute.xlu0 %445  ;;  %1202 = vmatpush.msrb.mxu0 %v828_v19  ;;  %1178 = vmatpush.msra.mxu3 %v977_v38 }
  0x8b   : > { %v3522_v23 = vpop.permute.xlu1 %455  ;;  %1231 = vmatpush.msrb.mxu1 %v860_v20  ;;  %v940_v20 = vld [vmem:[%s4932_s3 + $0x3f8] sm:$0xff] }
  0x8c   : > { %1203 = vmatpush.msrb.mxu0 %v826_v31  ;;  %1179 = vmatpush.msra.mxu3 %v975_v51  ;;  %v906_v31 = vld [vmem:[%s4932_s3 + $0x2e8] sm:$0xff] }
  0x8d   : > { %1232 = vmatpush.msrb.mxu1 %v858_v32 }
  0x8e   : > { %1204 = vmatpush.msrb.mxu0 %v824_v39  ;;  %v904_v39 = vld [vmem:[%s4932_s3 + $0x2d8] sm:$0xff] }
  0x8f   : > { %1233 = vmatpush.msrb.mxu1 %v856_v45 }
  0xad   : > { %v3468_v60 = vpop.permute.xlu0 %450  ;;  %v3603_v7 = vpop.permute.xlu1 %460 }
  0xb5   : > { %v512_v43 = vpop.f32.mrf.mxu0  ;;  %v541_v44 = vpop.f32.mrf.mxu1 }
  0xb6   : > { %v3437_v46 = vadd.f32 %v512_v43, %v3407_v34  ;;  %v3440_v47 = vadd.f32 %v541_v44, %v3407_v34 }
  0xb8   : > { %v693_v52 = vmin.f32 %v3437_v46, 0.0  ;;  %v694_v53 = vmin.f32 %v3440_v47, 0.0  ;;  %vm669_vm2 = vcmp.gt.f32.partialorder %v3437_v46, 0.0  ;;  %vm670_vm3 = vcmp.gt.f32.partialorder %v3440_v47, 0.0 }
  0xba   : > { %v717_v57 = vmul.f32 1.442695, %v693_v52  ;;  %v719_v58 = vmul.f32 1.442695, %v694_v53  ;;  %v822_v52 = vld [vmem:[%s4932_s3 + $0x48] sm:$0xff] }
  0xbb   : > { %1205 = vmatpush.msrb.mxu0 %v822_v52 }
  0xbc   : > { %2780 = vpow2.f32 %v717_v57  ;;  %v570_v0 = vpop.f32.mrf.mxu2  ;;  %v599_v1 = vpop.f32.mrf.mxu3  ;;  %v941_v57 = vld [vmem:[%s4932_s3 + $0x400] sm:$0xff] }
  0xbd   : > { %2782 = vpow2.f32 %v719_v58  ;;  %v3483_v3 = vadd.f32 %v570_v0, %v3407_v34  ;;  %v3486_v4 = vadd.f32 %v599_v1, %v3407_v34  ;;  %v515_v5 = vpop.f32.mrf.mxu0  ;;  %v544_v6 = vpop.f32.mrf.mxu1  ;;  %v973_v58 = vld [vmem:[%s4932_s3 + $0x500] sm:$0xff]  ;;  %v852_v0 = vld [vmem:[%s4932_s3 + $0x138] sm:$0xff]  ;;  %1151 = vmatpush.msra.mxu2 %v941_v57  ;;  %1206 = vmatpush.msrb.mxu0 %v820_v63 }
  0xbe   : > { %v3498_v10 = vadd.f32 %v515_v5, %v3468_v60  ;;  %v3501_v11 = vadd.f32 %v544_v6, %v3468_v60  ;;  %1180 = vmatpush.msra.mxu3 %v973_v58  ;;  %v900_v63 = vld [vmem:[%s4932_s3 + $0x2b8] sm:$0xff] }
  0xbf   : > { %v695_v13 = vmin.f32 %v3483_v3, 0.0  ;;  %v696_v14 = vmin.f32 %v3486_v4, 0.0  ;;  %vm671_vm4 = vcmp.gt.f32.partialorder %v3483_v3, 0.0  ;;  %vm672_vm5 = vcmp.gt.f32.partialorder %v3486_v4, 0.0  ;;  %1207 = vmatpush.msrb.mxu0 %v818_v12 }
  0xc0   : > { %v699_v17 = vmin.f32 %v3498_v10, 0.0  ;;  %v700_v18 = vmin.f32 %v3501_v11, 0.0  ;;  %vm675_vm6 = vcmp.gt.f32.partialorder %v3498_v10, 0.0  ;;  %vm676_vm7 = vcmp.gt.f32.partialorder %v3501_v11, 0.0 }
  0xc1   : > { %v721_v21 = vmul.f32 1.442695, %v695_v13  ;;  %v723_v22 = vmul.f32 1.442695, %v696_v14  ;;  %v850_v13 = vld [vmem:[%s4932_s3 + $0x128] sm:$0xff]  ;;  %v908_v14 = vld [vmem:[%s4932_s3 + $0x2f8] sm:$0xff]  ;;  %1208 = vmatpush.msrb.mxu0 %v816_v27 }
  0xc2   : > { %v2781_v24 = vpop.eup %2780  ;;  %v729_v25 = vmul.f32 1.442695, %v699_v17  ;;  %v731_v26 = vmul.f32 1.442695, %v700_v18 }
  0xc3   : > { %v2783_v29 = vpop.eup %2782  ;;  %2784 = vpow2.f32 %v721_v21  ;;  %v2657_v30 = vadd.f32 -1.0, %v2781_v24 }
  0xc4   : > { %2786 = vpow2.f32 %v723_v22  ;;  %v573_v33 = vpop.f32.mrf.mxu2  ;;  %v602_v35 = vpop.f32.mrf.mxu3  ;;  %v2658_v36 = vadd.f32 -1.0, %v2783_v29 }
  0xc5   : > { %v3548_v40 = vadd.f32 %v573_v33, %v3468_v60  ;;  %v3551_v41 = vadd.f32 %v602_v35, %v3468_v60  ;;  %v518_v42 = vpop.f32.mrf.mxu0  ;;  %v547_v43 = vpop.f32.mrf.mxu1  ;;  %v3554_v44 = vsel %vm669_vm2, %v3437_v46, %v2657_v30  ;;  %2788 = vpow2.f32 %v729_v25  ;;  %v848_v30 = vld [vmem:[%s4932_s3 + $0x118] sm:$0xff]  ;;  %v938_v35 = vld [vmem:[%s4932_s3 + $0x3e8] sm:$0xff] }
  0xc6   : > { %v3560_v48 = vadd.f32 %v518_v42, %v3522_v23  ;;  %v3563_v49 = vadd.f32 %v547_v43, %v3522_v23  ;;  %1036 = vmatmul.f32.vlgmr.msrb.gmra.mxu2 %v3554_v44  ;;  %v3569_v46 = vsel %vm670_vm3, %v3440_v47, %v2658_v36  ;;  %2790 = vpow2.f32 %v731_v26  ;;  %v854_v47 = vld [vmem:[%s4932_s3 + $0x148] sm:$0xff] }
  0xc7   : > { %v701_v53 = vmin.f32 %v3548_v40, 0.0  ;;  %v702_v54 = vmin.f32 %v3551_v41, 0.0  ;;  %1065 = vmatmul.f32.vlgmr.msrb.gmra.mxu3 %v3569_v46  ;;  %1234 = vmatpush.msrb.mxu1 %v854_v47  ;;  %v814_v36 = vld [vmem:[%s4932_s3 + $0x8] sm:$0xff]  ;;  %v972_v47 = vld [vmem:[%s4932_s3 + $0x4f8] sm:$0xff]  ;;  %vm677_vm8 = vcmp.gt.f32.partialorder %v3548_v40, 0.0  ;;  %vm678_vm9 = vcmp.gt.f32.partialorder %v3551_v41, 0.0 }
  0xc8   : > { %v705_v55 = vmin.f32 %v3560_v48, 0.0  ;;  %v706_v56 = vmin.f32 %v3563_v49, 0.0  ;;  %1252 = vmatpush.msrb.mxu2 %v908_v14  ;;  %1281 = vmatpush.msrb.mxu3 %v940_v20  ;;  %vm681_vm10 = vcmp.gt.f32.partialorder %v3560_v48, 0.0  ;;  %vm682_vm11 = vcmp.gt.f32.partialorder %v3563_v49, 0.0  ;;  %v930_v20 = vld [vmem:[%s4932_s3 + $0x3a8] sm:$0xff] }
  0xc9   : > { %v2785_v59 = vpop.eup %2784  ;;  %v733_v61 = vmul.f32 1.442695, %v701_v53  ;;  %v735_v62 = vmul.f32 1.442695, %v702_v54  ;;  %1235 = vmatpush.msrb.mxu1 %v852_v0  ;;  %1209 = vmatpush.msrb.mxu0 %v814_v36  ;;  %v902_v54 = vld [vmem:[%s4932_s3 + $0x2c8] sm:$0xff] }
  0xca   : > { %v2787_v1 = vpop.eup %2786  ;;  %v741_v2 = vmul.f32 1.442695, %v705_v55  ;;  %v2659_v5 = vadd.f32 -1.0, %v2785_v59  ;;  %v743_v8 = vmul.f32 1.442695, %v706_v56  ;;  %1253 = vmatpush.msrb.mxu2 %v906_v31  ;;  %1282 = vmatpush.msrb.mxu3 %v938_v35  ;;  %v934_v56 = vld [vmem:[%s4932_s3 + $0x3c8] sm:$0xff] }
  0xcb   : > { %v2789_v6 = vpop.eup %2788  ;;  %v2660_v9 = vadd.f32 -1.0, %v2787_v1  ;;  %2792 = vpow2.f32 %v733_v61  ;;  %1236 = vmatpush.msrb.mxu1 %v850_v13  ;;  %v970_v0 = vld [vmem:[%s4932_s3 + $0x4e8] sm:$0xff] }
  0xcc   : > { %v2791_v15 = vpop.eup %2790  ;;  %v576_v16 = vpop.f32.mrf.mxu2  ;;  %v3617_v18 = vsel %vm671_vm4, %v3483_v3, %v2659_v5  ;;  %v2663_v19 = vadd.f32 -1.0, %v2789_v6  ;;  %2794 = vpow2.f32 %v735_v62  ;;  %1254 = vmatpush.msrb.mxu2 %v904_v39  ;;  %1283 = vmatpush.msrb.mxu3 %v936_v50  ;;  %v966_v39 = vld [vmem:[%s4932_s3 + $0x4c8] sm:$0xff]  ;;  %vm1001_vm4 = vcmask 900096  }
  0xcd   : > { %v605_v17 = vpop.f32.mrf.mxu3  ;;  %v3624_v21 = vadd.f32 %v576_v16, %v3522_v23  ;;  %1094 = vmatmul.f32.vlgmr.msra.gmra.mxu0 %v3617_v18  ;;  %v3633_v3 = vsel %vm672_vm5, %v3486_v4, %v2660_v9  ;;  %v521_v24 = vpop.f32.mrf.mxu0  ;;  %v2664_v26 = vadd.f32 -1.0, %v2791_v15  ;;  %2796 = vpow2.f32 %v741_v2  ;;  %1237 = vmatpush.msrb.mxu1 %v848_v30  ;;  %v1000_v9 = vld [vmem:[%s4932_s3 + $0x5d8] sm:$0x3f]  ;;  %v894_v50 = vld [vmem:[%s4932_s3 + $0x288] sm:$0xff] }
  0xce   : > { %v3627_v22 = vadd.f32 %v605_v17, %v3522_v23  ;;  %v550_v25 = vpop.f32.mrf.mxu1  ;;  %1123 = vmatmul.f32.vlgmr.msra.gmra.mxu1 %v3633_v3  ;;  %v3640_v28 = vadd.f32 %v521_v24, %v3603_v7  ;;  %v3648_v4 = vsel %vm675_vm6, %v3498_v10, %v2663_v19  ;;  %2798 = vpow2.f32 %v743_v8  ;;  %1310 = vmatpush.msra.mxu0 %v972_v47  ;;  %v932_v8 = vld [vmem:[%s4932_s3 + $0x3b8] sm:$0xff]  ;;  %v898_v19 = vld [vmem:[%s4932_s3 + $0x2a8] sm:$0xff] }
  0xcf   : > { %v3643_v29 = vadd.f32 %v550_v25, %v3603_v7  ;;  %v707_v32 = vmin.f32 %v3624_v21, 0.0  ;;  %1039 = vmatmul.f32.gmra.mxu2 %v3648_v4  ;;  %v3662_v10 = vsel %vm676_vm7, %v3501_v11, %v2664_v26  ;;  %v846_v11 = vld [vmem:[%s4932_s3 + $0x108] sm:$0xff]  ;;  %1284 = vmatpush.msrb.mxu3 %v934_v56  ;;  %v896_v26 = vld [vmem:[%s4932_s3 + $0x298] sm:$0xff]  ;;  %vm683_vm12 = vcmp.gt.f32.partialorder %v3624_v21, 0.0 }
  0xd0   : > { %v708_v33 = vmin.f32 %v3627_v22, 0.0  ;;  %v711_v37 = vmin.f32 %v3640_v28, 0.0  ;;  %1068 = vmatmul.f32.gmra.mxu3 %v3662_v10  ;;  %1238 = vmatpush.msrb.mxu1 %v846_v11  ;;  %vm684_vm13 = vcmp.gt.f32.partialorder %v3627_v22, 0.0  ;;  %vm687_vm14 = vcmp.gt.f32.partialorder %v3640_v28, 0.0 }
  0xd1   : > { %v712_v38 = vmin.f32 %v3643_v29, 0.0  ;;  %v2793_v42 = vpop.eup %2792  ;;  %v745_v43 = vmul.f32 1.442695, %v707_v32  ;;  %1255 = vmatpush.msrb.mxu2 %v902_v54  ;;  %1311 = vmatpush.msra.mxu0 %v970_v0  ;;  %v928_v32 = vld [vmem:[%s4932_s3 + $0x398] sm:$0xff]  ;;  %v994_v54 = vld [vmem:[%s4932_s3 + $0x5a8] sm:$0xff]  ;;  %vm688_vm15 = vcmp.gt.f32.partialorder %v3643_v29, 0.0 }
  0xd2   : > { %v747_v45 = vmul.f32 1.442695, %v708_v33  ;;  %v2795_v51 = vpop.eup %2794  ;;  %v753_v52 = vmul.f32 1.442695, %v711_v37  ;;  %v2665_v53 = vadd.f32 -1.0, %v2793_v42  ;;  %1285 = vmatpush.msrb.mxu3 %v932_v8  ;;  %2686 = vmatpush.msk.msra.mxu1 %vm476_vm0, %v1000_v9  ;;  %v996_v37 = vld [vmem:[%s4932_s3 + $0x5b8] sm:$0xff] }
  0xd3   : > { %v2666_v55 = vadd.f32 -1.0, %v2795_v51  ;;  %2800 = vpow2.f32 %v745_v43  ;;  %v2797_v57 = vpop.eup %2796  ;;  %v755_v58 = vmul.f32 1.442695, %v712_v38  ;;  %1256 = vmatpush.msrb.mxu2 %v900_v63  ;;  %v926_v51 = vld [vmem:[%s4932_s3 + $0x388] sm:$0xff]  ;;  %v892_v63 = vld [vmem:[%s4932_s3 + $0x278] sm:$0xff] }
  0xd4   : > { %v579_v59 = vpop.f32.mrf.mxu2  ;;  %v3693_v62 = vsel %vm677_vm8, %v3548_v40, %v2665_v53  ;;  %2802 = vpow2.f32 %v747_v45  ;;  %v2799_v1 = vpop.eup %2798  ;;  %v2669_v6 = vadd.f32 -1.0, %v2797_v57  ;;  %1286 = vmatpush.msrb.mxu3 %v930_v20  ;;  %v964_v53 = vld [vmem:[%s4932_s3 + $0x4b8] sm:$0xff]  ;;  %v962_v0 = vld [vmem:[%s4932_s3 + $0x4a8] sm:$0xff] }
  0xd5   : > { %v608_v61 = vpop.f32.mrf.mxu3  ;;  %v3703_v2 = vadd.f32 %v579_v59, %v3603_v7  ;;  %1097 = vmatmul.f32.gmra.mxu0 %v3693_v62  ;;  %v3710_v5 = vsel %vm678_vm9, %v3551_v41, %v2666_v55  ;;  %v2670_v41 = vadd.f32 -1.0, %v2799_v1  ;;  %2804 = vpow2.f32 %v753_v52  ;;  %1257 = vmatpush.msrb.mxu2 %v898_v19  ;;  %v890_v9 = vld [vmem:[%s4932_s3 + $0x268] sm:$0xff] }
  0xd6   : > { %v3706_v40 = vadd.f32 %v608_v61, %v3603_v7  ;;  %1126 = vmatmul.f32.gmra.mxu1 %v3710_v5  ;;  %v628_v12 = vpop.f32.mrf.mxu0  ;;  %v657_v13 = vpop.f32.mrf.mxu1  ;;  %v3736_v24 = vsel %vm681_vm10, %v3560_v48, %v2669_v6  ;;  %2806 = vpow2.f32 %v755_v58  ;;  %v998_v48 = vld [vmem:[%s4932_s3 + $0x5c8] sm:$0xff]  ;;  %1287 = vmatpush.msrb.mxu3 %v928_v32 }
  0xd7   : > { %v713_v14 = vmin.f32 %v3703_v2, 0.0  ;;  %v3724_v16 = vadd.f32 %v628_v12, %v3407_v34  ;;  %v3727_v17 = vadd.f32 %v657_v13, %v3407_v34  ;;  %v3739_v25 = vsel %vm682_vm11, %v3563_v49, %v2670_v41  ;;  %v968_v34 = vld [vmem:[%s4932_s3 + $0x4d8] sm:$0xff]  ;;  %1042 = vmatmul.f32.gmra.mxu2 %v3736_v24  ;;  %1342 = vmatpush.msra.mxu1 %v998_v48  ;;  %v958_v32 = vld [vmem:[%s4932_s3 + $0x488] sm:$0xff] }
  0xd8   : > { %v714_v15 = vmin.f32 %v3706_v40, 0.0  ;;  %1071 = vmatmul.f32.gmra.mxu3 %v3739_v25  ;;  %1312 = vmatpush.msra.mxu0 %v968_v34  ;;  %v992_v12 = vld [vmem:[%s4932_s3 + $0x598] sm:$0xff]  ;;  %vm689_vm0 = vcmp.gt.f32.partialorder %v3703_v2, 0.0  ;;  %vm690_vm1 = vcmp.gt.f32.partialorder %v3706_v40, 0.0  ;;  %vm1369_vm11 = vcmask 482304  }
  0xd9   : > { %v2801_v27 = vpop.eup %2800  ;;  %v757_v30 = vmul.f32 1.442695, %v713_v14  ;;  %v697_v31 = vmin.f32 %v3724_v16, 0.0  ;;  %v698_v35 = vmin.f32 %v3727_v17, 0.0  ;;  %1258 = vmatpush.msrb.mxu2 %v896_v26  ;;  %1343 = vmatpush.msra.mxu1 %v996_v37  ;;  %v960_v34 = vld [vmem:[%s4932_s3 + $0x498] sm:$0xff]  ;;  %vm673_vm2 = vcmp.gt.f32.partialorder %v3724_v16, 0.0 }
  0xda   : > { %v759_v49 = vmul.f32 1.442695, %v714_v15  ;;  %v2803_v33 = vpop.eup %2802  ;;  %v2671_v36 = vadd.f32 -1.0, %v2801_v27  ;;  %1313 = vmatpush.msra.mxu0 %v966_v39  ;;  %1288 = vmatpush.msrb.mxu3 %v926_v51  ;;  %vm674_vm3 = vcmp.gt.f32.partialorder %v3727_v17, 0.0  ;;  %v986_v51 = vld [vmem:[%s4932_s3 + $0x568] sm:$0xff] }
  0xdb   : > { %v725_v38 = vmul.f32 1.442695, %v697_v31  ;;  %v2672_v11 = vadd.f32 -1.0, %v2803_v33  ;;  %2808 = vpow2.f32 %v757_v30  ;;  %v2805_v42 = vpop.eup %2804  ;;  %v727_v43 = vmul.f32 1.442695, %v698_v35  ;;  %1259 = vmatpush.msrb.mxu2 %v894_v50  ;;  %1344 = vmatpush.msra.mxu1 %v994_v54  ;;  %v888_v30 = vld [vmem:[%s4932_s3 + $0x258] sm:$0xff] }
  0xdc   : > { %v3766_v45 = vsel %vm683_vm12, %v3624_v21, %v2671_v36  ;;  %2810 = vpow2.f32 %v759_v49  ;;  %v2675_v21 = vadd.f32 -1.0, %v2805_v42  ;;  %v2807_v47 = vpop.eup %2806  ;;  %1314 = vmatpush.msra.mxu0 %v964_v53  ;;  %v990_v49 = vld [vmem:[%s4932_s3 + $0x588] sm:$0xff]  ;;  %v916_v42 = vld [vmem:[%s4932_s3 + $0x338] sm:$0xff]  ;;  %vm1475_vm12 = vcmask 1022976  }
  0xdd   : > { %2812 = vpow2.f32 %v725_v38  ;;  %1100 = vmatmul.f32.gmra.mxu0 %v3766_v45  ;;  %v3777_v52 = vsel %vm684_vm13, %v3627_v22, %v2672_v11  ;;  %v924_v22 = vld [vmem:[%s4932_s3 + $0x378] sm:$0xff]  ;;  %v2676_v61 = vadd.f32 -1.0, %v2807_v47  ;;  %1260 = vmatpush.msrb.mxu2 %v892_v63  ;;  %v918_v33 = vld [vmem:[%s4932_s3 + $0x348] sm:$0xff]  ;;  %vm1586_vm13 = vcmask 998400  }
  0xde   : > { %2814 = vpow2.f32 %v727_v43  ;;  %1129 = vmatmul.f32.gmra.mxu1 %v3777_v52  ;;  %v631_v55 = vpop.f32.mrf.mxu0  ;;  %v660_v56 = vpop.f32.mrf.mxu1  ;;  %v3797_v59 = vsel %vm687_vm14, %v3640_v28, %v2675_v21  ;;  %1289 = vmatpush.msrb.mxu3 %v924_v22  ;;  %v884_v50 = vld [vmem:[%s4932_s3 + $0x238] sm:$0xff]  ;;  %v914_v21 = vld [vmem:[%s4932_s3 + $0x328] sm:$0xff]  ;;  %vm1734_vm14 = vcmask 965632  }
  0xdf   : > { %v3791_v57 = vadd.f32 %v631_v55, %v3468_v60  ;;  %v3794_v58 = vadd.f32 %v660_v56, %v3468_v60  ;;  %v922_v60 = vld [vmem:[%s4932_s3 + $0x368] sm:$0xff]  ;;  %1045 = vmatmul.f32.gmra.mxu2 %v3797_v59  ;;  %v3813_v8 = vsel %vm688_vm15, %v3643_v29, %v2676_v61  ;;  %v920_v29 = vld [vmem:[%s4932_s3 + $0x358] sm:$0xff]  ;;  %1315 = vmatpush.msra.mxu0 %v962_v0  ;;  %vm1623_vm15 = vcmask 990208  }
  0xe0   : > { %1074 = vmatmul.f32.gmra.mxu3 %v3813_v8  ;;  %1261 = vmatpush.msrb.mxu2 %v890_v9  ;;  %v954_v55 = vld [vmem:[%s4932_s3 + $0x468] sm:$0xff]  ;;  %v984_v63 = vld [vmem:[%s4932_s3 + $0x558] sm:$0xff] }
  0xe1   : > { %v2809_v28 = vpop.eup %2808  ;;  %v703_v1 = vmin.f32 %v3791_v57, 0.0  ;;  %v704_v6 = vmin.f32 %v3794_v58, 0.0  ;;  %1290 = vmatpush.msrb.mxu3 %v922_v60  ;;  %1345 = vmatpush.msra.mxu1 %v992_v12  ;;  %v882_v61 = vld [vmem:[%s4932_s3 + $0x228] sm:$0xff]  ;;  %vm679_vm5 = vcmp.gt.f32.partialorder %v3791_v57, 0.0  ;;  %v952_v60 = vld [vmem:[%s4932_s3 + $0x458] sm:$0xff]  ;;  %vm680_vm6 = vcmp.gt.f32.partialorder %v3794_v58, 0.0 }
  0xe2   : > { %v2811_v13 = vpop.eup %2810  ;;  %v2677_v41 = vadd.f32 -1.0, %v2809_v28  ;;  %1316 = vmatpush.msra.mxu0 %v960_v34  ;;  %1262 = vmatpush.msrb.mxu2 %v888_v30  ;;  %v912_v28 = vld [vmem:[%s4932_s3 + $0x318] sm:$0xff] }
  0xe3   : > { %v2813_v14 = vpop.eup %2812  ;;  %v737_v15 = vmul.f32 1.442695, %v703_v1  ;;  %v739_v19 = vmul.f32 1.442695, %v704_v6  ;;  %v2678_v20 = vadd.f32 -1.0, %v2811_v13  ;;  %1291 = vmatpush.msrb.mxu3 %v920_v29  ;;  %1346 = vmatpush.msra.mxu1 %v990_v49  ;;  %v910_v29 = vld [vmem:[%s4932_s3 + $0x308] sm:$0xff] }
  0xe4   : > { %v2815_v26 = vpop.eup %2814  ;;  %v2661_v48 = vadd.f32 -1.0, %v2813_v14  ;;  %v3830_v27 = vsel %vm689_vm0, %v3703_v2, %v2677_v41  ;;  %1317 = vmatpush.msra.mxu0 %v958_v32  ;;  %v978_v49 = vld [vmem:[%s4932_s3 + $0x528] sm:$0xff]  ;;  %vm1438_vm0 = vcmask 1031168  }
  0xe5   : > { %v2662_v31 = vadd.f32 -1.0, %v2815_v26  ;;  %2816 = vpow2.f32 %v737_v15  ;;  %1103 = vmatmul.f32.gmra.mxu0 %v3830_v27  ;;  %v3842_v2 = vsel %vm690_vm1, %v3706_v40, %v2678_v20  ;;  %v988_v40 = vld [vmem:[%s4932_s3 + $0x578] sm:$0xff]  ;;  %1292 = vmatpush.msrb.mxu3 %v918_v33  ;;  %v946_v32 = vld [vmem:[%s4932_s3 + $0x428] sm:$0xff]  ;;  %vm1771_vm1 = vcmask 957440  }
  0xe6   : > { %2818 = vpow2.f32 %v739_v19  ;;  %1132 = vmatmul.f32.gmra.mxu1 %v3842_v2  ;;  %v634_v35 = vpop.f32.mrf.mxu0  ;;  %v663_v36 = vpop.f32.mrf.mxu1  ;;  %v3853_v37 = vsel %vm673_vm2, %v3724_v16, %v2661_v48  ;;  %v886_v16 = vld [vmem:[%s4932_s3 + $0x248] sm:$0xff]  ;;  %v980_v15 = vld [vmem:[%s4932_s3 + $0x538] sm:$0xff]  ;;  %vm1697_vm2 = vcmask 973824  }
  0xe7   : > { %v3859_v38 = vsel %vm674_vm3, %v3727_v17, %v2662_v31  ;;  %v3862_v11 = vadd.f32 %v634_v35, %v3522_v23  ;;  %v3865_v39 = vadd.f32 %v663_v36, %v3522_v23  ;;  %v956_v17 = vld [vmem:[%s4932_s3 + $0x478] sm:$0xff]  ;;  %1152 = vmatmul.f32.vlgmr.msra.gmra.mxu2 %v3853_v37  ;;  %1347 = vmatpush.msra.mxu1 %v988_v40  ;;  %v942_v40 = vld [vmem:[%s4932_s3 + $0x408] sm:$0xff]  ;;  %vm1549_vm3 = vcmask 1006592  }
  0xe8   : > { %2682 = vmatmul.msk.f32.vlgmr.msra.gmra.mxu3 %vm1001_vm4, %v3859_v38  ;;  %1263 = vmatpush.msrb.mxu2 %v886_v16  ;;  %v948_v26 = vld [vmem:[%s4932_s3 + $0x438] sm:$0xff] }
  0xe9   : > { %v709_v23 = vmin.f32 %v3862_v11, 0.0  ;;  %v710_v43 = vmin.f32 %v3865_v39, 0.0  ;;  %1318 = vmatpush.msra.mxu0 %v956_v17  ;;  %1293 = vmatpush.msrb.mxu3 %v916_v42  ;;  %vm685_vm7 = vcmp.gt.f32.partialorder %v3862_v11, 0.0  ;;  %vm686_vm8 = vcmp.gt.f32.partialorder %v3865_v39, 0.0  ;;  %v976_v35 = vld [vmem:[%s4932_s3 + $0x518] sm:$0xff] }
  0xea   : > { %1264 = vmatpush.msrb.mxu2 %v884_v50  ;;  %1348 = vmatpush.msra.mxu1 %v986_v51  ;;  %v944_v36 = vld [vmem:[%s4932_s3 + $0x418] sm:$0xff] }
  0xeb   : > { %v2817_v53 = vpop.eup %2816  ;;  %v749_v54 = vmul.f32 1.442695, %v709_v23  ;;  %v751_v47 = vmul.f32 1.442695, %v710_v43  ;;  %1294 = vmatpush.msrb.mxu3 %v914_v21  ;;  %1319 = vmatpush.msra.mxu0 %v954_v55 }
  0xec   : > { %v2819_v56 = vpop.eup %2818  ;;  %v2667_v22 = vadd.f32 -1.0, %v2817_v53  ;;  %1265 = vmatpush.msrb.mxu2 %v882_v61  ;;  %1349 = vmatpush.msra.mxu1 %v984_v63 }
  0xed   : > { %2820 = vpow2.f32 %v749_v54  ;;  %1210 = vmatmul.f32.vlgmr.msrb.gmra.mxu0 %v3554_v44  ;;  %v2668_v0 = vadd.f32 -1.0, %v2819_v56  ;;  %v982_v44 = vld [vmem:[%s4932_s3 + $0x548] sm:$0xff]  ;;  %1295 = vmatpush.msrb.mxu3 %v912_v28 }
  0xee   : > { %2822 = vpow2.f32 %v751_v47  ;;  %1239 = vmatmul.f32.vlgmr.msrb.gmra.mxu1 %v3569_v46  ;;  %v637_v1 = vpop.f32.mrf.mxu0  ;;  %v666_v6 = vpop.f32.mrf.mxu1  ;;  %v3909_v9 = vsel %vm679_vm5, %v3791_v57, %v2667_v22  ;;  %v880_v46 = vld [vmem:[%s4932_s3 + $0x218] sm:$0xff]  ;;  %1320 = vmatpush.msra.mxu0 %v952_v60  ;;  %v950_v57 = vld [vmem:[%s4932_s3 + $0x448] sm:$0xff]  ;;  %vm1845_vm5 = vcmask 941056  }
  0xef   : > { %v638_v12 = vadd.f32 %v637_v1, %v3603_v7  ;;  %v667_v13 = vadd.f32 %v666_v6, %v3603_v7  ;;  %v3918_v41 = vsel %vm680_vm6, %v3794_v58, %v2668_v0  ;;  %1155 = vmatmul.f32.gmra.mxu2 %v3909_v9  ;;  %1350 = vmatpush.msra.mxu1 %v982_v44  ;;  %v878_v58 = vld [vmem:[%s4932_s3 + $0x208] sm:$0xff]  ;;  %vm1512_vm6 = vcmask 1014784  }
  0xf0   : > { %2683 = vmatmul.msk.f32.gmra.mxu3 %vm1001_vm4, %v3918_v41  ;;  %1266 = vmatpush.msrb.mxu2 %v880_v46 }
  0xf1   : > { %v715_v7 = vmin.f32 %v638_v12, 0.0  ;;  %v716_v14 = vmin.f32 %v667_v13, 0.0  ;;  %1321 = vmatpush.msra.mxu0 %v950_v57  ;;  %1296 = vmatpush.msrb.mxu3 %v910_v29  ;;  %vm691_vm9 = vcmp.gt.f32.partialorder %v638_v12, 0.0  ;;  %vm692_vm10 = vcmp.gt.f32.partialorder %v667_v13, 0.0 }
  0xf2   : > { %1267 = vmatpush.msrb.mxu2 %v878_v58  ;;  %1351 = vmatpush.msra.mxu1 %v980_v15 }
  0xf3   : > { %v2821_v19 = vpop.eup %2820  ;;  %v761_v20 = vmul.f32 1.442695, %v715_v7  ;;  %v763_v34 = vmul.f32 1.442695, %v716_v14  ;;  %1322 = vmatpush.msra.mxu0 %v948_v26 }
  0xf4   : > { %v2823_v48 = vpop.eup %2822  ;;  %v2673_v30 = vadd.f32 -1.0, %v2821_v19  ;;  %1352 = vmatpush.msra.mxu1 %v978_v49 }
  0xf5   : > { %2824 = vpow2.f32 %v761_v20  ;;  %1213 = vmatmul.f32.gmra.mxu0 %v3648_v4  ;;  %v2674_v31 = vadd.f32 -1.0, %v2823_v48 }
  0xf6   : > { %2826 = vpow2.f32 %v763_v34  ;;  %1242 = vmatmul.f32.gmra.mxu1 %v3662_v10  ;;  %v805_v33 = vsel %vm685_vm7, %v3862_v11, %v2673_v30  ;;  %1323 = vmatpush.msra.mxu0 %v946_v32  ;;  %v974_v10 = vld [vmem:[%s4932_s3 + $0x508] sm:$0xff]  ;;  %vm1882_vm7 = vcmask 932864  }
  0xf7   : > { %v806_v4 = vsel %vm686_vm8, %v3865_v39, %v2674_v31  ;;  %1158 = vmatmul.f32.gmra.mxu2 %v805_v33  ;;  %1353 = vmatpush.msra.mxu1 %v976_v35  ;;  %vm1660_vm8 = vcmask 982016  }
  0xf8   : > { %2684 = vmatmul.msk.f32.gmra.mxu3 %vm1001_vm4, %v806_v4  ;;  %1324 = vmatpush.msra.mxu0 %v944_v36 }
  0xf9   : > { %1354 = vmatpush.msra.mxu1 %v974_v10 }
  0xfa   : > { %1325 = vmatpush.msra.mxu0 %v942_v40 }
  0xfb   : > { %v2825_v11 = vpop.eup %2824 }
  0xfc   : > { %v2827_v39 = vpop.eup %2826  ;;  %v2679_v16 = vadd.f32 -1.0, %v2825_v11 }
  0xfd   : > { %1216 = vmatmul.f32.gmra.mxu0 %v3736_v24  ;;  %v2680_v17 = vadd.f32 -1.0, %v2827_v39 }
  0xfe   : > { %1245 = vmatmul.f32.gmra.mxu1 %v3739_v25  ;;  %v811_v42 = vsel %vm691_vm9, %v638_v12, %v2679_v16  ;;  %vm1808_vm9 = vcmask 949248  }
  0xff   : > { %v812_v23 = vsel %vm692_vm10, %v667_v13, %v2680_v17  ;;  %1161 = vmatmul.f32.gmra.mxu2 %v811_v42  ;;  %vm2039_vm10 = vcmask 785408  }
 0x100   : > { %2685 = vmatmul.msk.f32.gmra.mxu3 %vm1001_vm4, %v812_v23 }
 0x105   : > { %1219 = vmatmul.f32.gmra.mxu0 %v3797_v59 }
 0x106   : > { %1248 = vmatmul.f32.gmra.mxu1 %v3813_v8 }
 0x107   : > { %1268 = vmatmul.f32.vlgmr.msrb.gmra.mxu2 %v3617_v18 }
 0x108   : > { %1297 = vmatmul.f32.vlgmr.msrb.gmra.mxu3 %v3633_v3 }
 0x10d   : > { %1326 = vmatmul.f32.vlgmr.msra.gmra.mxu0 %v3853_v37 }
 0x10e   : > { %2687 = vmatmul.msk.f32.vlgmr.msra.gmra.mxu1 %vm1001_vm4, %v3859_v38 }
 0x10f   : > { %1271 = vmatmul.f32.gmra.mxu2 %v3693_v62 }
 0x110   : > { %1300 = vmatmul.f32.gmra.mxu3 %v3710_v5 }
 0x115   : > { %1329 = vmatmul.f32.gmra.mxu0 %v3909_v9 }
 0x116   : > { %2688 = vmatmul.msk.f32.gmra.mxu1 %vm1001_vm4, %v3918_v41 }
 0x117   : > { %1274 = vmatmul.f32.gmra.mxu2 %v3766_v45 }
 0x118   : > { %1303 = vmatmul.f32.gmra.mxu3 %v3777_v52 }
 0x11d   : > { %1332 = vmatmul.f32.gmra.mxu0 %v805_v33 }
 0x11e   : > { %2689 = vmatmul.msk.f32.gmra.mxu1 %vm1001_vm4, %v806_v4 }
 0x11f   : > { %1277 = vmatmul.f32.gmra.mxu2 %v3830_v27 }
 0x120   : > { %1306 = vmatmul.f32.gmra.mxu3 %v3842_v2 }
 0x125   : > { %1335 = vmatmul.f32.gmra.mxu0 %v811_v42 }
 0x126   : > { %2690 = vmatmul.msk.f32.gmra.mxu1 %vm1001_vm4, %v812_v23  ;;  %vm1401_vm4 = vcmask 1039360  }
 0x149   : > { %v1037_v18 = vpop.f32.mrf.mxu2 }
 0x14a   : > { %v1066_v3 = vpop.f32.mrf.mxu3  ;;  %v1095_v62 = vpop.f32.mrf.mxu0 }
 0x14b   : > { %v1124_v5 = vpop.f32.mrf.mxu1  ;;  %v1067_v50 = vadd.f32 %v1066_v3, %v1037_v18 }
 0x14d   : > { %v1096_v21 = vadd.f32 %v1095_v62, %v1067_v50 }
 0x14f   : > { %v1125_v54 = vadd.f32 %v1124_v5, %v1096_v21 }
 0x152   : > { %v1040_v24 = vpop.f32.mrf.mxu2  ;;  %v1098_v25 = vpop.f32.mrf.mxu0 }
 0x153   : > { %v1069_v59 = vpop.f32.mrf.mxu3  ;;  %v1127_v45 = vpop.f32.mrf.mxu1 }
 0x154   : > { %v1070_v47 = vadd.f32 %v1069_v59, %v1040_v24 }
 0x156   : > { %v1099_v63 = vadd.f32 %v1098_v25, %v1070_v47 }
 0x158   : > { %v1128_v28 = vadd.f32 %v1127_v45, %v1099_v63 }
 0x15a   : > { %v1101_v8 = vpop.f32.mrf.mxu0  ;;  %v1043_v37 = vpop.f32.mrf.mxu2 }
 0x15b   : > { %v1130_v52 = vpop.f32.mrf.mxu1  ;;  %v1072_v38 = vpop.f32.mrf.mxu3 }
 0x15c   : > { %v1073_v1 = vadd.f32 %v1072_v38, %v1043_v37 }
 0x15e   : > { %v1102_v13 = vadd.f32 %v1101_v8, %v1073_v1 }
 0x160   : > { %v1131_v57 = vadd.f32 %v1130_v52, %v1102_v13 }
 0x162   : > { %v1104_v43 = vpop.f32.mrf.mxu0  ;;  %v1046_v51 = vpop.f32.mrf.mxu2 }
 0x163   : > { %v1133_v27 = vpop.f32.mrf.mxu1  ;;  %v1075_v2 = vpop.f32.mrf.mxu3 }
 0x164   : > { %v1076_v29 = vadd.f32 %v1075_v2, %v1046_v51 }
 0x166   : > { %v1105_v19 = vadd.f32 %v1104_v43, %v1076_v29 }
 0x168   : > { %v1134_v26 = vadd.f32 %v1133_v27, %v1105_v19 }
 0x16a   : > { %v1211_v53 = vpop.f32.mrf.mxu0  ;;  %v1153_v56 = vpop.f32.mrf.mxu2 }
 0x16b   : > { %v1240_v55 = vpop.f32.mrf.mxu1  ;;  %v1154_v22 = vadd.f32 %v1153_v56, %v1125_v54  ;;  %v1182_v61 = vpop.f32.mrf.mxu3 }
 0x16c   : > { %v1241_v35 = vadd.f32 %v1240_v55, %v1211_v53 }
 0x16d   : > { %v3987_v0 = vadd.f32 %v1182_v61, %v1154_v22 }
 0x16f   : > { %1368 = vst [vmem:[#allocation2] sm:$0xff] %v3987_v0  ;;  %1422 = vrot.lane.b32.xlu2 %v3987_v0, %s2909_s27  ;;  %1607 = vrot.lane.b32.xlu0 %v3987_v0, %s4940_s28 }
 0x170   : > { %1459 = vrot.lane.b32.xlu1 %v3987_v0, %s4950_s29 }
 0x172   : > { %v1214_v60 = vpop.f32.mrf.mxu0  ;;  %v1156_v9 = vpop.f32.mrf.mxu2 }
 0x173   : > { %v1243_v6 = vpop.f32.mrf.mxu1  ;;  %v1157_v44 = vadd.f32 %v1156_v9, %v1128_v28  ;;  %v1185_v12 = vpop.f32.mrf.mxu3 }
 0x174   : > { %v1244_v16 = vadd.f32 %v1243_v6, %v1214_v60 }
 0x175   : > { %v3996_v41 = vadd.f32 %v1185_v12, %v1157_v44 }
 0x177   : > { %1533 = vrot.lane.b32.xlu2 %v3987_v0, %s4942_s30  ;;  %1755 = vrot.lane.b32.xlu0 %v3987_v0, %s4962_s12 }
 0x178   : > { %1570 = vrot.lane.b32.xlu1 %v3987_v0, %s4964_s18 }
 0x17a   : > { %v1217_v46 = vpop.f32.mrf.mxu0  ;;  %v1159_v14 = vpop.f32.mrf.mxu2 }
 0x17b   : > { %v1246_v7 = vpop.f32.mrf.mxu1  ;;  %v1160_v58 = vadd.f32 %v1159_v14, %v1131_v57  ;;  %v1188_v15 = vpop.f32.mrf.mxu3 }
 0x17c   : > { %v1247_v25 = vadd.f32 %v1246_v7, %v1217_v46 }
 0x17d   : > { %v4004_v20 = vadd.f32 %v1188_v15, %v1160_v58 }
 0x17f   : > { %1496 = vrot.lane.b32.xlu2 %v3987_v0, %s4956_s20  ;;  %1385 = vrot.lane.b32.xlu0 %v3987_v0, %s4946_s21 }
 0x180   : > { %1718 = vrot.lane.b32.xlu1 %v3987_v0, %s4952_s25 }
 0x182   : > { %v1220_v34 = vpop.f32.mrf.mxu0  ;;  %v1162_v30 = vpop.f32.mrf.mxu2 }
 0x183   : > { %v1249_v48 = vpop.f32.mrf.mxu1  ;;  %v1163_v49 = vadd.f32 %v1162_v30, %v1134_v26  ;;  %v1191_v31 = vpop.f32.mrf.mxu3 }
 0x184   : > { %v1250_v27 = vadd.f32 %v1249_v48, %v1220_v34 }
 0x185   : > { %v4012_v32 = vadd.f32 %v1191_v31, %v1163_v49 }
 0x187   : > { %1611 = vrot.lane.b32.xlu2 %v3996_v41, %s4940_s28  ;;  %1866 = vrot.lane.b32.xlu0 %v3987_v0, %s4954_s26  ;;  %s4948_s28 = smov 115  }
 0x188   : > { %1681 = vrot.lane.b32.xlu1 %v3987_v0, %s4944_s11 }
 0x18a   : > { %v1327_v33 = vpop.f32.mrf.mxu0  ;;  %v1269_v4 = vpop.f32.mrf.mxu2 }
 0x18b   : > { %v1356_v36 = vpop.f32.mrf.mxu1  ;;  %v1270_v10 = vadd.f32 %v1269_v4, %v1241_v35  ;;  %v1298_v40 = vpop.f32.mrf.mxu3 }
 0x18d   : > { %v1299_v11 = vadd.f32 %v1298_v40, %v1270_v10 }
 0x18f   : > { %v1328_v39 = vadd.f32 %v1327_v33, %v1299_v11  ;;  %1426 = vrot.lane.b32.xlu2 %v3996_v41, %s2909_s27  ;;  %1463 = vrot.lane.b32.xlu0 %v3996_v41, %s4950_s29 }
 0x190   : > { %1829 = vrot.lane.b32.xlu1 %v3987_v0, %s4948_s28 }
 0x191   : > { %v4026_v17 = vadd.f32 %v1356_v36, %v1328_v39 }
 0x192   : > { %v1272_v42 = vpop.f32.mrf.mxu2  ;;  %v1330_v23 = vpop.f32.mrf.mxu0 }
 0x193   : > { %v1273_v18 = vadd.f32 %v1272_v42, %v1244_v16  ;;  %v1301_v3 = vpop.f32.mrf.mxu3  ;;  %1370 = vst.msk [vmem:[#allocation2 + $0x8] sm:$0xff] %vm1369_vm11, %v4026_v17  ;;  %v1359_v62 = vpop.f32.mrf.mxu1 }
 0x195   : > { %v1302_v5 = vadd.f32 %v1301_v3, %v1273_v18 }
 0x197   : > { %v1331_v24 = vadd.f32 %v1330_v23, %v1302_v5  ;;  %1722 = vrot.lane.b32.xlu2 %v3996_v41, %s4952_s25  ;;  %1759 = vrot.lane.b32.xlu0 %v3996_v41, %s4962_s12 }
 0x198   : > { %1574 = vrot.lane.b32.xlu1 %v3996_v41, %s4964_s18 }
 0x199   : > { %v4036_v59 = vadd.f32 %v1359_v62, %v1331_v24 }
 0x19a   : > { %v1275_v45 = vpop.f32.mrf.mxu2  ;;  %v1333_v37 = vpop.f32.mrf.mxu0 }
 0x19b   : > { %v1276_v8 = vadd.f32 %v1275_v45, %v1247_v25  ;;  %v1304_v52 = vpop.f32.mrf.mxu3  ;;  %1372 = vst.msk [vmem:[#allocation2 + $0x18] sm:$0xff] %vm1369_vm11, %v4036_v59  ;;  %v1362_v43 = vpop.f32.mrf.mxu1 }
 0x19d   : > { %v1305_v38 = vadd.f32 %v1304_v52, %v1276_v8 }
 0x19f   : > { %v1334_v50 = vadd.f32 %v1333_v37, %v1305_v38  ;;  %1500 = vrot.lane.b32.xlu2 %v3996_v41, %s4956_s20  ;;  %1537 = vrot.lane.b32.xlu0 %v3996_v41, %s4942_s30  ;;  %s4958_s30 = smov 120  }
 0x1a0   : > { %1389 = vrot.lane.b32.xlu1 %v3996_v41, %s4946_s21 }
 0x1a1   : > { %v4046_v51 = vadd.f32 %v1362_v43, %v1334_v50 }
 0x1a2   : > { %v1278_v2 = vpop.f32.mrf.mxu2  ;;  %v1336_v47 = vpop.f32.mrf.mxu0 }
 0x1a3   : > { %v1279_v21 = vadd.f32 %v1278_v2, %v1250_v27  ;;  %1374 = vst.msk [vmem:[#allocation2 + $0x28] sm:$0xff] %vm1369_vm11, %v4046_v51  ;;  %v1307_v53 = vpop.f32.mrf.mxu3  ;;  %v1365_v56 = vpop.f32.mrf.mxu1 }
 0x1a5   : > { %v1308_v54 = vadd.f32 %v1307_v53, %v1279_v21 }
 0x1a7   : > { %v1337_v55 = vadd.f32 %v1336_v47, %v1308_v54  ;;  %1467 = vrot.lane.b32.xlu2 %v4004_v20, %s4950_s29  ;;  %1870 = vrot.lane.b32.xlu0 %v3996_v41, %s4954_s26 }
 0x1a8   : > { %1685 = vrot.lane.b32.xlu1 %v3996_v41, %s4944_s11  ;;  %s4972_s11 = smov 121  }
 0x1a9   : > { %v4056_v22 = vadd.f32 %v1365_v56, %v1337_v55 }
 0x1ab   : > { %1376 = vst.msk [vmem:[#allocation2 + $0x38] sm:$0xff] %vm1369_vm11, %v4056_v22 }
 0x1af   : > { %1430 = vrot.lane.b32.xlu2 %v4004_v20, %s2909_s27  ;;  %1833 = vrot.lane.b32.xlu0 %v3996_v41, %s4948_s28 }
 0x1b0   : > { %1648 = vrot.lane.b32.xlu1 %v3996_v41, %s4958_s30 }
 0x1b7   : > { %1393 = vrot.lane.b32.xlu2 %v4004_v20, %s4946_s21  ;;  %1763 = vrot.lane.b32.xlu0 %v4004_v20, %s4962_s12  ;;  %s4973_s21 = smov 123  }
 0x1b8   : > { %1615 = vrot.lane.b32.xlu1 %v4004_v20, %s4972_s11 }
 0x1bf   : > { %1504 = vrot.lane.b32.xlu2 %v4004_v20, %s4956_s20  ;;  %1726 = vrot.lane.b32.xlu0 %v4004_v20, %s4952_s25  ;;  %s4975_s25 = smov 119  }
 0x1c0   : > { %1578 = vrot.lane.b32.xlu1 %v4004_v20, %s4964_s18 }
 0x1c7   : > { %1837 = vrot.lane.b32.xlu0 %v4004_v20, %s4948_s28  ;;  %1471 = vrot.lane.b32.xlu2 %v4012_v32, %s4950_s29  ;;  %s4960_s28 = smov 116   ;;  %s4974_s29 = smov 127  }
 0x1c8   : > { %1541 = vrot.lane.b32.xlu1 %v4004_v20, %s4973_s21 }
 0x1c9   : > { %v4084_v61 = vpop.permute.xlu2 %1422 }
 0x1cf   : > { %1652 = vrot.lane.b32.xlu0 %v4004_v20, %s4958_s30  ;;  %1434 = vrot.lane.b32.xlu2 %v4012_v32, %s2909_s27 }
 0x1d0   : > { %1874 = vrot.lane.b32.xlu1 %v4004_v20, %s4954_s26 }
 0x1d1   : > { %v4092_v63 = vpop.permute.xlu2 %1533 }
 0x1d7   : > { %1800 = vrot.lane.b32.xlu0 %v4004_v20, %s4960_s28  ;;  %1397 = vrot.lane.b32.xlu2 %v4012_v32, %s4974_s29 }
 0x1d8   : > { %1689 = vrot.lane.b32.xlu1 %v4004_v20, %s4975_s25 }
 0x1d9   : > { %v4100_v60 = vpop.permute.xlu2 %1496 }
 0x1df   : > { %1619 = vrot.lane.b32.xlu0 %v4012_v32, %s4972_s11  ;;  %1878 = vrot.lane.b32.xlu2 %v4012_v32, %s4954_s26  ;;  %s4976_s26 = smov 118  }
 0x1e0   : > { %1582 = vrot.lane.b32.xlu1 %v4012_v32, %s4964_s18 }
 0x1e1   : > { %v4108_v28 = vpop.permute.xlu2 %1611  ;;  %v4110_v1 = vpop.permute.xlu0 %1607 }
 0x1e2   : > { %v4112_v6 = vpop.permute.xlu1 %1459 }
 0x1e7   : > { %1767 = vrot.lane.b32.xlu0 %v4012_v32, %s4962_s12  ;;  %1508 = vrot.lane.b32.xlu2 %v4012_v32, %s4956_s20  ;;  %s4977_s20 = smov 115  }
 0x1e8   : > { %1545 = vrot.lane.b32.xlu1 %v4012_v32, %s4973_s21 }
 0x1e9   : > { %v4120_v9 = vpop.permute.xlu2 %1426  ;;  %v4122_v44 = vpop.permute.xlu0 %1755 }
 0x1ea   : > { %v4124_v12 = vpop.permute.xlu1 %1570 }
 0x1ef   : > { %1730 = vrot.lane.b32.xlu0 %v4012_v32, %s4976_s26  ;;  %1656 = vrot.lane.b32.xlu2 %v4012_v32, %s4958_s30  ;;  %s4978_s30 = smov 125  }
 0x1f0   : > { %1693 = vrot.lane.b32.xlu1 %v4012_v32, %s4975_s25 }
 0x1f1   : > { %v4132_v13 = vpop.permute.xlu2 %1722  ;;  %v4134_v46 = vpop.permute.xlu0 %1385 }
 0x1f2   : > { %v4136_v57 = vpop.permute.xlu1 %1718 }
 0x1f7   : > { %1841 = vrot.lane.b32.xlu0 %v4012_v32, %s4977_s20  ;;  %1804 = vrot.lane.b32.xlu2 %v4012_v32, %s4960_s28  ;;  %s4979_s28 = smov 124  }
 0x1f8   : > { %1609 = vrot.lane.b32.xlu1 %v4026_v17, %s4972_s11 }
 0x1f9   : > { %v4144_v29 = vpop.permute.xlu2 %1500  ;;  %v4146_v7 = vpop.permute.xlu0 %1866 }
 0x1fa   : > { %v4148_v14 = vpop.permute.xlu1 %1681 }
 0x1ff   : > { %1424 = vrot.lane.b32.xlu0 %v4026_v17, %s2909_s27  ;;  %1461 = vrot.lane.b32.xlu2 %v4026_v17, %s4978_s30 }
 0x200   : > { %1757 = vrot.lane.b32.xlu1 %v4026_v17, %s4962_s12  ;;  %s4980_s12 = smov 114  }
 0x201   : > { %v4156_v58 = vpop.permute.xlu2 %1467  ;;  %v4158_v15 = vpop.permute.xlu0 %1463 }
 0x202   : > { %v4160_v19 = vpop.permute.xlu1 %1829 }
 0x207   : > { %1535 = vrot.lane.b32.xlu0 %v4026_v17, %s4973_s21  ;;  %1572 = vrot.lane.b32.xlu2 %v4026_v17, %s4964_s18  ;;  %s4981_s18 = smov 117  }
 0x208   : > { %1387 = vrot.lane.b32.xlu1 %v4026_v17, %s4974_s29 }
 0x209   : > { %v4168_v34 = vpop.permute.xlu2 %1430  ;;  %v4170_v26 = vpop.permute.xlu0 %1759 }
 0x20a   : > { %v4172_v48 = vpop.permute.xlu1 %1574 }
 0x20f   : > { %1498 = vrot.lane.b32.xlu0 %v4026_v17, %s4979_s28  ;;  %1720 = vrot.lane.b32.xlu2 %v4026_v17, %s4976_s26 }
 0x210   : > { %1868 = vrot.lane.b32.xlu1 %v4026_v17, %s4980_s12 }
 0x211   : > { %v4180_v30 = vpop.permute.xlu2 %1393  ;;  %v4182_v49 = vpop.permute.xlu0 %1537 }
 0x212   : > { %v4184_v31 = vpop.permute.xlu1 %1389 }
 0x217   : > { %1613 = vrot.lane.b32.xlu0 %v4036_v59, %s4972_s11  ;;  %1683 = vrot.lane.b32.xlu2 %v4026_v17, %s4975_s25 }
 0x218   : > { %1465 = vrot.lane.b32.xlu1 %v4036_v59, %s4978_s30 }
 0x219   : > { %v4192_v33 = vpop.permute.xlu2 %1504  ;;  %v4194_v35 = vpop.permute.xlu0 %1870 }
 0x21a   : > { %v4196_v4 = vpop.permute.xlu1 %1685 }
 0x21f   : > { %1428 = vrot.lane.b32.xlu0 %v4036_v59, %s2909_s27  ;;  %1831 = vrot.lane.b32.xlu2 %v4026_v17, %s4977_s20 }
 0x220   : > { %1761 = vrot.lane.b32.xlu1 %v4036_v59, %s4981_s18 }
 0x221   : > { %v4204_v36 = vpop.permute.xlu0 %1833  ;;  %v4206_v10 = vpop.permute.xlu2 %1471 }
 0x222   : > { %v4208_v40 = vpop.permute.xlu1 %1648 }
 0x227   : > { %1724 = vrot.lane.b32.xlu0 %v4036_v59, %s4976_s26  ;;  %1576 = vrot.lane.b32.xlu2 %v4036_v59, %s4982_s0 }
 0x228   : > { %1539 = vrot.lane.b32.xlu1 %v4036_v59, %s4973_s21 }
 0x229   : > { %v4216_v11 = vpop.permute.xlu0 %1763  ;;  %v4218_v39 = vpop.permute.xlu2 %1434 }
 0x22a   : > { %v4220_v16 = vpop.permute.xlu1 %1615 }
 0x22f   : > { %1502 = vrot.lane.b32.xlu0 %v4036_v59, %s4979_s28  ;;  %1391 = vrot.lane.b32.xlu2 %v4036_v59, %s4974_s29 }
 0x230   : > { %1872 = vrot.lane.b32.xlu1 %v4036_v59, %s4980_s12 }
 0x231   : > { %v4228_v42 = vpop.permute.xlu0 %1726  ;;  %v4230_v23 = vpop.permute.xlu2 %1397 }
 0x232   : > { %v4232_v18 = vpop.permute.xlu1 %1578 }
 0x237   : > { %1469 = vrot.lane.b32.xlu0 %v4046_v51, %s4978_s30  ;;  %1687 = vrot.lane.b32.xlu2 %v4036_v59, %s4975_s25 }
 0x238   : > { %1835 = vrot.lane.b32.xlu1 %v4036_v59, %s4977_s20 }
 0x239   : > { %v4240_v3 = vpop.permute.xlu0 %1837  ;;  %v4242_v62 = vpop.permute.xlu2 %1878 }
 0x23a   : > { %v4244_v5 = vpop.permute.xlu1 %1541 }
 0x23f   : > { %1432 = vrot.lane.b32.xlu0 %v4046_v51, %s2909_s27  ;;  %1650 = vrot.lane.b32.xlu2 %v4036_v59, %s4983_s1 }
 0x240   : > { %1765 = vrot.lane.b32.xlu1 %v4046_v51, %s4981_s18 }
 0x241   : > { %v4252_v24 = vpop.permute.xlu0 %1652  ;;  %v4254_v25 = vpop.permute.xlu2 %1508 }
 0x242   : > { %v4256_v45 = vpop.permute.xlu1 %1874 }
 0x247   : > { %1395 = vrot.lane.b32.xlu0 %v4046_v51, %s4974_s29  ;;  %1617 = vrot.lane.b32.xlu2 %v4046_v51, %s4972_s11 }
 0x248   : > { %1728 = vrot.lane.b32.xlu1 %v4046_v51, %s4976_s26 }
 0x249   : > { %v4264_v8 = vpop.permute.xlu0 %1800  ;;  %v4266_v52 = vpop.permute.xlu2 %1656 }
 0x24a   : > { %v4268_v37 = vpop.permute.xlu1 %1689 }
 0x24f   : > { %1506 = vrot.lane.b32.xlu0 %v4046_v51, %s4979_s28  ;;  %1580 = vrot.lane.b32.xlu2 %v4046_v51, %s4982_s0 }
 0x250   : > { %1839 = vrot.lane.b32.xlu1 %v4046_v51, %s4977_s20 }
 0x251   : > { %v4276_v38 = vpop.permute.xlu0 %1619  ;;  %v4278_v43 = vpop.permute.xlu2 %1804 }
 0x252   : > { %4984 = vst [vmem:[#allocation6_spill] sm:$0xff] %v4278_v43  ;;  %v4280_v50 = vpop.permute.xlu1 %1582 }
 0x257   : > { %1436 = vrot.lane.b32.xlu0 %v4056_v22, %s2909_s27  ;;  %1543 = vrot.lane.b32.xlu2 %v4046_v51, %s4973_s21  ;;  %s4985_s27 = smov 116  }
 0x258   : > { %1654 = vrot.lane.b32.xlu1 %v4046_v51, %s4983_s1 }
 0x259   : > { %v4288_v27 = vpop.permute.xlu0 %1767  ;;  %v1462_v2 = vpop.permute.xlu2 %1461 }
 0x25a   : > { %v4290_v21 = vpop.permute.xlu1 %1545  ;;  %v4294_v53 = vsel %vm1475_vm12, %v4112_v6, %v1462_v2  ;;  %1489 = vst.msk [vmem:[#allocation2 + $0xc8] sm:$0xff] %vm1369_vm11, %v1462_v2 }
 0x25f   : > { %1399 = vrot.lane.b32.xlu0 %v4056_v22, %s4974_s29  ;;  %1876 = vrot.lane.b32.xlu2 %v4046_v51, %s4980_s12 }
 0x260   : > { %1802 = vrot.lane.b32.xlu1 %v4046_v51, %s4985_s27 }
 0x261   : > { %v4303_v54 = vpop.permute.xlu0 %1730  ;;  %v1573_v47 = vpop.permute.xlu2 %1572 }
 0x262   : > { %v4305_v55 = vpop.permute.xlu1 %1693  ;;  %v4309_v56 = vsel %vm1586_vm13, %v4124_v12, %v1573_v47  ;;  %1600 = vst.msk [vmem:[#allocation2 + $0x188] sm:$0xff] %vm1369_vm11, %v1573_v47 }
 0x267   : > { %1880 = vrot.lane.b32.xlu0 %v4056_v22, %s4980_s12  ;;  %1691 = vrot.lane.b32.xlu2 %v4046_v51, %s4975_s25 }
 0x268   : > { %1621 = vrot.lane.b32.xlu1 %v4056_v22, %s4972_s11  ;;  %s2563_s11 = scalar_lea.hbm %s4939_s10, %s2999_s17 }
 0x269   : > { %v4318_v6 = vpop.permute.xlu0 %1841  ;;  %v1721_v2 = vpop.permute.xlu2 %1720  ;;  %s2567_s12 = sshll.u32 %s2563_s11, 4  ;;  %s2568_s12 = int_to_ptr.hbm [resolvable:$true] %s2567_s12 }
 0x26a   : > { %4986 = vst [vmem:[#allocation7_spill] sm:$0xff] %v4318_v6  ;;  %v1610_v43 = vpop.permute.xlu1 %1609  ;;  %v4322_v12 = vsel %vm1734_vm14, %v4136_v57, %v1721_v2 }
 0x26b   : > { %1748 = vst.msk [vmem:[#allocation2 + $0x288] sm:$0xff] %vm1369_vm11, %v1721_v2  ;;  %v4327_v47 = vsel %vm1623_vm15, %v4110_v1, %v1610_v43 }
 0x26c   : > { %1637 = vst.msk [vmem:[#allocation2 + $0x1c8] sm:$0xff] %vm1369_vm11, %v1610_v43 }
 0x26f   : > { %1510 = vrot.lane.b32.xlu0 %v4056_v22, %s4979_s28  ;;  %1473 = vrot.lane.b32.xlu2 %v4056_v22, %s4978_s30 }
 0x270   : > { %1769 = vrot.lane.b32.xlu1 %v4056_v22, %s4981_s18  ;;  %s2858_s18 = sshra.s32 %s2568_s12, 4  ;;  %s2859_s18 = int_to_ptr.hbm [resolvable:$true] %s2858_s18 }
 0x271   : > { %v1425_v51 = vpop.permute.xlu0 %1424  ;;  %v1684_v57 = vpop.permute.xlu2 %1683  ;;  %p2865_p0 = scmp.lt.s32.totalorder %s2859_s18, %s4939_s10 }
 0x272   : > { %v1758_v2 = vpop.permute.xlu1 %1757  ;;  %v4338_v1 = vsel %vm1438_vm0, %v4084_v61, %v1425_v51  ;;  %1452 = vst.msk [vmem:[#allocation2 + $0x88] sm:$0xff] %vm1369_vm11, %v1425_v51  ;;  %v4348_v6 = vsel %vm1697_vm2, %v4148_v14, %v1684_v57 }
 0x273   : > { %v4343_v43 = vsel %vm1771_vm1, %v4122_v44, %v1758_v2  ;;  %1785 = vst.msk [vmem:[#allocation2 + $0x2c8] sm:$0xff] %vm1369_vm11, %v1758_v2 }
 0x274   : > { %1711 = vst.msk [vmem:[#allocation2 + $0x248] sm:$0xff] %vm1369_vm11, %v1684_v57 }
 0x277   : > { %1646 = vrot.lane.b32.xlu0 %v4026_v17, %s4983_s1  ;;  %1584 = vrot.lane.b32.xlu2 %v4056_v22, %s4982_s0 }
 0x278   : > { %1732 = vrot.lane.b32.xlu1 %v4056_v22, %s4976_s26 }
 0x279   : > { %v1536_v61 = vpop.permute.xlu0 %1535  ;;  %v1832_v44 = vpop.permute.xlu2 %1831 }
 0x27a   : > { %v1388_v51 = vpop.permute.xlu1 %1387  ;;  %v4359_v14 = vsel %vm1549_vm3, %v4092_v63, %v1536_v61  ;;  %1563 = vst.msk [vmem:[#allocation2 + $0x148] sm:$0xff] %vm1369_vm11, %v1536_v61  ;;  %v4369_v2 = vsel %vm1845_vm5, %v4160_v19, %v1832_v44 }
 0x27b   : > { %v4364_v57 = vsel %vm1401_vm4, %v4134_v46, %v1388_v51  ;;  %1415 = vst.msk [vmem:[#allocation2 + $0x48] sm:$0xff] %vm1369_vm11, %v1388_v51 }
 0x27c   : > { %1859 = vst.msk [vmem:[#allocation2 + $0x348] sm:$0xff] %vm1369_vm11, %v1832_v44 }
 0x27f   : > { %1658 = vrot.lane.b32.xlu0 %v4056_v22, %s4983_s1  ;;  %1547 = vrot.lane.b32.xlu2 %v4056_v22, %s4973_s21  ;;  %s350_s21 = sand.u32 1, %s2898_s14  }
 0x280   : > { %1843 = vrot.lane.b32.xlu1 %v4056_v22, %s4977_s20  ;;  %s351_s0 = scalar_lea.vmem [#allocation3], %s350_s21  ;;  %s2555_s17 = scalar_lea.sflag [#allocation4], %s350_s21 }
 0x281   : > { %v1499_v63 = vpop.permute.xlu0 %1498  ;;  %v1577_v46 = vpop.permute.xlu2 %1576  ;;  %s2860_s20 = scalar_lea.hbm %s2859_s18, 1 }
 0x282   : > { %v1869_v61 = vpop.permute.xlu1 %1868  ;;  %v4380_v19 = vsel %vm1512_vm6, %v4100_v60, %v1499_v63  ;;  %1526 = vst.msk [vmem:[#allocation2 + $0x108] sm:$0xff] %vm1369_vm11, %v1499_v63  ;;  %v4390_v51 = vsel %vm1586_vm13, %v4172_v48, %v1577_v46  ;;  %p2861_p11 = scmp.ne.s32.totalorder %s2859_s18, %s2860_s20 }
 0x283   : > { %v4385_v44 = vsel %vm1882_vm7, %v4146_v7, %v1869_v61  ;;  %1896 = vst.msk [vmem:[#allocation2 + $0x388] sm:$0xff] %vm1369_vm11, %v1869_v61 }
 0x284   : > { %1602 = vst.msk [vmem:[#allocation2 + $0x198] sm:$0xff] %vm1369_vm11, %v1577_v46  ;;  %p2862_p12 = pnand %p2861_p11, %p3016_p5 }
 0x286   : > { %p2863_p13 = pneg %p2862_p12 }
 0x287   : > { %1806 = vrot.lane.b32.xlu0 %v4056_v22, %s4985_s27  ;;  %1695 = vrot.lane.b32.xlu2 %v4056_v22, %s4975_s25 }
 0x288   : > { %1796 = vrot.lane.b32.xlu1 %v3996_v41, %s4985_s27 }
 0x289   : > { %v1614_v60 = vpop.permute.xlu0 %1613  ;;  %v1392_v7 = vpop.permute.xlu2 %1391 }
 0x28a   : > { %v1466_v63 = vpop.permute.xlu1 %1465  ;;  %v4401_v61 = vsel %vm1623_vm15, %v4108_v28, %v1614_v60  ;;  %1639 = vst.msk [vmem:[#allocation2 + $0x1d8] sm:$0xff] %vm1369_vm11, %v1614_v60  ;;  %v4411_v22 = vsel %vm1401_vm4, %v4184_v31, %v1392_v7 }
 0x28b   : > { %v4406_v48 = vsel %vm1475_vm12, %v4158_v15, %v1466_v63  ;;  %1491 = vst.msk [vmem:[#allocation2 + $0xd8] sm:$0xff] %vm1369_vm11, %v1466_v63 }
 0x28c   : > { %1417 = vst.msk [vmem:[#allocation2 + $0x58] sm:$0xff] %vm1369_vm11, %v1392_v7 }
 0x28f   : > { %1792 = vrot.lane.b32.xlu0 %v3987_v0, %s4985_s27  ;;  %1644 = vrot.lane.b32.xlu2 %v3987_v0, %s4983_s1  ;;  %s2565_s1 = sshll.u32 %s351_s0, 4  ;;  %s2566_s1 = int_to_ptr.vmem [resolvable:$true] %s2565_s1 }
 0x290   : > { %1794 = vrot.lane.b32.xlu1 %v4026_v17, %s4985_s27  ;;  %v2316_v17 = vld [vmem:[%s4935_s6] sm:$0xff] }
 0x291   : > { %v1429_v28 = vpop.permute.xlu0 %1428  ;;  %v1688_v15 = vpop.permute.xlu2 %1687 }
 0x292   : > { %v1762_v46 = vpop.permute.xlu1 %1761  ;;  %v4422_v60 = vsel %vm1438_vm0, %v4120_v9, %v1429_v28  ;;  %1454 = vst.msk [vmem:[#allocation2 + $0x98] sm:$0xff] %vm1369_vm11, %v1429_v28  ;;  %v4432_v0 = vsel %vm1697_vm2, %v4196_v4, %v1688_v15  ;;  %v2285_v9 = vld [vmem:[%s4934_s5 + $0x8] sm:$0xff] }
 0x293   : > { %v4427_v31 = vsel %vm1771_vm1, %v4170_v26, %v1762_v46  ;;  %1787 = vst.msk [vmem:[#allocation2 + $0x2d8] sm:$0xff] %vm1369_vm11, %v1762_v46 }
 0x294   : > { %1713 = vst.msk [vmem:[#allocation2 + $0x258] sm:$0xff] %vm1369_vm11, %v1688_v15  ;;  %v2286_v15 = vld [vmem:[%s4934_s5 + $0x10] sm:$0xff] }
 0x297   : > { %2322 = vperm.xlu0 %2777, %v2316_v17   ;;  %1798 = vrot.lane.b32.xlu2 %v4036_v59, %s4985_s27 }
 0x298   : > { %2295 = vperm.xlu1 %2778, %v2285_v9  }
 0x299   : > { %v1725_v26 = vpop.permute.xlu0 %1724  ;;  %v1651_v7 = vpop.permute.xlu2 %1650 }
 0x29a   : > { %v1540_v4 = vpop.permute.xlu1 %1539  ;;  %v4445_v63 = vsel %vm1734_vm14, %v4132_v13, %v1725_v26  ;;  %1750 = vst.msk [vmem:[#allocation2 + $0x298] sm:$0xff] %vm1369_vm11, %v1725_v26  ;;  %v4455_v59 = vsel %vm1660_vm8, %v4208_v40, %v1651_v7  ;;  %v2318_v13 = vld [vmem:[%s4935_s6 + $0x10] sm:$0xff] }
 0x29b   : > { %v4450_v28 = vsel %vm1549_vm3, %v4182_v49, %v1540_v4  ;;  %1565 = vst.msk [vmem:[#allocation2 + $0x158] sm:$0xff] %vm1369_vm11, %v1540_v4 }
 0x29c   : > { %1676 = vst.msk [vmem:[#allocation2 + $0x218] sm:$0xff] %vm1369_vm11, %v1651_v7  ;;  %v2319_v7 = vld [vmem:[%s4935_s6 + $0x18] sm:$0xff] }
 0x29f   : > { %2300 = vperm.xlu0 %2777, %v2286_v15  }
 0x2a0   : > { %2332 = vperm.xlu1 %2778, %v2318_v13  }
 0x2a1   : > { %v1503_v49 = vpop.permute.xlu0 %1502  ;;  %v1618_v46 = vpop.permute.xlu2 %1617 }
 0x2a2   : > { %v1873_v17 = vpop.permute.xlu1 %1872  ;;  %v4466_v9 = vsel %vm1512_vm6, %v4144_v29, %v1503_v49  ;;  %1528 = vst.msk [vmem:[#allocation2 + $0x118] sm:$0xff] %vm1369_vm11, %v1503_v49  ;;  %v4476_v26 = vsel %vm1623_vm15, %v4220_v16, %v1618_v46 }
 0x2a3   : > { %v4471_v40 = vsel %vm1882_vm7, %v4194_v35, %v1873_v17  ;;  %1898 = vst.msk [vmem:[#allocation2 + $0x398] sm:$0xff] %vm1369_vm11, %v1873_v17 }
 0x2a4   : > { %1641 = vst.msk [vmem:[#allocation2 + $0x1e8] sm:$0xff] %vm1369_vm11, %v1618_v46 }
 0x2a7   : > { %2337 = vperm.xlu0 %2777, %v2319_v7  }
 0x2a9   : > { %v1470_v29 = vpop.permute.xlu0 %1469  ;;  %v1581_v4 = vpop.permute.xlu2 %1580 }
 0x2aa   : > { %v1836_v15 = vpop.permute.xlu1 %1835  ;;  %v1478_v35 = vsel %vm1475_vm12, %v4156_v58, %v1470_v29  ;;  %1493 = vst.msk [vmem:[#allocation2 + $0xe8] sm:$0xff] %vm1369_vm11, %v1470_v29  ;;  %v4492_v16 = vsel %vm1586_vm13, %v4232_v18, %v1581_v4 }
 0x2ab   : > { %v4487_v13 = vsel %vm1845_vm5, %v4204_v36, %v1836_v15  ;;  %1861 = vst.msk [vmem:[#allocation2 + $0x358] sm:$0xff] %vm1369_vm11, %v1836_v15 }
 0x2ac   : > { %1604 = vst.msk [vmem:[#allocation2 + $0x1a8] sm:$0xff] %vm1369_vm11, %v1581_v4 }
 0x2b1   : > { %v1433_v49 = vpop.permute.xlu0 %1432  ;;  %v1544_v46 = vpop.permute.xlu2 %1543 }
 0x2b2   : > { %v1766_v17 = vpop.permute.xlu1 %1765  ;;  %v1441_v58 = vsel %vm1438_vm0, %v4168_v34, %v1433_v49  ;;  %1456 = vst.msk [vmem:[#allocation2 + $0xa8] sm:$0xff] %vm1369_vm11, %v1433_v49  ;;  %v4505_v18 = vsel %vm1549_vm3, %v4244_v5, %v1544_v46 }
 0x2b3   : > { %v4500_v36 = vsel %vm1771_vm1, %v4216_v11, %v1766_v17  ;;  %1789 = vst.msk [vmem:[#allocation2 + $0x2e8] sm:$0xff] %vm1369_vm11, %v1766_v17 }
 0x2b4   : > { %1567 = vst.msk [vmem:[#allocation2 + $0x168] sm:$0xff] %vm1369_vm11, %v1544_v46 }
 0x2b9   : > { %v1396_v7 = vpop.permute.xlu0 %1395  ;;  %v1877_v29 = vpop.permute.xlu2 %1876 }
 0x2ba   : > { %v1729_v4 = vpop.permute.xlu1 %1728  ;;  %v1404_v34 = vsel %vm1401_vm4, %v4180_v30, %v1396_v7  ;;  %1419 = vst.msk [vmem:[#allocation2 + $0x68] sm:$0xff] %vm1369_vm11, %v1396_v7  ;;  %v1885_v5 = vsel %vm1882_vm7, %v4256_v45, %v1877_v29 }
 0x2bb   : > { %v4513_v11 = vsel %vm1734_vm14, %v4228_v42, %v1729_v4  ;;  %1752 = vst.msk [vmem:[#allocation2 + $0x2a8] sm:$0xff] %vm1369_vm11, %v1729_v4 }
 0x2bc   : > { %1900 = vst.msk [vmem:[#allocation2 + $0x3a8] sm:$0xff] %vm1369_vm11, %v1877_v29 }
 0x2c1   : > { %v1507_v15 = vpop.permute.xlu0 %1506  ;;  %v1692_v49 = vpop.permute.xlu2 %1691 }
 0x2c2   : > { %v1840_v46 = vpop.permute.xlu1 %1839  ;;  %v4521_v17 = vsel %vm1512_vm6, %v4192_v33, %v1507_v15  ;;  %1530 = vst.msk [vmem:[#allocation2 + $0x128] sm:$0xff] %vm1369_vm11, %v1507_v15  ;;  %v4531_v42 = vsel %vm1697_vm2, %v4268_v37, %v1692_v49 }
 0x2c3   : > { %v4526_v30 = vsel %vm1845_vm5, %v4240_v3, %v1840_v46  ;;  %1863 = vst.msk [vmem:[#allocation2 + $0x368] sm:$0xff] %vm1369_vm11, %v1840_v46  ;;  %v4645_v46 = vld [vmem:[%s4933_s4 + $0x20] sm:$0xff] }
 0x2c4   : > { %1715 = vst.msk [vmem:[#allocation2 + $0x268] sm:$0xff] %vm1369_vm11, %v1692_v49 }
 0x2c9   : > { %v1437_v45 = vpop.permute.xlu0 %1436  ;;  %v1474_v7 = vpop.permute.xlu2 %1473 }
 0x2ca   : > { %v1655_v29 = vpop.permute.xlu1 %1654  ;;  %v1442_v33 = vsel %vm1438_vm0, %v4218_v39, %v1437_v45  ;;  %1458 = vst.msk [vmem:[#allocation2 + $0xb8] sm:$0xff] %vm1369_vm11, %v1437_v45  ;;  %v1479_v3 = vsel %vm1475_vm12, %v4206_v10, %v1474_v7  ;;  %v4655_v45 = vld [vmem:[%s4933_s4 + $0x10] sm:$0xff]  ;;  %vm2432_vm12 = vcmask 1042432  }
 0x2cb   : > { %v4541_v4 = vsel %vm1660_vm8, %v4252_v24, %v1655_v29  ;;  %1678 = vst.msk [vmem:[#allocation2 + $0x228] sm:$0xff] %vm1369_vm11, %v1655_v29  ;;  %2052 = vmatpush.msra.mxu2 %v1479_v3  ;;  %v4666_v3 = vld [vmem:[%s4933_s4 + $0x18] sm:$0xff] }
 0x2cc   : > { %1495 = vst.msk [vmem:[#allocation2 + $0xf8] sm:$0xff] %vm1369_vm11, %v1474_v7  ;;  %v1926_v7 = vld [vmem:[#allocation2 + $0x38] sm:$0xff] }
 0x2cd   : > { %2053 = vmatpush.msra.mxu2 %v1478_v35 }
 0x2cf   : > { %2054 = vmatpush.msra.mxu2 %v4406_v48 }
 0x2d1   : > { %v1400_v37 = vpop.permute.xlu0 %1399  ;;  %v1585_v39 = vpop.permute.xlu2 %1584  ;;  %2055 = vmatpush.msra.mxu2 %v4294_v53 }
 0x2d2   : > { %v1803_v15 = vpop.permute.xlu1 %1802  ;;  %v1405_v10 = vsel %vm1401_vm4, %v4230_v23, %v1400_v37  ;;  %1421 = vst.msk [vmem:[#allocation2 + $0x78] sm:$0xff] %vm1369_vm11, %v1400_v37  ;;  %v1590_v48 = vsel %vm1586_vm13, %v4280_v50, %v1585_v39  ;;  %v1972_v37 = vld [vmem:[#allocation2 + $0x1a8] sm:$0xff] }
 0x2d3   : > { %v4552_v24 = vsel %vm1808_vm9, %v4264_v8, %v1803_v15  ;;  %1826 = vst.msk [vmem:[#allocation2 + $0x328] sm:$0xff] %vm1369_vm11, %v1803_v15  ;;  %2056 = vmatpush.msra.mxu2 %v1442_v33 }
 0x2d4   : > { %1606 = vst.msk [vmem:[#allocation2 + $0x1b8] sm:$0xff] %vm1369_vm11, %v1585_v39  ;;  %v2012_v39 = vld [vmem:[#allocation2 + $0x2e8] sm:$0xff] }
 0x2d5   : > { %2057 = vmatpush.msra.mxu2 %v1441_v58 }
 0x2d7   : > { %2058 = vmatpush.msra.mxu2 %v4422_v60  ;;  %v1942_v60 = vld [vmem:[#allocation2 + $0xb8] sm:$0xff] }
 0x2d9   : > { %v1881_v53 = vpop.permute.xlu0 %1880  ;;  %v1548_v35 = vpop.permute.xlu2 %1547  ;;  %2059 = vmatpush.msra.mxu2 %v4338_v1 }
 0x2da   : > { %v1622_v23 = vpop.permute.xlu1 %1621  ;;  %v1886_v8 = vsel %vm1882_vm7, %v4242_v62, %v1881_v53  ;;  %1902 = vst.msk [vmem:[#allocation2 + $0x3b8] sm:$0xff] %vm1369_vm11, %v1881_v53  ;;  %v1553_v50 = vsel %vm1549_vm3, %v4290_v21, %v1548_v35  ;;  %v2036_v53 = vld [vmem:[#allocation2 + $0x3a8] sm:$0xff] }
 0x2db   : > { %v1627_v49 = vsel %vm1623_vm15, %v4276_v38, %v1622_v23  ;;  %1643 = vst.msk [vmem:[#allocation2 + $0x1f8] sm:$0xff] %vm1369_vm11, %v1622_v23  ;;  %2060 = vmatpush.msra.mxu2 %v1405_v10  ;;  %2143 = vmatpush.msrb.mxu1 %v1886_v8  ;;  %v1974_v29 = vld [vmem:[#allocation2 + $0x1b8] sm:$0xff]  ;;  %v1968_v23 = vld [vmem:[#allocation2 + $0x188] sm:$0xff]  ;;  %v4673_v8 = vld [vmem:[%s4933_s4 + $0x40] sm:$0xff] }
 0x2dc   : > { %2081 = vmatpush.msra.mxu3 %v1627_v49  ;;  %1569 = vst.msk [vmem:[#allocation2 + $0x178] sm:$0xff] %vm1369_vm11, %v1548_v35  ;;  %v1922_v10 = vld [vmem:[#allocation2 + $0x18] sm:$0xff]  ;;  %v1920_v35 = vld [vmem:[#allocation2 + $0x8] sm:$0xff] }
 0x2dd   : > { %2061 = vmatpush.msra.mxu2 %v1404_v34  ;;  %2144 = vmatpush.msrb.mxu1 %v1885_v5  ;;  %v1932_v34 = vld [vmem:[#allocation2 + $0x68] sm:$0xff] }
 0x2de   : > { %2082 = vmatpush.msra.mxu3 %v4476_v26  ;;  %v1928_v5 = vld [vmem:[#allocation2 + $0x48] sm:$0xff] }
 0x2df   : > { %2062 = vmatpush.msra.mxu2 %v4411_v22  ;;  %2145 = vmatpush.msrb.mxu1 %v4471_v40  ;;  %v4678_v49 = vld [vmem:[%s4933_s4 + $0x48] sm:$0xff] }
 0x2e0   : > { %2083 = vmatpush.msra.mxu3 %v4401_v61 }
 0x2e1   : > { %v1511_v62 = vpop.permute.xlu0 %1510  ;;  %v1696_v38 = vpop.permute.xlu2 %1695  ;;  %2063 = vmatpush.msra.mxu2 %v4364_v57  ;;  %2146 = vmatpush.msrb.mxu1 %v4385_v44  ;;  %v1948_v57 = vld [vmem:[#allocation2 + $0xe8] sm:$0xff]  ;;  %v1946_v44 = vld [vmem:[#allocation2 + $0xd8] sm:$0xff] }
 0x2e2   : > { %v1770_v21 = vpop.permute.xlu1 %1769  ;;  %v1516_v1 = vsel %vm1512_vm6, %v4254_v25, %v1511_v62  ;;  %1532 = vst.msk [vmem:[#allocation2 + $0x138] sm:$0xff] %vm1369_vm11, %v1511_v62  ;;  %2084 = vmatpush.msra.mxu3 %v4327_v47  ;;  %v1701_v61 = vsel %vm1697_vm2, %v4305_v55, %v1696_v38  ;;  %v1919_v25 = vld [vmem:[#allocation2] sm:$0xff]  ;;  %v1950_v47 = vld [vmem:[#allocation2 + $0xf8] sm:$0xff]  ;;  %vm2552_vm6 = vcmask 8192  }
 0x2e3   : > { %v1775_v22 = vsel %vm1771_vm1, %v4288_v27, %v1770_v21  ;;  %1791 = vst.msk [vmem:[#allocation2 + $0x2f8] sm:$0xff] %vm1369_vm11, %v1770_v21  ;;  %2064 = vmatpush.msra.mxu2 %v4012_v32  ;;  %v2038_v15 = vld [vmem:[#allocation2 + $0x3b8] sm:$0xff] }
 0x2e4   : > { %2085 = vmatpush.msra.mxu3 %v1590_v48  ;;  %2110 = vmatpush.msrb.mxu0 %v1775_v22  ;;  %1717 = vst.msk [vmem:[#allocation2 + $0x278] sm:$0xff] %vm1369_vm11, %v1696_v38  ;;  %v2010_v48 = vld [vmem:[#allocation2 + $0x2d8] sm:$0xff]  ;;  %v4683_v38 = vld [vmem:[%s4933_s4 + $0x30] sm:$0xff] }
 0x2e5   : > { %2065 = vmatpush.msra.mxu2 %v4004_v20  ;;  %v2034_v62 = vld [vmem:[#allocation2 + $0x398] sm:$0xff] }
 0x2e6   : > { %2086 = vmatpush.msra.mxu3 %v4492_v16  ;;  %2111 = vmatpush.msrb.mxu0 %v4500_v36  ;;  %v4628_v16 = vld [vmem:[%s4933_s4 + $0x8] sm:$0xff]  ;;  %v1966_v21 = vld [vmem:[#allocation2 + $0x178] sm:$0xff] }
 0x2e7   : > { %2066 = vmatpush.msra.mxu2 %v3996_v41  ;;  %v4988_v36 = vld [vmem:[#allocation6_spill] sm:$0xff] }
 0x2e8   : > { %2087 = vmatpush.msra.mxu3 %v4390_v51  ;;  %2112 = vmatpush.msrb.mxu0 %v4427_v31  ;;  %v4987_v31 = vld [vmem:[#allocation7_spill] sm:$0xff] }
 0x2e9   : > { %v1647_v27 = vpop.permute.xlu0 %1646  ;;  %v1645_v55 = vpop.permute.xlu2 %1644  ;;  %2067 = vmatpush.msra.mxu2 %v1919_v25  ;;  %v1964_v25 = vld [vmem:[#allocation2 + $0x168] sm:$0xff] }
 0x2ea   : > { %v1733_v32 = vpop.permute.xlu1 %1732  ;;  %1674 = vst.msk [vmem:[#allocation2 + $0x208] sm:$0xff] %vm1369_vm11, %v1647_v27  ;;  %v4594_v20 = vsel %vm1660_vm8, %v1645_v55, %v1647_v27  ;;  %2113 = vmatpush.msrb.mxu0 %v4343_v43  ;;  %2088 = vmatpush.msra.mxu3 %v4309_v56  ;;  %v1944_v56 = vld [vmem:[#allocation2 + $0xc8] sm:$0xff]  ;;  %v2014_v33 = vld [vmem:[#allocation2 + $0x2f8] sm:$0xff]  ;;  %v2284_v27 = vld [vmem:[%s4934_s5] sm:$0xff] }
 0x2eb   : > { %v1738_v41 = vsel %vm1734_vm14, %v4303_v54, %v1733_v32  ;;  %1754 = vst.msk [vmem:[#allocation2 + $0x2b8] sm:$0xff] %vm1369_vm11, %v1733_v32  ;;  %2168 = vmatpush.msrb.mxu2 %v1950_v47  ;;  %v2004_v55 = vld [vmem:[#allocation2 + $0x2a8] sm:$0xff]  ;;  %v2002_v47 = vld [vmem:[#allocation2 + $0x298] sm:$0xff]  ;;  %2290 = vperm.xlu2 %2779, %v2284_v27  }
 0x2ec   : > { %2089 = vmatpush.msra.mxu3 %v1553_v50  ;;  %2114 = vmatpush.msrb.mxu0 %v1738_v41  ;;  %v2008_v50 = vld [vmem:[#allocation2 + $0x2c8] sm:$0xff] }
 0x2ed   : > { %2169 = vmatpush.msrb.mxu2 %v1948_v57  ;;  %v2028_v41 = vld [vmem:[#allocation2 + $0x368] sm:$0xff] }
 0x2ee   : > { %2090 = vmatpush.msra.mxu3 %v4505_v18  ;;  %2115 = vmatpush.msrb.mxu0 %v4513_v11  ;;  %v1982_v18 = vld [vmem:[#allocation2 + $0x1f8] sm:$0xff]  ;;  %v1980_v11 = vld [vmem:[#allocation2 + $0x1e8] sm:$0xff] }
 0x2ef   : > { %2170 = vmatpush.msrb.mxu2 %v1946_v44  ;;  %v1960_v57 = vld [vmem:[#allocation2 + $0x148] sm:$0xff]  ;;  %v4701_v44 = vld [vmem:[%s4933_s4 + $0x60] sm:$0xff] }
 0x2f0   : > { %2091 = vmatpush.msra.mxu3 %v4450_v28  ;;  %2116 = vmatpush.msrb.mxu0 %v4445_v63  ;;  %v1940_v28 = vld [vmem:[#allocation2 + $0xa8] sm:$0xff] }
 0x2f1   : > { %v1659_v43 = vpop.permute.xlu0 %1658  ;;  %2171 = vmatpush.msrb.mxu2 %v1944_v56  ;;  %v1799_v63 = vpop.permute.xlu2 %1798  ;;  %v4706_v56 = vld [vmem:[%s4933_s4 + $0x68] sm:$0xff] }
 0x2f2   : > { %v1844_v54 = vpop.permute.xlu1 %1843  ;;  %v1664_v51 = vsel %vm1660_vm8, %v4266_v52, %v1659_v43  ;;  %1680 = vst.msk [vmem:[#allocation2 + $0x238] sm:$0xff] %vm1369_vm11, %v1659_v43  ;;  %2092 = vmatpush.msra.mxu3 %v4359_v14  ;;  %2117 = vmatpush.msrb.mxu0 %v4322_v12  ;;  %v1938_v52 = vld [vmem:[#allocation2 + $0x98] sm:$0xff]  ;;  %v1936_v12 = vld [vmem:[#allocation2 + $0x88] sm:$0xff]  ;;  %v4622_v14 = vld [vmem:[%s4933_s4] sm:$0xff] }
 0x2f3   : > { %v1849_v40 = vsel %vm1845_vm5, %v4987_v31, %v1844_v54  ;;  %1865 = vst.msk [vmem:[#allocation2 + $0x378] sm:$0xff] %vm1369_vm11, %v1844_v54  ;;  %2172 = vmatpush.msrb.mxu2 %v1942_v60  ;;  %v2006_v22 = vld [vmem:[#allocation2 + $0x2b8] sm:$0xff]  ;;  %v2000_v43 = vld [vmem:[#allocation2 + $0x288] sm:$0xff] }
 0x2f4   : > { %2093 = vmatpush.msra.mxu3 %v1516_v1  ;;  %2118 = vmatpush.msrb.mxu0 %v1701_v61  ;;  %1824 = vst.msk [vmem:[#allocation2 + $0x318] sm:$0xff] %vm1369_vm11, %v1799_v63  ;;  %v4690_v1 = vld [vmem:[%s4933_s4 + $0x38] sm:$0xff]  ;;  %v2032_v61 = vld [vmem:[#allocation2 + $0x388] sm:$0xff] }
 0x2f5   : > { %2147 = vmatpush.msrb.mxu1 %v1849_v40  ;;  %2173 = vmatpush.msrb.mxu2 %v1940_v28  ;;  %v2026_v54 = vld [vmem:[#allocation2 + $0x358] sm:$0xff]  ;;  %v1956_v28 = vld [vmem:[#allocation2 + $0x128] sm:$0xff] }
 0x2f6   : > { %2094 = vmatpush.msra.mxu3 %v4521_v17  ;;  %2119 = vmatpush.msrb.mxu0 %v4531_v42  ;;  %v4650_v17 = vld [vmem:[%s4933_s4 + $0x28] sm:$0xff]  ;;  %v1958_v60 = vld [vmem:[#allocation2 + $0x138] sm:$0xff] }
 0x2f7   : > { %2148 = vmatpush.msrb.mxu1 %v4526_v30  ;;  %2174 = vmatpush.msrb.mxu2 %v1938_v52  ;;  %v1976_v42 = vld [vmem:[#allocation2 + $0x1c8] sm:$0xff]  ;;  %v4718_v31 = vld [vmem:[%s4933_s4 + $0x58] sm:$0xff] }
 0x2f8   : > { %2095 = vmatpush.msra.mxu3 %v4466_v9  ;;  %2120 = vmatpush.msrb.mxu0 %v4432_v0  ;;  %v1998_v40 = vld [vmem:[#allocation2 + $0x278] sm:$0xff]  ;;  %v2317_v52 = vld [vmem:[%s4935_s6 + $0x8] sm:$0xff] }
 0x2f9   : > { %v1807_v26 = vpop.permute.xlu0 %1806  ;;  %2149 = vmatpush.msrb.mxu1 %v4487_v13  ;;  %2175 = vmatpush.msrb.mxu2 %v1936_v12  ;;  %v1934_v13 = vld [vmem:[#allocation2 + $0x78] sm:$0xff]  ;;  %v1996_v12 = vld [vmem:[#allocation2 + $0x268] sm:$0xff] }
 0x2fa   : > { %v1797_v58 = vpop.permute.xlu1 %1796  ;;  %v1812_v9 = vsel %vm1808_vm9, %v4988_v36, %v1807_v26  ;;  %1828 = vst.msk [vmem:[#allocation2 + $0x338] sm:$0xff] %vm1369_vm11, %v1807_v26  ;;  %2096 = vmatpush.msra.mxu3 %v4380_v19  ;;  %2121 = vmatpush.msrb.mxu0 %v4348_v6  ;;  %v1930_v6 = vld [vmem:[#allocation2 + $0x58] sm:$0xff] }
 0x2fb   : > { %v1810_v0 = vsel %vm1808_vm9, %v1797_v58, %v1799_v63  ;;  %2150 = vmatpush.msrb.mxu1 %v4369_v2  ;;  %2068 = vmatmul.f32.vlgmr.msra.gmra.mxu2 %v4622_v14  ;;  %v1978_v2 = vld [vmem:[#allocation2 + $0x1d8] sm:$0xff]  ;;  %v2024_v63 = vld [vmem:[#allocation2 + $0x348] sm:$0xff] }
 0x2fc   : > { %2097 = vmatmul.f32.vlgmr.msra.gmra.mxu3 %v4628_v16  ;;  %2176 = vmatpush.msrb.mxu2 %v1934_v13  ;;  %v2030_v32 = vld [vmem:[#allocation2 + $0x378] sm:$0xff]  ;;  %v1917_v13 = vld [vmem:[%s4933_s4 + $0x70] sm:$0xff] }
 0x2fd   : > { %2197 = vmatpush.msrb.mxu3 %v1982_v18  ;;  %2122 = vmatpush.msrb.mxu0 %v1664_v51  ;;  %v4711_v51 = vld [vmem:[%s4933_s4 + $0x50] sm:$0xff]  ;;  %v1954_v58 = vld [vmem:[#allocation2 + $0x118] sm:$0xff]  ;;  %v1992_v18 = vld [vmem:[#allocation2 + $0x248] sm:$0xff] }
 0x2fe   : > { %2151 = vmatpush.msrb.mxu1 %v1812_v9  ;;  %2177 = vmatpush.msrb.mxu2 %v1932_v34  ;;  %v1994_v36 = vld [vmem:[#allocation2 + $0x258] sm:$0xff]  ;;  %v2020_v9 = vld [vmem:[#allocation2 + $0x328] sm:$0xff] }
 0x2ff   : > { %2198 = vmatpush.msrb.mxu3 %v1980_v11  ;;  %2123 = vmatpush.msrb.mxu0 %v4541_v4  ;;  %v1924_v4 = vld [vmem:[#allocation2 + $0x28] sm:$0xff]  ;;  %v2018_v34 = vld [vmem:[#allocation2 + $0x318] sm:$0xff] }
 0x300   : > { %2152 = vmatpush.msrb.mxu1 %v4552_v24  ;;  %2178 = vmatpush.msrb.mxu2 %v1930_v6  ;;  %v1970_v24 = vld [vmem:[#allocation2 + $0x198] sm:$0xff] }
 0x301   : > { %v1793_v19 = vpop.permute.xlu0 %1792  ;;  %2199 = vmatpush.msrb.mxu3 %v1978_v2  ;;  %2124 = vmatpush.msrb.mxu0 %v4455_v59  ;;  %v2022_v26 = vld [vmem:[#allocation2 + $0x338] sm:$0xff] }
 0x302   : > { %v1795_v30 = vpop.permute.xlu1 %1794  ;;  %2153 = vmatpush.msrb.mxu1 %v1810_v0  ;;  %2179 = vmatpush.msrb.mxu2 %v1928_v5  ;;  %v1952_v0 = vld [vmem:[#allocation2 + $0x108] sm:$0xff]  ;;  %v1990_v11 = vld [vmem:[#allocation2 + $0x238] sm:$0xff] }
 0x303   : > { %1822 = vst.msk [vmem:[#allocation2 + $0x308] sm:$0xff] %vm1369_vm11, %v1795_v30  ;;  %v1809_v59 = vsel %vm1808_vm9, %v1793_v19, %v1795_v30  ;;  %2200 = vmatpush.msrb.mxu3 %v1976_v42  ;;  %2125 = vmatpush.msrb.mxu0 %v4594_v20  ;;  %v1962_v20 = vld [vmem:[#allocation2 + $0x158] sm:$0xff]  ;;  %v1988_v19 = vld [vmem:[#allocation2 + $0x228] sm:$0xff]  ;;  %v2410_v30 = vld [vmem:[%s4936_s7 + $0x70] sm:$0xff] }
 0x304   : > { %2071 = vmatmul.f32.gmra.mxu2 %v4645_v46  ;;  %2100 = vmatmul.f32.gmra.mxu3 %v4650_v17  ;;  %v1918_v6 = vld [vmem:[%s4933_s4 + $0x78] sm:$0xff]  ;;  %v1984_v42 = vld [vmem:[#allocation2 + $0x208] sm:$0xff] }
 0x305   : > { %2126 = vmatmul.f32.vlgmr.msrb.gmra.mxu0 %v4655_v45  ;;  %2180 = vmatpush.msrb.mxu2 %v1926_v7  ;;  %v2287_v5 = vld [vmem:[%s4934_s5 + $0x18] sm:$0xff]  ;;  %v2405_v7 = vld [vmem:[%s4936_s7 + $0x48] sm:$0xff] }
 0x306   : > { %2201 = vmatpush.msrb.mxu3 %v1974_v29  ;;  %2226 = vmatpush.msra.mxu0 %v2014_v33  ;;  %v2404_v29 = vld [vmem:[%s4936_s7 + $0x40] sm:$0xff]  ;;  %v2403_v33 = vld [vmem:[%s4936_s7 + $0x38] sm:$0xff] }
 0x307   : > { %2154 = vmatpush.msrb.mxu1 %v1809_v59  ;;  %2181 = vmatpush.msrb.mxu2 %v1924_v4  ;;  %v2409_v59 = vld [vmem:[%s4936_s7 + $0x68] sm:$0xff] }
 0x308   : > { %2691 = vmatmul.msk.f32.vlgmr.msrb.gmra.mxu1 %vm2039_vm10, %v4666_v3  ;;  %2202 = vmatpush.msrb.mxu3 %v1972_v37  ;;  %v2401_v4 = vld [vmem:[%s4936_s7 + $0x28] sm:$0xff]  ;;  %v2400_v37 = vld [vmem:[%s4936_s7 + $0x20] sm:$0xff] }
 0x309   : > { %2227 = vmatpush.msra.mxu0 %v2012_v39  ;;  %2259 = vmatpush.msra.mxu1 %v2038_v15  ;;  %v2399_v39 = vld [vmem:[%s4936_s7 + $0x18] sm:$0xff]  ;;  %v2398_v15 = vld [vmem:[%s4936_s7 + $0x10] sm:$0xff] }
 0x30a   : > { %2182 = vmatpush.msrb.mxu2 %v1922_v10  ;;  %2203 = vmatpush.msrb.mxu3 %v1970_v24  ;;  %v2016_v2 = vld [vmem:[#allocation2 + $0x308] sm:$0xff]  ;;  %v2396_v24 = vld [vmem:[%s4936_s7] sm:$0xff] }
 0x30b   : > { %2228 = vmatpush.msra.mxu0 %v2010_v48  ;;  %2260 = vmatpush.msra.mxu1 %v2036_v53  ;;  %v2397_v10 = vld [vmem:[%s4936_s7 + $0x8] sm:$0xff] }
 0x30c   : > { %2183 = vmatpush.msrb.mxu2 %v1920_v35  ;;  %2204 = vmatpush.msrb.mxu3 %v1968_v23  ;;  %v2419_v23 = vld [vmem:[%s4936_s7 + $0xb8] sm:$0x7] }
 0x30d   : > { %2229 = vmatpush.msra.mxu0 %v2008_v50  ;;  %2261 = vmatpush.msra.mxu1 %v2034_v62 }
 0x30e   : > { %2074 = vmatmul.f32.gmra.mxu2 %v4673_v8  ;;  %2103 = vmatmul.f32.gmra.mxu3 %v4678_v49 }
 0x30f   : > { %2129 = vmatmul.f32.gmra.mxu0 %v4683_v38  ;;  %2205 = vmatpush.msrb.mxu3 %v1966_v21 }
 0x310   : > { %2230 = vmatpush.msra.mxu0 %v2006_v22  ;;  %2262 = vmatpush.msra.mxu1 %v2032_v61  ;;  %v2418_v22 = vld [vmem:[%s4936_s7 + $0xb0] sm:$0xff] }
 0x311   : > { %2692 = vmatmul.msk.f32.gmra.mxu1 %vm2039_vm10, %v4690_v1  ;;  %2206 = vmatpush.msrb.mxu3 %v1964_v25  ;;  %v4811_v25 = vpop.permute.xlu0 %2322 }
 0x312   : > { %2231 = vmatpush.msra.mxu0 %v2004_v55  ;;  %2263 = vmatpush.msra.mxu1 %v2030_v32 }
 0x313   : > { %2207 = vmatpush.msrb.mxu3 %v1962_v20  ;;  %2327 = vperm.xlu2 %2779, %v2317_v52  }
 0x314   : > { %2232 = vmatpush.msra.mxu0 %v2002_v47  ;;  %2264 = vmatpush.msra.mxu1 %v2028_v41 }
 0x315   : > { %2208 = vmatpush.msrb.mxu3 %v1960_v57 }
 0x316   : > { %2233 = vmatpush.msra.mxu0 %v2000_v43  ;;  %2265 = vmatpush.msra.mxu1 %v2026_v54 }
 0x317   : > { %2077 = vmatmul.f32.gmra.mxu2 %v4701_v44  ;;  %2106 = vmatmul.f32.gmra.mxu3 %v4706_v56 }
 0x318   : > { %2132 = vmatmul.f32.gmra.mxu0 %v4711_v51  ;;  %2209 = vmatpush.msrb.mxu3 %v1958_v60 }
 0x319   : > { %2234 = vmatpush.msra.mxu0 %v1998_v40  ;;  %2266 = vmatpush.msra.mxu1 %v2024_v63  ;;  %v2417_v40 = vld [vmem:[%s4936_s7 + $0xa8] sm:$0xff] }
 0x31a   : > { %2693 = vmatmul.msk.f32.gmra.mxu1 %vm2039_vm10, %v4718_v31  ;;  %2210 = vmatpush.msrb.mxu3 %v1956_v28  ;;  %v2416_v28 = vld [vmem:[%s4936_s7 + $0xa0] sm:$0xff] }
 0x31b   : > { %2235 = vmatpush.msra.mxu0 %v1996_v12  ;;  %2267 = vmatpush.msra.mxu1 %v2022_v26 }
 0x31c   : > { %2211 = vmatpush.msrb.mxu3 %v1954_v58  ;;  %2305 = vperm.xlu2 %2779, %v2287_v5  }
 0x31d   : > { %2236 = vmatpush.msra.mxu0 %v1994_v36  ;;  %2268 = vmatpush.msra.mxu1 %v2020_v9  ;;  %v2415_v36 = vld [vmem:[%s4936_s7 + $0x98] sm:$0xff] }
 0x31e   : > { %2212 = vmatpush.msrb.mxu3 %v1952_v0 }
 0x31f   : > { %2237 = vmatpush.msra.mxu0 %v1992_v18  ;;  %2269 = vmatpush.msra.mxu1 %v2018_v34  ;;  %v2414_v34 = vld [vmem:[%s4936_s7 + $0x90] sm:$0xff] }
 0x320   : > { %2135 = vmatmul.f32.gmra.mxu0 %v1917_v13  ;;  %2184 = vmatmul.f32.vlgmr.msrb.gmra.mxu2 %v4622_v14  ;;  %v2411_v14 = vld [vmem:[%s4936_s7 + $0x78] sm:$0xff] }
 0x321   : > { %2213 = vmatmul.f32.vlgmr.msrb.gmra.mxu3 %v4628_v16  ;;  %2238 = vmatpush.msra.mxu0 %v1990_v11  ;;  %v1986_v16 = vld [vmem:[#allocation2 + $0x218] sm:$0xff]  ;;  %v4832_v11 = vpop.permute.xlu0 %2300 }
 0x322   : > { %2270 = vmatpush.msra.mxu1 %v2016_v2  ;;  %2436 = vmatpush.msra.mxu2 %v2411_v14  ;;  %v2413_v14 = vld [vmem:[%s4936_s7 + $0x88] sm:$0xff] }
 0x323   : > { %2694 = vmatmul.msk.f32.gmra.mxu1 %vm2039_vm10, %v1918_v6  ;;  %2239 = vmatpush.msra.mxu0 %v1988_v19 }
 0x324   : > { %2437 = vmatpush.msra.mxu2 %v2410_v30  ;;  %2707 = vmatpush.msk.msra.mxu3 %vm2432_vm12, %v2419_v23 }
 0x325   : > { %2240 = vmatpush.msra.mxu0 %v1986_v16 }
 0x326   : > { %2438 = vmatpush.msra.mxu2 %v2409_v59  ;;  %2474 = vmatpush.msra.mxu3 %v2418_v22  ;;  %v2412_v59 = vld [vmem:[%s4936_s7 + $0x80] sm:$0xff] }
 0x327   : > { %2241 = vmatpush.msra.mxu0 %v1984_v42 }
 0x328   : > { %2187 = vmatmul.f32.gmra.mxu2 %v4645_v46  ;;  %2242 = vmatmul.f32.vlgmr.msra.gmra.mxu0 %v4655_v45  ;;  %v2408_v46 = vld [vmem:[%s4936_s7 + $0x60] sm:$0xff]  ;;  %v2406_v45 = vld [vmem:[%s4936_s7 + $0x50] sm:$0xff] }
 0x329   : > { %2216 = vmatmul.f32.gmra.mxu3 %v4650_v17  ;;  %2439 = vmatpush.msra.mxu2 %v2408_v46  ;;  %v2407_v17 = vld [vmem:[%s4936_s7 + $0x58] sm:$0xff] }
 0x32a   : > { %2475 = vmatpush.msra.mxu3 %v2417_v40 }
 0x32b   : > { %2695 = vmatmul.msk.f32.vlgmr.msra.gmra.mxu1 %vm2039_vm10, %v4666_v3  ;;  %2440 = vmatpush.msra.mxu2 %v2407_v17  ;;  %v2402_v3 = vld [vmem:[%s4936_s7 + $0x30] sm:$0xff] }
 0x32c   : > { %2476 = vmatpush.msra.mxu3 %v2416_v28 }
 0x32d   : > { %2441 = vmatpush.msra.mxu2 %v2406_v45 }
 0x32e   : > { %2477 = vmatpush.msra.mxu3 %v2415_v36 }
 0x32f   : > { %2442 = vmatpush.msra.mxu2 %v2405_v7 }
 0x330   : > { %2190 = vmatmul.f32.gmra.mxu2 %v4673_v8  ;;  %2245 = vmatmul.f32.gmra.mxu0 %v4683_v38 }
 0x331   : > { %2219 = vmatmul.f32.gmra.mxu3 %v4678_v49  ;;  %2443 = vmatpush.msra.mxu2 %v2404_v29 }
 0x332   : > { %2478 = vmatpush.msra.mxu3 %v2414_v34 }
 0x333   : > { %2696 = vmatmul.msk.f32.gmra.mxu1 %vm2039_vm10, %v4690_v1  ;;  %2444 = vmatpush.msra.mxu2 %v2403_v33 }
 0x334   : > { %2479 = vmatpush.msra.mxu3 %v2413_v14 }
 0x335   : > { %2445 = vmatpush.msra.mxu2 %v2402_v3 }
 0x336   : > { %2480 = vmatpush.msra.mxu3 %v2412_v59 }
 0x337   : > { %2446 = vmatpush.msra.mxu2 %v2401_v4 }
 0x338   : > { %2193 = vmatmul.f32.gmra.mxu2 %v4701_v44  ;;  %2248 = vmatmul.f32.gmra.mxu0 %v4711_v51 }
 0x339   : > { %2222 = vmatmul.f32.gmra.mxu3 %v4706_v56  ;;  %2447 = vmatpush.msra.mxu2 %v2400_v37  ;;  %v4814_v56 = vpop.permute.xlu1 %2295 }
 0x33b   : > { %2697 = vmatmul.msk.f32.gmra.mxu1 %vm2039_vm10, %v4718_v31  ;;  %2448 = vmatpush.msra.mxu2 %v2399_v39 }
 0x33d   : > { %2449 = vmatpush.msra.mxu2 %v2398_v15 }
 0x33f   : > { %2450 = vmatpush.msra.mxu2 %v2397_v10 }
 0x340   : > { %2251 = vmatmul.f32.gmra.mxu0 %v1917_v13 }
 0x341   : > { %2451 = vmatpush.msra.mxu2 %v2396_v24  ;;  %v4838_v30 = vpop.permute.xlu1 %2332  ;;  %v4847_v24 = vpop.permute.xlu0 %2337 }
 0x343   : > { %2698 = vmatmul.msk.f32.gmra.mxu1 %vm2039_vm10, %v1918_v6 }
 0x345   : > { %v4805_v62 = vpop.permute.xlu2 %2290 }
 0x36d   : > { %v4816_v43 = vpop.permute.xlu2 %2327 }
 0x376   : > { %v4844_v33 = vpop.permute.xlu2 %2305 }
 0x37e   : > { %v2069_v48 = vpop.f32.mrf.mxu2 }
 0x37f   : > { %v2098_v53 = vpop.f32.mrf.mxu3 }
 0x380   : > { %v2099_v35 = vadd.f32 %v2098_v53, %v2069_v48 }
 0x382   : > { %v2127_v8 = vpop.f32.mrf.mxu0 }
 0x383   : > { %v2128_v49 = vadd.f32 %v2127_v8, %v2099_v35 }
 0x385   : > { %v2156_v50 = vpop.f32.mrf.mxu1 }
 0x386   : > { %v2157_v38 = vadd.f32 %v2156_v50, %v2128_v49 }
 0x387   : > { %v2072_v21 = vpop.f32.mrf.mxu2  ;;  %v2101_v1 = vpop.f32.mrf.mxu3 }
 0x388   : > { %v2308_v61 = vmul.f32 %v4805_v62, %v2157_v38  ;;  %v2102_v27 = vadd.f32 %v2101_v1, %v2072_v21 }
 0x38a   : > { %v2340_v55 = vadd.f32 %v4811_v25, %v2308_v61 }
 0x38c   : > { %v2356_v32 = vmin.f32 %v2340_v55, 0.0  ;;  %v2130_v20 = vpop.f32.mrf.mxu0  ;;  %vm2348_vm13 = vcmp.gt.f32.partialorder %v2340_v55, 0.0 }
 0x38d   : > { %v2131_v47 = vadd.f32 %v2130_v20, %v2102_v27 }
 0x38e   : > { %v2364_v41 = vmul.f32 1.442695, %v2356_v32  ;;  %v2159_v57 = vpop.f32.mrf.mxu1 }
 0x38f   : > { %v2160_v44 = vadd.f32 %v2159_v57, %v2131_v47 }
 0x390   : > { %2828 = vpow2.f32 %v2364_v41 }
 0x391   : > { %v2310_v54 = vmul.f32 %v4814_v56, %v2160_v44  ;;  %v2104_v51 = vpop.f32.mrf.mxu3  ;;  %v2075_v60 = vpop.f32.mrf.mxu2 }
 0x392   : > { %v2105_v31 = vadd.f32 %v2104_v51, %v2075_v60 }
 0x393   : > { %v2342_v63 = vadd.f32 %v4816_v43, %v2310_v54 }
 0x395   : > { %v2358_v52 = vmin.f32 %v2342_v63, 0.0  ;;  %v2133_v12 = vpop.f32.mrf.mxu0  ;;  %vm2350_vm14 = vcmp.gt.f32.partialorder %v2342_v63, 0.0 }
 0x396   : > { %v2829_v26 = vpop.eup %2828  ;;  %v2134_v58 = vadd.f32 %v2133_v12, %v2105_v31 }
 0x397   : > { %v2368_v9 = vmul.f32 1.442695, %v2358_v52  ;;  %v2162_v0 = vpop.f32.mrf.mxu1  ;;  %v2699_v13 = vadd.f32 -1.0, %v2829_v26 }
 0x398   : > { %v2163_v18 = vadd.f32 %v2162_v0, %v2134_v58 }
 0x399   : > { %2830 = vpow2.f32 %v2368_v9  ;;  %v2388_v6 = vsel %vm2348_vm13, %v2340_v55, %v2699_v13 }
 0x39a   : > { %v2312_v2 = vmul.f32 %v4832_v11, %v2163_v18  ;;  %v2078_v19 = vpop.f32.mrf.mxu2  ;;  %v2107_v5 = vpop.f32.mrf.mxu3  ;;  %2452 = vmatmul.f32.vlgmr.msra.gmra.mxu2 %v2388_v6 }
 0x39b   : > { %v2108_v16 = vadd.f32 %v2107_v5, %v2078_v19 }
 0x39c   : > { %v2344_v42 = vadd.f32 %v4838_v30, %v2312_v2 }
 0x39d   : > { %v2136_v46 = vpop.f32.mrf.mxu0 }
 0x39e   : > { %v2137_v17 = vadd.f32 %v2136_v46, %v2108_v16  ;;  %v2360_v45 = vmin.f32 %v2344_v42, 0.0  ;;  %vm2352_vm15 = vcmp.gt.f32.partialorder %v2344_v42, 0.0 }
 0x39f   : > { %v2831_v7 = vpop.eup %2830 }
 0x3a0   : > { %v2165_v29 = vpop.f32.mrf.mxu1  ;;  %v2701_v3 = vadd.f32 -1.0, %v2831_v7  ;;  %v2372_v4 = vmul.f32 1.442695, %v2360_v45 }
 0x3a1   : > { %v2166_v37 = vadd.f32 %v2165_v29, %v2137_v17 }
 0x3a2   : > { %v2390_v39 = vsel %vm2350_vm14, %v2342_v63, %v2701_v3  ;;  %2832 = vpow2.f32 %v2372_v4 }
 0x3a3   : > { %v2314_v15 = vmul.f32 %v4844_v33, %v2166_v37  ;;  %v2185_v10 = vpop.f32.mrf.mxu2  ;;  %2455 = vmatmul.f32.gmra.mxu2 %v2390_v39 }
 0x3a4   : > { %v2214_v48 = vpop.f32.mrf.mxu3 }
 0x3a5   : > { %v2346_v53 = vadd.f32 %v4847_v24, %v2314_v15  ;;  %v2215_v35 = vadd.f32 %v2214_v48, %v2185_v10  ;;  %v2243_v23 = vpop.f32.mrf.mxu0 }
 0x3a7   : > { %v2362_v8 = vmin.f32 %v2346_v53, 0.0  ;;  %v2244_v49 = vadd.f32 %v2243_v23, %v2215_v35  ;;  %vm2354_vm0 = vcmp.gt.f32.partialorder %v2346_v53, 0.0 }
 0x3a8   : > { %v2833_v50 = vpop.eup %2832  ;;  %v2272_v38 = vpop.f32.mrf.mxu1 }
 0x3a9   : > { %v2273_v21 = vadd.f32 %v2272_v38, %v2244_v49  ;;  %v2703_v1 = vadd.f32 -1.0, %v2833_v50  ;;  %v2376_v22 = vmul.f32 1.442695, %v2362_v8  ;;  %v2495_v38 = vld [vmem:[%s4937_s8 + $0x8] sm:$0xff] }
 0x3ab   : > { %v2309_v61 = vmul.f32 %v4805_v62, %v2273_v21  ;;  %v2188_v27 = vpop.f32.mrf.mxu2  ;;  %v2392_v55 = vsel %vm2352_vm15, %v2344_v42, %v2703_v1  ;;  %2834 = vpow2.f32 %v2376_v22  ;;  %v2713_v21 = vld [vmem:[%s4937_s8 + $0x28] sm:$0xff]  ;;  %v2494_v22 = vld [vmem:[%s4937_s8] sm:$0xff] }
 0x3ac   : > { %v2217_v32 = vpop.f32.mrf.mxu3  ;;  %2458 = vmatmul.f32.gmra.mxu2 %v2392_v55  ;;  %v2496_v55 = vld [vmem:[%s4937_s8 + $0x10] sm:$0xff] }
 0x3ad   : > { %v2341_v20 = vadd.f32 %v4811_v25, %v2309_v61  ;;  %v2218_v47 = vadd.f32 %v2217_v32, %v2188_v27  ;;  %v2246_v41 = vpop.f32.mrf.mxu0  ;;  %v2712_v27 = vld [vmem:[%s4937_s8 + $0x20] sm:$0xff]  ;;  %v2714_v32 = vld [vmem:[%s4937_s8 + $0x30] sm:$0xff] }
 0x3af   : > { %v2357_v57 = vmin.f32 %v2341_v20, 0.0  ;;  %v2247_v44 = vadd.f32 %v2246_v41, %v2218_v47  ;;  %vm2349_vm1 = vcmp.gt.f32.partialorder %v2341_v20, 0.0 }
 0x3b0   : > { %v2275_v54 = vpop.f32.mrf.mxu1 }
 0x3b1   : > { %v2835_v51 = vpop.eup %2834  ;;  %v2366_v60 = vmul.f32 1.442695, %v2357_v57  ;;  %v2276_v31 = vadd.f32 %v2275_v54, %v2247_v44 }
 0x3b2   : > { %v2705_v40 = vadd.f32 -1.0, %v2835_v51 }
 0x3b3   : > { %2836 = vpow2.f32 %v2366_v60  ;;  %v2311_v63 = vmul.f32 %v4814_v56, %v2276_v31  ;;  %v2191_v62 = vpop.f32.mrf.mxu2 }
 0x3b4   : > { %v2220_v28 = vpop.f32.mrf.mxu3  ;;  %v2394_v52 = vsel %vm2354_vm0, %v2346_v53, %v2705_v40 }
 0x3b5   : > { %v2343_v12 = vadd.f32 %v4816_v43, %v2311_v63  ;;  %v2221_v26 = vadd.f32 %v2220_v28, %v2191_v62  ;;  %2461 = vmatmul.f32.gmra.mxu2 %v2394_v52  ;;  %v2249_v25 = vpop.f32.mrf.mxu0  ;;  %v2497_v62 = vld [vmem:[%s4937_s8 + $0x18] sm:$0xff] }
 0x3b6   : > { %v2715_v28 = vld [vmem:[%s4937_s8 + $0x38] sm:$0xff] }
 0x3b7   : > { %v2359_v58 = vmin.f32 %v2343_v12, 0.0  ;;  %v2250_v36 = vadd.f32 %v2249_v25, %v2221_v26  ;;  %vm2351_vm2 = vcmp.gt.f32.partialorder %v2343_v12, 0.0 }
 0x3b8   : > { %v2278_v9 = vpop.f32.mrf.mxu1 }
 0x3b9   : > { %v2837_v0 = vpop.eup %2836  ;;  %v2370_v13 = vmul.f32 1.442695, %v2359_v58  ;;  %v2279_v18 = vadd.f32 %v2278_v9, %v2250_v36 }
 0x3ba   : > { %v2700_v34 = vadd.f32 -1.0, %v2837_v0 }
 0x3bb   : > { %v2313_v6 = vmul.f32 %v4832_v11, %v2279_v18  ;;  %v2194_v56 = vpop.f32.mrf.mxu2  ;;  %2838 = vpow2.f32 %v2370_v13 }
 0x3bc   : > { %v2223_v2 = vpop.f32.mrf.mxu3  ;;  %v2389_v19 = vsel %vm2349_vm1, %v2341_v20, %v2700_v34 }
 0x3bd   : > { %v2345_v5 = vadd.f32 %v4838_v30, %v2313_v6  ;;  %v2224_v43 = vadd.f32 %v2223_v2, %v2194_v56  ;;  %2708 = vmatmul.msk.f32.vlgmr.msra.gmra.mxu3 %vm1369_vm11, %v2389_v19  ;;  %v2252_v14 = vpop.f32.mrf.mxu0 }
 0x3bf   : > { %v2361_v16 = vmin.f32 %v2345_v5, 0.0  ;;  %v2253_v42 = vadd.f32 %v2252_v14, %v2224_v43  ;;  %vm2353_vm3 = vcmp.gt.f32.partialorder %v2345_v5, 0.0 }
 0x3c0   : > { %v2281_v59 = vpop.f32.mrf.mxu1 }
 0x3c1   : > { %v2839_v46 = vpop.eup %2838  ;;  %v2374_v17 = vmul.f32 1.442695, %v2361_v16  ;;  %v2282_v45 = vadd.f32 %v2281_v59, %v2253_v42 }
 0x3c2   : > { %v2702_v7 = vadd.f32 -1.0, %v2839_v46 }
 0x3c3   : > { %v2315_v29 = vmul.f32 %v4844_v33, %v2282_v45  ;;  %2840 = vpow2.f32 %v2374_v17 }
 0x3c4   : > { %v2391_v11 = vsel %vm2351_vm2, %v2343_v12, %v2702_v7 }
 0x3c5   : > { %v2347_v3 = vadd.f32 %v4847_v24, %v2315_v29  ;;  %2709 = vmatmul.msk.f32.gmra.mxu3 %vm1369_vm11, %v2391_v11 }
 0x3c7   : > { %v2363_v30 = vmin.f32 %v2347_v3, 0.0  ;;  %vm2355_vm4 = vcmp.gt.f32.partialorder %v2347_v3, 0.0 }
 0x3c9   : > { %v2841_v4 = vpop.eup %2840  ;;  %v2378_v37 = vmul.f32 1.442695, %v2363_v30  ;;  %v2544_v30 = vlaneseq }
 0x3ca   : > { %v2704_v39 = vadd.f32 -1.0, %v2841_v4 }
 0x3cb   : > { %2842 = vpow2.f32 %v2378_v37  ;;  %v2545_v4 = vand.u32 127, %v2544_v30 }
 0x3cc   : > { %v2393_v15 = vsel %vm2353_vm3, %v2345_v5, %v2704_v39  ;;  %v2550_v39 = vld [vmem:[%s4938_s9] sm:$0x1] }
 0x3cd   : > { %2710 = vmatmul.msk.f32.gmra.mxu3 %vm1369_vm11, %v2393_v15  ;;  %vm2546_vm5 = vcmp.eq.s32.totalorder %v2545_v4, 0 }
 0x3d1   : > { %v2843_v10 = vpop.eup %2842 }
 0x3d2   : > { %v2706_v48 = vadd.f32 -1.0, %v2843_v10 }
 0x3d4   : > { %v2395_v33 = vsel %vm2355_vm4, %v2347_v3, %v2706_v48 }
 0x3d5   : > { %2711 = vmatmul.msk.f32.gmra.mxu3 %vm1369_vm11, %v2395_v33  ;;  %vm2502_vm11 = vcmask 187392  }
 0x41d   : > { %v2453_v53 = vpop.f32.mrf.mxu2 }
 0x426   : > { %v2456_v24 = vpop.f32.mrf.mxu2 }
 0x42f   : > { %v2459_v8 = vpop.f32.mrf.mxu2 }
 0x438   : > { %v2462_v31 = vpop.f32.mrf.mxu2 }
 0x440   : > { %v2482_v35 = vpop.f32.mrf.mxu3 }
 0x441   : > { %v2483_v50 = vadd.f32 %v2482_v35, %v2453_v53 }
 0x443   : > { %v2498_v41 = vmul.f32 %v2494_v22, %v2483_v50  ;;  %v2524_v57 = vmul.f32 %v2712_v27, %v2483_v50 }
 0x445   : > { %v2503_v40 = vsel %vm2502_vm11, %v2498_v41, 0.0  ;;  %v2528_v52 = vsel %vm2502_vm11, %v2524_v57, 0.0 }
 0x448   : > { %v2485_v23 = vpop.f32.mrf.mxu3 }
 0x449   : > { %v2486_v49 = vadd.f32 %v2485_v23, %v2456_v24 }
 0x44b   : > { %v2499_v20 = vmul.f32 %v2495_v38, %v2486_v49  ;;  %v2525_v47 = vmul.f32 %v2713_v21, %v2486_v49 }
 0x44d   : > { %v2504_v51 = vsel %vm2502_vm11, %v2499_v20, 0.0  ;;  %v2529_v60 = vsel %vm2502_vm11, %v2525_v47, 0.0 }
 0x44e   : > { %v2530_v58 = vadd.f32 %v2529_v60, %v2528_v52  ;;  %v2505_v36 = vadd.f32 %v2504_v51, %v2503_v40 }
 0x450   : > { %v2488_v1 = vpop.f32.mrf.mxu3 }
 0x451   : > { %v2489_v61 = vadd.f32 %v2488_v1, %v2459_v8 }
 0x453   : > { %v2500_v44 = vmul.f32 %v2496_v55, %v2489_v61  ;;  %v2526_v54 = vmul.f32 %v2714_v32, %v2489_v61 }
 0x455   : > { %v2531_v26 = vsel %vm2502_vm11, %v2526_v54, 0.0  ;;  %v2506_v25 = vsel %vm2502_vm11, %v2500_v44, 0.0 }
 0x456   : > { %v2532_v13 = vadd.f32 %v2531_v26, %v2530_v58  ;;  %v2507_v18 = vadd.f32 %v2506_v25, %v2505_v36 }
 0x458   : > { %v2491_v63 = vpop.f32.mrf.mxu3 }
 0x459   : > { %v2492_v12 = vadd.f32 %v2491_v63, %v2462_v31 }
 0x45b   : > { %v2501_v9 = vmul.f32 %v2497_v62, %v2492_v12  ;;  %v2527_v0 = vmul.f32 %v2715_v28, %v2492_v12 }
 0x45d   : > { %v2533_v34 = vsel %vm2502_vm11, %v2527_v0, 0.0  ;;  %v2508_v6 = vsel %vm2502_vm11, %v2501_v9, 0.0 }
 0x45e   : > { %v2534_v56 = vadd.f32 %v2533_v34, %v2532_v13  ;;  %v2509_v2 = vadd.f32 %v2508_v6, %v2507_v18 }
 0x460   : > { %2535 = vadd.xlane.f32.xlu2 %v2534_v56  ;;  %2510 = vadd.xlane.f32.xlu1 %v2509_v2 }
 0x4d3   : > { %v2536_v19 = vpop.xlane.xlu2 %2535  ;;  %v2511_v5 = vpop.xlane.xlu1 %2510 }
 0x4d4   : > { %v2537_v43 = vrot.slane %v2536_v19, 4  ;;  %v2512_v14 = vrot.slane %v2511_v5, 4 }
 0x4d6   : > { %v2538_v16 = vadd.f32 %v2537_v43, %v2536_v19  ;;  %v2513_v42 = vadd.f32 %v2512_v14, %v2511_v5 }
 0x4d8   : > { %v2539_v59 = vrot.slane %v2538_v16, 2  ;;  %v2514_v46 = vrot.slane %v2513_v42, 2 }
 0x4da   : > { %v2540_v17 = vadd.f32 %v2539_v59, %v2538_v16  ;;  %v2515_v45 = vadd.f32 %v2514_v46, %v2513_v42 }
 0x4dc   : > { %v2516_v7 = vrot.slane %v2515_v45, 1  ;;  %v2541_v29 = vrot.slane %v2540_v17, 1 }
 0x4de   : > { %v2517_v11 = vadd.f32 %v2516_v7, %v2515_v45  ;;  %v2542_v3 = vadd.f32 %v2541_v29, %v2540_v17 }
 0x4e0   : > { %2719 = vpush %v2517_v11 }
 0x4e1   : > { %2721 = vpush %v2542_v3 }
 0x511   : > { %s2720_s27 = spop %2719 }
 0x512   : > { %v2547_v37 = vstv %s2720_s27  ;;  %s2722_s28 = spop %2721  ;;  %s2864_s27 = scalar_lea.hbm %s4939_s10, 2 }
 0x513   : > { %v2548_v15 = vstv %s2722_s28  ;;  %p2866_p1 = scmp.lt.s32.totalorder %s2864_s27, %s2860_s20 }
 0x514   : > { %v2549_v10 = vsel %vm2546_vm5, %v2547_v37, %v2548_v15 }
 0x515   : > { %v2551_v48 = vadd.f32 %v2550_v39, %v2549_v10  ;;  %p2867_p2 = por %p2866_p1, %p2865_p0 }
 0x517   : > { %2553 = vst.msk [vmem:[%s351_s0] sm:$0x1] %vm2552_vm6, %v2551_v48  ;;  %p2868_p3 = pnand %p2867_p2, %p2863_p13 }
 0x519   : > { %2871 = shalt.err (!%p2868_p3)
}
 0x51a   : > { %2723 = dma.vmem_to_hbm [thread:$0]  (%p3016_p5), %s2566_s1, 16, %s2568_s12, %s2555_s17  }
 0x51b PF: > { %p2729_p4 = scmp.ge.s32.totalorder %s2906_s16, 2  ;;  %s2579_s21 = sand.u32 1, %s2894_s13  }
 0x51c   : > { %s2580_s0 = scalar_lea.sflag [#allocation4], %s2579_s21 }
 0x51d   : > { %p2726_p7 = pnand %p2729_p4, %p3020_p6 }
 0x51f   : > { %p2727_p8 = pneg %p2726_p7 }
 0x521   : > { %2889 = dma.done.wait (%p2727_p8), %s2580_s0, 16  }
 0x522   : > { %2891 = vsyncadd (%p2727_p8), %s2580_s0, 4294967280  ;;  %p20_p9 = scmp.ge.s32.totalorder %s3003_s19, 4   ;;  %s4989_s13 = smov %s2898_s14 }
 0x523   : > { %s4990_s14 = smov %s2902_s15  ;;  %s4991_s15 = smov %s3014_s22 }
 0x524   : > { %s4992_s16 = smov %s3003_s19  ;;  %22 = sbr.rel (!%p20_p9) target bundleno = 6 (0x6), region = 96 }
 0x529   :  { %2585 = vsyncpa [#allocation4], 1 }
 0x52a   :  { %2587 = vsyncpa [#allocation4 + $0x1], 1 }

</bundles_post_ra>
